<compile_context>
chip_gen: v7x
topology: tpu7x:2x2x1
jax: 0.10.0
libtpu: 0.0.40
codegen_flags: <defaults>
</compile_context>

<pallas_src>
import functools

import numpy as np
import jax
import jax.numpy as jnp
from jax.experimental import pallas as pl
from jax.experimental.pallas import tpu as pltpu

EPS = 1e-5                       # nn.BatchNorm2d default eps
VMEM_LIMIT = 48 * 1024 * 1024    # safe on v5e/v6e (128 MiB) and v7x (64 MiB)
TILE_VMEM_BUDGET = 24 * 1024 * 1024  # per-tile working-set budget (headroom)

# Sub-pixel taps: for output phase p (0/1) and 3x3-window row r (0..2),
# _TAPS[p][r] is the ConvTranspose kernel index used (None = unused).
_TAPS = ((3, 1, None), (None, 2, 0))


def _round_up(x, m):
    return (x + m - 1) // m * m


def _pick_tm(m, in_bytes_per_row, out_bytes_per_row):
    """Largest row tile (<= 2048) that divides m and whose double-buffered
    working set fits the VMEM budget (keeps (8,128) rules happy)."""
    for cand in (2048, 1024, 512, 256, 128, 64, 32, 16, 8):
        if m % cand != 0:
            continue
        if 2 * cand * (in_bytes_per_row + out_bytes_per_row) <= TILE_VMEM_BUDGET:
            return cand
    return m  # tiny m: use the full extent (grid of 1)


# ----------------------------- Pallas kernels ------------------------------
def _mm_stats_kernel(x_ref, w_ref, y_ref, sum_ref, ssq_ref):
    """Row-tiled matmul (bf16 x bf16 -> f32 accumulate) + per-column
    sum / sumsq accumulated across the (sequential, "arbitrary") row-grid
    axis.  Stats are taken from the f32 result; y is stored as bf16."""
    @pl.when(pl.program_id(0) == 0)
    def _init():
        sum_ref[...] = jnp.zeros_like(sum_ref)
        ssq_ref[...] = jnp.zeros_like(ssq_ref)

    y = jnp.dot(x_ref[...], w_ref[...], preferred_element_type=jnp.float32)
    y_ref[...] = y.astype(y_ref.dtype)
    sum_ref[...] += jnp.sum(y, axis=0, keepdims=True)
    ssq_ref[...] += jnp.sum(y * y, axis=0, keepdims=True)


def _norm_relu_kernel(y_ref, scale_ref, shift_ref, o_ref):
    """Fused BatchNorm-affine + ReLU epilogue (f32 math, bf16 store)."""
    y = y_ref[...].astype(jnp.float32)
    o_ref[...] = jnp.maximum(
        y * scale_ref[...] + shift_ref[...], 0.0
    ).astype(o_ref.dtype)


def _mm_bias_tanh_kernel(x_ref, w_ref, b_ref, o_ref):
    """Final layer: row-tiled matmul + bias + tanh (f32 output)."""
    y = jnp.dot(x_ref[...], w_ref[...], preferred_element_type=jnp.float32)
    o_ref[...] = jnp.tanh(y + b_ref[...])


# ----------------------------- kernel wrappers ------------------------------
def _mm_stats(patches, wmat, tm):
    m, k = patches.shape
    npad = wmat.shape[1]
    flops = 2 * m * k * npad
    bytes_acc = m * k * 2 + k * npad * 2 + m * npad * 2 + 2 * npad * 4
    return pl.pallas_call(
        _mm_stats_kernel,
        out_shape=(
            jax.ShapeDtypeStruct((m, npad), jnp.bfloat16),  # y (pre-norm)
            jax.ShapeDtypeStruct((1, npad), jnp.float32),   # sum
            jax.ShapeDtypeStruct((1, npad), jnp.float32),   # sum of squares
        ),
        grid=(m // tm,),
        in_specs=[
            pl.BlockSpec((tm, k), lambda i: (i, 0)),
            pl.BlockSpec((k, npad), lambda i: (0, 0)),
        ],
        out_specs=(
            pl.BlockSpec((tm, npad), lambda i: (i, 0)),
            pl.BlockSpec((1, npad), lambda i: (0, 0)),      # revisited -> accum
            pl.BlockSpec((1, npad), lambda i: (0, 0)),
        ),
        compiler_params=pltpu.CompilerParams(
            dimension_semantics=("arbitrary",),             # stats accumulator
            vmem_limit_bytes=VMEM_LIMIT),
        cost_estimate=pl.CostEstimate(flops=flops, transcendentals=0,
                                      bytes_accessed=bytes_acc),
    )(patches, wmat)


def _norm_relu(y, scale, shift, tm):
    m, npad = y.shape
    return pl.pallas_call(
        _norm_relu_kernel,
        out_shape=jax.ShapeDtypeStruct((m, npad), jnp.bfloat16),
        grid=(m // tm,),
        in_specs=[
            pl.BlockSpec((tm, npad), lambda i: (i, 0)),
            pl.BlockSpec((1, npad), lambda i: (0, 0)),
            pl.BlockSpec((1, npad), lambda i: (0, 0)),
        ],
        out_specs=pl.BlockSpec((tm, npad), lambda i: (i, 0)),
        compiler_params=pltpu.CompilerParams(
            dimension_semantics=("parallel",),
            vmem_limit_bytes=VMEM_LIMIT),
        cost_estimate=pl.CostEstimate(flops=2 * m * npad, transcendentals=0,
                                      bytes_accessed=m * npad * 2 + m * npad * 2),
    )(y, scale, shift)


def _mm_bias_tanh(patches, wmat, bias_full, tm):
    m, k = patches.shape
    npad = wmat.shape[1]
    return pl.pallas_call(
        _mm_bias_tanh_kernel,
        out_shape=jax.ShapeDtypeStruct((m, npad), jnp.float32),
        grid=(m // tm,),
        in_specs=[
            pl.BlockSpec((tm, k), lambda i: (i, 0)),
            pl.BlockSpec((k, npad), lambda i: (0, 0)),
            pl.BlockSpec((1, npad), lambda i: (0, 0)),
        ],
        out_specs=pl.BlockSpec((tm, npad), lambda i: (i, 0)),
        compiler_params=pltpu.CompilerParams(
            dimension_semantics=("parallel",),
            vmem_limit_bytes=VMEM_LIMIT),
        cost_estimate=pl.CostEstimate(flops=2 * m * k * npad,
                                      transcendentals=m * npad,
                                      bytes_accessed=m * k * 2 + k * npad * 2
                                      + m * npad * 4),
    )(patches, wmat, bias_full)


# ------------------------------- glue (JAX) --------------------------------
def _im2col3x3(act):
    """NHWC activation -> (B*H*W, 9*C) patches of the once-padded input.
    Column ordering is (ry, rx, ci), matching the packed weight layout."""
    b, h, w, c = act.shape
    ap = jnp.pad(act, ((0, 0), (1, 1), (1, 1), (0, 0)))
    cols = [ap[:, ry:ry + h, rx:rx + w, :] for ry in range(3) for rx in range(3)]
    p = jnp.stack(cols, axis=3)              # (B, H, W, 9, C)
    return p.reshape(b * h * w, 9 * c)


def init_generator_params(key, latent_dim, hidden_dim, output_dim):
    dims = [latent_dim, hidden_dim * 8, hidden_dim * 4, hidden_dim * 2,
            hidden_dim, output_dim]
    params = []
    for i in range(5):
        key, k1, k2, k3, k4 = jax.random.split(key, 5)
        cin, cout = dims[i], dims[i + 1]
        p = {
            "w": 0.02 * jax.random.normal(k1, (cin, cout, 4, 4), jnp.float32),
            "b": 0.01 * jax.random.normal(k2, (cout,), jnp.float32),
            "gamma": None,
            "beta": None,
        }
        if i < 4:  # layers followed by BatchNorm2d + ReLU
            p["gamma"] = 1.0 + 0.1 * jax.random.normal(k3, (cout,), jnp.float32)
            p["beta"] = 0.1 * jax.random.normal(k4, (cout,), jnp.float32)
        params.append(p)
    return params


def preprocess_params(params):
    """One-time weight packing (hoisted out of the forward path).

    Returns (cfg, packed): cfg is static python metadata, packed holds the
    bf16 weight matrices / f32 affine params passed into the jitted forward.
    """
    cfg, packed = [], []
    nlayers = len(params)
    for i, p in enumerate(params):
        w = np.asarray(p["w"], np.float32)        # (Cin, Cout, 4, 4) PyTorch
        cin, cout = w.shape[0], w.shape[1]
        final = (i == nlayers - 1)
        if i == 0:
            # 1x1 input: each of the 16 output pixels is a phase in N.
            P = 16
            cpad = _round_up(cout, 128 // P)
            npad = P * cpad
            wm = np.zeros((cin, P, cpad), np.float32)
            wm[:, :, :cout] = w.transpose(0, 2, 3, 1).reshape(cin, 16, cout)
            wmat = wm.reshape(cin, npad)
        else:
            # stride-2 sub-pixel decomposition on a 3x3 window (no zero MACs
            # from stride dilation; 4 output phases in the N dimension).
            P = 4
            cpad = _round_up(cout, 128 // P)
            npad = P * cpad
            wm = np.zeros((3, 3, cin, 2, 2, cpad), np.float32)
            for py, taps_y in enumerate(_TAPS):
                for ry, ky in enumerate(taps_y):
                    if ky is None:
                        continue
                    for px, taps_x in enumerate(_TAPS):
                        for rx, kx in enumerate(taps_x):
                            if kx is None:
                                continue
                            wm[ry, rx, :, py, px, :cout] = w[:, :, ky, kx]
            wmat = wm.reshape(9 * cin, npad)

        entry = {"wmat": jnp.asarray(wmat, dtype=jnp.bfloat16)}
        if final:
            bias = np.zeros((cpad,), np.float32)
            bias[:cout] = np.asarray(p["b"], np.float32)
            entry["bias_full"] = jnp.asarray(np.tile(bias, P).reshape(1, npad),
                                             dtype=jnp.float32)
        else:
            # NOTE: conv bias is mathematically cancelled by the BN mean
            # subtraction (train mode), so it is intentionally dropped here.
            entry["gamma"] = jnp.asarray(p["gamma"], jnp.float32)
            entry["beta"] = jnp.asarray(p["beta"], jnp.float32)
        packed.append(entry)
        cfg.append({"P": P, "cout": cout, "final": final})
    return tuple(cfg), packed


def generator_forward(cfg, packed, z):
    """z: (B, latent_dim) float32 -> (B, output_dim, 64, 64) float32 (NCHW)."""
    b = z.shape[0]
    act = z.astype(jnp.bfloat16)
    h = w_sp = 1
    for i, (c, p) in enumerate(zip(cfg, packed)):
        k_dim, npad = p["wmat"].shape
        cpad = npad // c["P"]
        if i == 0:
            patches = act.reshape(b, -1)                 # (B, latent)
            m = b
        else:
            bb, h, w_sp, _ = act.shape
            patches = _im2col3x3(act)                    # (B*H*W, 9*Cin) bf16
            m = bb * h * w_sp
        out_bytes = 4 if c["final"] else 2
        tm = _pick_tm(m, k_dim * 2, npad * out_bytes)

        if c["final"]:
            y = _mm_bias_tanh(patches, p["wmat"], p["bias_full"], tm)  # f32
        else:
            y, s, sq = _mm_stats(patches, p["wmat"], tm)
            cnt = float(m * c["P"])                      # == B*OH*OW
            s_c = s.reshape(c["P"], cpad)[:, :c["cout"]].sum(axis=0)
            q_c = sq.reshape(c["P"], cpad)[:, :c["cout"]].sum(axis=0)
            mean = s_c / cnt
            var = q_c / cnt - mean * mean                # biased (train mode)
            scale_c = p["gamma"] * jax.lax.rsqrt(var + EPS)
            shift_c = p["beta"] - mean * scale_c
            pad_amt = cpad - c["cout"]
            scale = jnp.tile(jnp.pad(scale_c, (0, pad_amt)),
                             c["P"]).reshape(1, npad)
            shift = jnp.tile(jnp.pad(shift_c, (0, pad_amt)),
                             c["P"]).reshape(1, npad)
            y = _norm_relu(y, scale, shift, tm)          # bf16

        # Phase interleave back to NHWC, slice off the lane padding.
        if i == 0:
            full = y.reshape(b, 4, 4, cpad)
        else:
            full = (y.reshape(b, h, w_sp, 2, 2, cpad)
                     .transpose(0, 1, 3, 2, 4, 5)
                     .reshape(b, 2 * h, 2 * w_sp, cpad))
        act = full[..., :c["cout"]]
    return act.transpose(0, 3, 1, 2)                     # NHWC -> NCHW


# ------------------------- pure-JAX reference check ------------------------
def _ref_conv_transpose(x, w, bias, stride, padding):
    k = w.shape[2]
    wconv = jnp.transpose(w[:, :, ::-1, ::-1], (1, 0, 2, 3))  # (Cout,Cin,k,k)
    y = jax.lax.conv_general_dilated(
        x, wconv, window_strides=(1, 1),
        padding=[(k - 1 - padding,) * 2] * 2,
        lhs_dilation=(stride, stride),
        dimension_numbers=("NCHW", "OIHW", "NCHW"))
    return y + bias[None, :, None, None]


def _ref_forward(params, z):
    x = z.reshape(z.shape[0], z.shape[1], 1, 1)
    strides = (1, 2, 2, 2, 2)
    pads = (0, 1, 1, 1, 1)
    for i, p in enumerate(params):
        x = _ref_conv_transpose(x, p["w"], p["b"], strides[i], pads[i])
        if i < 4:
            mean = x.mean(axis=(0, 2, 3), keepdims=True)
            var = x.var(axis=(0, 2, 3), keepdims=True)
            x = (x - mean) * jax.lax.rsqrt(var + EPS)
            x = x * p["gamma"][None, :, None, None] + p["beta"][None, :, None, None]
            x = jnp.maximum(x, 0.0)
        else:
            x = jnp.tanh(x)
    return x


# ---------------------------------- main ------------------------------------
if __name__ == "__main__":
    latent_dim, hidden_dim, output_dim, batch = 16, 8, 3, 2

    key = jax.random.PRNGKey(0)
    kp, kz = jax.random.split(key)
    params = init_generator_params(kp, latent_dim, hidden_dim, output_dim)
    z = jax.random.normal(kz, (batch, latent_dim), jnp.float32)

    cfg, packed = preprocess_params(params)
    fwd = jax.jit(functools.partial(generator_forward, cfg))

    out = jax.block_until_ready(fwd(packed, z))

    assert out.shape == (batch, output_dim, 64, 64), out.shape
    assert bool(jnp.all(jnp.isfinite(out)))

    ref = jax.block_until_ready(_ref_forward(params, z))
    max_err = float(jnp.max(jnp.abs(out - ref)))
    # bf16 matmul operands, bf16 inter-layer activations AND bf16 pre-norm
    # intermediates -> loose tolerance; genuine packing/tap bugs show as O(1).
    assert max_err < 7.5e-2, f"mismatch vs reference: {max_err}"

    print("KERNEL_OK")
</pallas_src>

<mosaic_0001>
module attributes {stable_mosaic.version = 11 : i64} {
  func.func @_mm_stats_kernel(%arg0: i32, %arg1: memref<2x16xbf16, #tpu.memory_space<vmem>>, %arg2: memref<16x1024xbf16, #tpu.memory_space<vmem>>, %arg3: memref<2x1024xbf16, #tpu.memory_space<vmem>>, %arg4: memref<1x1024xf32, #tpu.memory_space<vmem>>, %arg5: memref<1x1024xf32, #tpu.memory_space<vmem>>) attributes {dimension_semantics = [#tpu.dimension_semantics<arbitrary>], iteration_bounds = array<i64: 1>, scalar_prefetch = 0 : i64, scratch_operands = 0 : i64, tpu.core_type = #tpu.core_type<tc>, window_params = [{transform_indices = @transform_0, window_bounds = array<i64: 2, 16>}, {pipeline_mode = #tpu.pipeline_mode<synchronous>, transform_indices = @transform_1, window_bounds = array<i64: 16, 1024>}, {transform_indices = @transform_2, window_bounds = array<i64: 2, 1024>}, {pipeline_mode = #tpu.pipeline_mode<synchronous>, transform_indices = @transform_3, window_bounds = array<i64: 1, 1024>}, {pipeline_mode = #tpu.pipeline_mode<synchronous>, transform_indices = @transform_4, window_bounds = array<i64: 1, 1024>}]} {
    %c0_i32 = arith.constant 0 : i32
    %0 = arith.cmpi eq, %arg0, %c0_i32 : i32
    %1 = arith.extui %0 : i1 to i32
    %c0_i32_0 = arith.constant 0 : i32
    %2 = arith.cmpi ne, %1, %c0_i32_0 : i32
    scf.if %2 {
      %cst_16 = arith.constant 0.000000e+00 : f32
      %19 = vector.broadcast %cst_16 : f32 to vector<1x1024xf32>
      %c0_17 = arith.constant 0 : index
      %c0_18 = arith.constant 0 : index
      %20 = vector.load %arg4[%c0_17, %c0_18] : memref<1x1024xf32, #tpu.memory_space<vmem>>, vector<1x1024xf32>
      tpu.vector_store %arg4[%c0_17, %c0_18], %19 {strides = array<i32>} : memref<1x1024xf32, #tpu.memory_space<vmem>>, vector<1x1024xf32>,
      %cst_19 = arith.constant 0.000000e+00 : f32
      %21 = vector.broadcast %cst_19 : f32 to vector<1x1024xf32>
      %c0_20 = arith.constant 0 : index
      %c0_21 = arith.constant 0 : index
      %22 = vector.load %arg5[%c0_20, %c0_21] : memref<1x1024xf32, #tpu.memory_space<vmem>>, vector<1x1024xf32>
      tpu.vector_store %arg5[%c0_20, %c0_21], %21 {strides = array<i32>} : memref<1x1024xf32, #tpu.memory_space<vmem>>, vector<1x1024xf32>,
    } else {
    }
    %c0 = arith.constant 0 : index
    %c0_1 = arith.constant 0 : index
    %3 = vector.load %arg1[%c0, %c0_1] : memref<2x16xbf16, #tpu.memory_space<vmem>>, vector<2x16xbf16>
    %c0_2 = arith.constant 0 : index
    %c0_3 = arith.constant 0 : index
    %4 = vector.load %arg2[%c0_2, %c0_3] : memref<16x1024xbf16, #tpu.memory_space<vmem>>, vector<16x1024xbf16>
    %cst = arith.constant dense<0.000000e+00> : vector<2x1024xf32>
    %5 = tpu.matmul %3, %4, %cst {dimension_numbers = #tpu.dot_dimension_numbers<[1], [0], [0], [1], [0, 0, 1, 1], [], []>} : vector<2x16xbf16>, vector<16x1024xbf16>, vector<2x1024xf32> -> vector<2x1024xf32>
    %6 = arith.truncf %5 : vector<2x1024xf32> to vector<2x1024xbf16>
    %c0_4 = arith.constant 0 : index
    %c0_5 = arith.constant 0 : index
    %7 = vector.load %arg3[%c0_4, %c0_5] : memref<2x1024xbf16, #tpu.memory_space<vmem>>, vector<2x1024xbf16>
    tpu.vector_store %arg3[%c0_4, %c0_5], %6 {strides = array<i32>} : memref<2x1024xbf16, #tpu.memory_space<vmem>>, vector<2x1024xbf16>,
    %c0_6 = arith.constant 0 : index
    %c0_7 = arith.constant 0 : index
    %8 = vector.load %arg4[%c0_6, %c0_7] : memref<1x1024xf32, #tpu.memory_space<vmem>>, vector<1x1024xf32>
    %cst_8 = arith.constant dense<0.000000e+00> : vector<1024xf32>
    %9 = vector.multi_reduction <add>, %5, %cst_8 [0] : vector<2x1024xf32> to vector<1024xf32>
    %10 = vector.shape_cast %9 : vector<1024xf32> to vector<1x1024xf32>
    %11 = arith.addf %8, %10 : vector<1x1024xf32>
    %c0_9 = arith.constant 0 : index
    %c0_10 = arith.constant 0 : index
    %12 = vector.load %arg4[%c0_9, %c0_10] : memref<1x1024xf32, #tpu.memory_space<vmem>>, vector<1x1024xf32>
    tpu.vector_store %arg4[%c0_9, %c0_10], %11 {strides = array<i32>} : memref<1x1024xf32, #tpu.memory_space<vmem>>, vector<1x1024xf32>,
    %c0_11 = arith.constant 0 : index
    %c0_12 = arith.constant 0 : index
    %13 = vector.load %arg5[%c0_11, %c0_12] : memref<1x1024xf32, #tpu.memory_space<vmem>>, vector<1x1024xf32>
    %14 = arith.mulf %5, %5 : vector<2x1024xf32>
    %cst_13 = arith.constant dense<0.000000e+00> : vector<1024xf32>
    %15 = vector.multi_reduction <add>, %14, %cst_13 [0] : vector<2x1024xf32> to vector<1024xf32>
    %16 = vector.shape_cast %15 : vector<1024xf32> to vector<1x1024xf32>
    %17 = arith.addf %13, %16 : vector<1x1024xf32>
    %c0_14 = arith.constant 0 : index
    %c0_15 = arith.constant 0 : index
    %18 = vector.load %arg5[%c0_14, %c0_15] : memref<1x1024xf32, #tpu.memory_space<vmem>>, vector<1x1024xf32>
    tpu.vector_store %arg5[%c0_14, %c0_15], %17 {strides = array<i32>} : memref<1x1024xf32, #tpu.memory_space<vmem>>, vector<1x1024xf32>,
    return
  }
  func.func @transform_0(%arg0: i32) -> (i32, i32) {
    %c0_i32 = arith.constant 0 : i32
    %c0_i32_0 = arith.constant 0 : i32
    return %arg0, %c0_i32 : i32, i32
  }
  func.func @transform_1(%arg0: i32) -> (i32, i32) {
    %c0_i32 = arith.constant 0 : i32
    %c0_i32_0 = arith.constant 0 : i32
    %c0_i32_1 = arith.constant 0 : i32
    return %c0_i32, %c0_i32_0 : i32, i32
  }
  func.func @transform_2(%arg0: i32) -> (i32, i32) {
    %c0_i32 = arith.constant 0 : i32
    %c0_i32_0 = arith.constant 0 : i32
    return %arg0, %c0_i32 : i32, i32
  }
  func.func @transform_3(%arg0: i32) -> (i32, i32) {
    %c0_i32 = arith.constant 0 : i32
    %c0_i32_0 = arith.constant 0 : i32
    %c0_i32_1 = arith.constant 0 : i32
    return %c0_i32, %c0_i32_0 : i32, i32
  }
  func.func @transform_4(%arg0: i32) -> (i32, i32) {
    %c0_i32 = arith.constant 0 : i32
    %c0_i32_0 = arith.constant 0 : i32
    %c0_i32_1 = arith.constant 0 : i32
    return %c0_i32, %c0_i32_0 : i32, i32
  }
}

module attributes {stable_mosaic.version = 11 : i64} {
  func.func @_norm_relu_kernel(%arg0: i32, %arg1: memref<2x1024xbf16, #tpu.memory_space<vmem>>, %arg2: memref<1x1024xf32, #tpu.memory_space<vmem>>, %arg3: memref<1x1024xf32, #tpu.memory_space<vmem>>, %arg4: memref<2x1024xbf16, #tpu.memory_space<vmem>>) attributes {dimension_semantics = [#tpu.dimension_semantics<parallel>], iteration_bounds = array<i64: 1>, scalar_prefetch = 0 : i64, scratch_operands = 0 : i64, tpu.core_type = #tpu.core_type<tc>, window_params = [{transform_indices = @transform_0, window_bounds = array<i64: 2, 1024>}, {pipeline_mode = #tpu.pipeline_mode<synchronous>, transform_indices = @transform_1, window_bounds = array<i64: 1, 1024>}, {pipeline_mode = #tpu.pipeline_mode<synchronous>, transform_indices = @transform_2, window_bounds = array<i64: 1, 1024>}, {transform_indices = @transform_3, window_bounds = array<i64: 2, 1024>}]} {
    %c0 = arith.constant 0 : index
    %c0_0 = arith.constant 0 : index
    %0 = vector.load %arg1[%c0, %c0_0] : memref<2x1024xbf16, #tpu.memory_space<vmem>>, vector<2x1024xbf16>
    %1 = arith.extf %0 : vector<2x1024xbf16> to vector<2x1024xf32>
    %c0_1 = arith.constant 0 : index
    %c0_2 = arith.constant 0 : index
    %2 = vector.load %arg2[%c0_1, %c0_2] : memref<1x1024xf32, #tpu.memory_space<vmem>>, vector<1x1024xf32>
    %3 = vector.broadcast %2 : vector<1x1024xf32> to vector<2x1024xf32>
    %4 = arith.mulf %1, %3 : vector<2x1024xf32>
    %c0_3 = arith.constant 0 : index
    %c0_4 = arith.constant 0 : index
    %5 = vector.load %arg3[%c0_3, %c0_4] : memref<1x1024xf32, #tpu.memory_space<vmem>>, vector<1x1024xf32>
    %6 = vector.broadcast %5 : vector<1x1024xf32> to vector<2x1024xf32>
    %7 = arith.addf %4, %6 : vector<2x1024xf32>
    %cst = arith.constant 0.000000e+00 : f32
    %8 = vector.broadcast %cst : f32 to vector<2x1024xf32>
    %9 = arith.maximumf %7, %8 : vector<2x1024xf32>
    %10 = arith.truncf %9 : vector<2x1024xf32> to vector<2x1024xbf16>
    %c0_5 = arith.constant 0 : index
    %c0_6 = arith.constant 0 : index
    %11 = vector.load %arg4[%c0_5, %c0_6] : memref<2x1024xbf16, #tpu.memory_space<vmem>>, vector<2x1024xbf16>
    tpu.vector_store %arg4[%c0_5, %c0_6], %10 {strides = array<i32>} : memref<2x1024xbf16, #tpu.memory_space<vmem>>, vector<2x1024xbf16>,
    return
  }
  func.func @transform_0(%arg0: i32) -> (i32, i32) {
    %c0_i32 = arith.constant 0 : i32
    %c0_i32_0 = arith.constant 0 : i32
    return %arg0, %c0_i32 : i32, i32
  }
  func.func @transform_1(%arg0: i32) -> (i32, i32) {
    %c0_i32 = arith.constant 0 : i32
    %c0_i32_0 = arith.constant 0 : i32
    %c0_i32_1 = arith.constant 0 : i32
    return %c0_i32, %c0_i32_0 : i32, i32
  }
  func.func @transform_2(%arg0: i32) -> (i32, i32) {
    %c0_i32 = arith.constant 0 : i32
    %c0_i32_0 = arith.constant 0 : i32
    %c0_i32_1 = arith.constant 0 : i32
    return %c0_i32, %c0_i32_0 : i32, i32
  }
  func.func @transform_3(%arg0: i32) -> (i32, i32) {
    %c0_i32 = arith.constant 0 : i32
    %c0_i32_0 = arith.constant 0 : i32
    return %arg0, %c0_i32 : i32, i32
  }
}

module attributes {stable_mosaic.version = 11 : i64} {
  func.func @_mm_stats_kernel(%arg0: i32, %arg1: memref<32x576xbf16, #tpu.memory_space<vmem>>, %arg2: memref<576x128xbf16, #tpu.memory_space<vmem>>, %arg3: memref<32x128xbf16, #tpu.memory_space<vmem>>, %arg4: memref<1x128xf32, #tpu.memory_space<vmem>>, %arg5: memref<1x128xf32, #tpu.memory_space<vmem>>) attributes {dimension_semantics = [#tpu.dimension_semantics<arbitrary>], iteration_bounds = array<i64: 1>, scalar_prefetch = 0 : i64, scratch_operands = 0 : i64, tpu.core_type = #tpu.core_type<tc>, window_params = [{transform_indices = @transform_0, window_bounds = array<i64: 32, 576>}, {pipeline_mode = #tpu.pipeline_mode<synchronous>, transform_indices = @transform_1, window_bounds = array<i64: 576, 128>}, {transform_indices = @transform_2, window_bounds = array<i64: 32, 128>}, {pipeline_mode = #tpu.pipeline_mode<synchronous>, transform_indices = @transform_3, window_bounds = array<i64: 1, 128>}, {pipeline_mode = #tpu.pipeline_mode<synchronous>, transform_indices = @transform_4, window_bounds = array<i64: 1, 128>}]} {
    %c0_i32 = arith.constant 0 : i32
    %0 = arith.cmpi eq, %arg0, %c0_i32 : i32
    %1 = arith.extui %0 : i1 to i32
    %c0_i32_0 = arith.constant 0 : i32
    %2 = arith.cmpi ne, %1, %c0_i32_0 : i32
    scf.if %2 {
      %cst_16 = arith.constant 0.000000e+00 : f32
      %19 = vector.broadcast %cst_16 : f32 to vector<1x128xf32>
      %c0_17 = arith.constant 0 : index
      %c0_18 = arith.constant 0 : index
      %20 = vector.load %arg4[%c0_17, %c0_18] : memref<1x128xf32, #tpu.memory_space<vmem>>, vector<1x128xf32>
      tpu.vector_store %arg4[%c0_17, %c0_18], %19 {strides = array<i32>} : memref<1x128xf32, #tpu.memory_space<vmem>>, vector<1x128xf32>,
      %cst_19 = arith.constant 0.000000e+00 : f32
      %21 = vector.broadcast %cst_19 : f32 to vector<1x128xf32>
      %c0_20 = arith.constant 0 : index
      %c0_21 = arith.constant 0 : index
      %22 = vector.load %arg5[%c0_20, %c0_21] : memref<1x128xf32, #tpu.memory_space<vmem>>, vector<1x128xf32>
      tpu.vector_store %arg5[%c0_20, %c0_21], %21 {strides = array<i32>} : memref<1x128xf32, #tpu.memory_space<vmem>>, vector<1x128xf32>,
    } else {
    }
    %c0 = arith.constant 0 : index
    %c0_1 = arith.constant 0 : index
    %3 = vector.load %arg1[%c0, %c0_1] : memref<32x576xbf16, #tpu.memory_space<vmem>>, vector<32x576xbf16>
    %c0_2 = arith.constant 0 : index
    %c0_3 = arith.constant 0 : index
    %4 = vector.load %arg2[%c0_2, %c0_3] : memref<576x128xbf16, #tpu.memory_space<vmem>>, vector<576x128xbf16>
    %cst = arith.constant dense<0.000000e+00> : vector<32x128xf32>
    %5 = tpu.matmul %3, %4, %cst {dimension_numbers = #tpu.dot_dimension_numbers<[1], [0], [0], [1], [0, 0, 1, 1], [], []>} : vector<32x576xbf16>, vector<576x128xbf16>, vector<32x128xf32> -> vector<32x128xf32>
    %6 = arith.truncf %5 : vector<32x128xf32> to vector<32x128xbf16>
    %c0_4 = arith.constant 0 : index
    %c0_5 = arith.constant 0 : index
    %7 = vector.load %arg3[%c0_4, %c0_5] : memref<32x128xbf16, #tpu.memory_space<vmem>>, vector<32x128xbf16>
    tpu.vector_store %arg3[%c0_4, %c0_5], %6 {strides = array<i32>} : memref<32x128xbf16, #tpu.memory_space<vmem>>, vector<32x128xbf16>,
    %c0_6 = arith.constant 0 : index
    %c0_7 = arith.constant 0 : index
    %8 = vector.load %arg4[%c0_6, %c0_7] : memref<1x128xf32, #tpu.memory_space<vmem>>, vector<1x128xf32>
    %cst_8 = arith.constant dense<0.000000e+00> : vector<128xf32>
    %9 = vector.multi_reduction <add>, %5, %cst_8 [0] : vector<32x128xf32> to vector<128xf32>
    %10 = vector.shape_cast %9 : vector<128xf32> to vector<1x128xf32>
    %11 = arith.addf %8, %10 : vector<1x128xf32>
    %c0_9 = arith.constant 0 : index
    %c0_10 = arith.constant 0 : index
    %12 = vector.load %arg4[%c0_9, %c0_10] : memref<1x128xf32, #tpu.memory_space<vmem>>, vector<1x128xf32>
    tpu.vector_store %arg4[%c0_9, %c0_10], %11 {strides = array<i32>} : memref<1x128xf32, #tpu.memory_space<vmem>>, vector<1x128xf32>,
    %c0_11 = arith.constant 0 : index
    %c0_12 = arith.constant 0 : index
    %13 = vector.load %arg5[%c0_11, %c0_12] : memref<1x128xf32, #tpu.memory_space<vmem>>, vector<1x128xf32>
    %14 = arith.mulf %5, %5 : vector<32x128xf32>
    %cst_13 = arith.constant dense<0.000000e+00> : vector<128xf32>
    %15 = vector.multi_reduction <add>, %14, %cst_13 [0] : vector<32x128xf32> to vector<128xf32>
    %16 = vector.shape_cast %15 : vector<128xf32> to vector<1x128xf32>
    %17 = arith.addf %13, %16 : vector<1x128xf32>
    %c0_14 = arith.constant 0 : index
    %c0_15 = arith.constant 0 : index
    %18 = vector.load %arg5[%c0_14, %c0_15] : memref<1x128xf32, #tpu.memory_space<vmem>>, vector<1x128xf32>
    tpu.vector_store %arg5[%c0_14, %c0_15], %17 {strides = array<i32>} : memref<1x128xf32, #tpu.memory_space<vmem>>, vector<1x128xf32>,
    return
  }
  func.func @transform_0(%arg0: i32) -> (i32, i32) {
    %c0_i32 = arith.constant 0 : i32
    %c0_i32_0 = arith.constant 0 : i32
    return %arg0, %c0_i32 : i32, i32
  }
  func.func @transform_1(%arg0: i32) -> (i32, i32) {
    %c0_i32 = arith.constant 0 : i32
    %c0_i32_0 = arith.constant 0 : i32
    %c0_i32_1 = arith.constant 0 : i32
    return %c0_i32, %c0_i32_0 : i32, i32
  }
  func.func @transform_2(%arg0: i32) -> (i32, i32) {
    %c0_i32 = arith.constant 0 : i32
    %c0_i32_0 = arith.constant 0 : i32
    return %arg0, %c0_i32 : i32, i32
  }
  func.func @transform_3(%arg0: i32) -> (i32, i32) {
    %c0_i32 = arith.constant 0 : i32
    %c0_i32_0 = arith.constant 0 : i32
    %c0_i32_1 = arith.constant 0 : i32
    return %c0_i32, %c0_i32_0 : i32, i32
  }
  func.func @transform_4(%arg0: i32) -> (i32, i32) {
    %c0_i32 = arith.constant 0 : i32
    %c0_i32_0 = arith.constant 0 : i32
    %c0_i32_1 = arith.constant 0 : i32
    return %c0_i32, %c0_i32_0 : i32, i32
  }
}

module attributes {stable_mosaic.version = 11 : i64} {
  func.func @_norm_relu_kernel(%arg0: i32, %arg1: memref<32x128xbf16, #tpu.memory_space<vmem>>, %arg2: memref<1x128xf32, #tpu.memory_space<vmem>>, %arg3: memref<1x128xf32, #tpu.memory_space<vmem>>, %arg4: memref<32x128xbf16, #tpu.memory_space<vmem>>) attributes {dimension_semantics = [#tpu.dimension_semantics<parallel>], iteration_bounds = array<i64: 1>, scalar_prefetch = 0 : i64, scratch_operands = 0 : i64, tpu.core_type = #tpu.core_type<tc>, window_params = [{transform_indices = @transform_0, window_bounds = array<i64: 32, 128>}, {pipeline_mode = #tpu.pipeline_mode<synchronous>, transform_indices = @transform_1, window_bounds = array<i64: 1, 128>}, {pipeline_mode = #tpu.pipeline_mode<synchronous>, transform_indices = @transform_2, window_bounds = array<i64: 1, 128>}, {transform_indices = @transform_3, window_bounds = array<i64: 32, 128>}]} {
    %c0 = arith.constant 0 : index
    %c0_0 = arith.constant 0 : index
    %0 = vector.load %arg1[%c0, %c0_0] : memref<32x128xbf16, #tpu.memory_space<vmem>>, vector<32x128xbf16>
    %1 = arith.extf %0 : vector<32x128xbf16> to vector<32x128xf32>
    %c0_1 = arith.constant 0 : index
    %c0_2 = arith.constant 0 : index
    %2 = vector.load %arg2[%c0_1, %c0_2] : memref<1x128xf32, #tpu.memory_space<vmem>>, vector<1x128xf32>
    %3 = vector.broadcast %2 : vector<1x128xf32> to vector<32x128xf32>
    %4 = arith.mulf %1, %3 : vector<32x128xf32>
    %c0_3 = arith.constant 0 : index
    %c0_4 = arith.constant 0 : index
    %5 = vector.load %arg3[%c0_3, %c0_4] : memref<1x128xf32, #tpu.memory_space<vmem>>, vector<1x128xf32>
    %6 = vector.broadcast %5 : vector<1x128xf32> to vector<32x128xf32>
    %7 = arith.addf %4, %6 : vector<32x128xf32>
    %cst = arith.constant 0.000000e+00 : f32
    %8 = vector.broadcast %cst : f32 to vector<32x128xf32>
    %9 = arith.maximumf %7, %8 : vector<32x128xf32>
    %10 = arith.truncf %9 : vector<32x128xf32> to vector<32x128xbf16>
    %c0_5 = arith.constant 0 : index
    %c0_6 = arith.constant 0 : index
    %11 = vector.load %arg4[%c0_5, %c0_6] : memref<32x128xbf16, #tpu.memory_space<vmem>>, vector<32x128xbf16>
    tpu.vector_store %arg4[%c0_5, %c0_6], %10 {strides = array<i32>} : memref<32x128xbf16, #tpu.memory_space<vmem>>, vector<32x128xbf16>,
    return
  }
  func.func @transform_0(%arg0: i32) -> (i32, i32) {
    %c0_i32 = arith.constant 0 : i32
    %c0_i32_0 = arith.constant 0 : i32
    return %arg0, %c0_i32 : i32, i32
  }
  func.func @transform_1(%arg0: i32) -> (i32, i32) {
    %c0_i32 = arith.constant 0 : i32
    %c0_i32_0 = arith.constant 0 : i32
    %c0_i32_1 = arith.constant 0 : i32
    return %c0_i32, %c0_i32_0 : i32, i32
  }
  func.func @transform_2(%arg0: i32) -> (i32, i32) {
    %c0_i32 = arith.constant 0 : i32
    %c0_i32_0 = arith.constant 0 : i32
    %c0_i32_1 = arith.constant 0 : i32
    return %c0_i32, %c0_i32_0 : i32, i32
  }
  func.func @transform_3(%arg0: i32) -> (i32, i32) {
    %c0_i32 = arith.constant 0 : i32
    %c0_i32_0 = arith.constant 0 : i32
    return %arg0, %c0_i32 : i32, i32
  }
}

module attributes {stable_mosaic.version = 11 : i64} {
  func.func @_mm_stats_kernel(%arg0: i32, %arg1: memref<128x288xbf16, #tpu.memory_space<vmem>>, %arg2: memref<288x128xbf16, #tpu.memory_space<vmem>>, %arg3: memref<128x128xbf16, #tpu.memory_space<vmem>>, %arg4: memref<1x128xf32, #tpu.memory_space<vmem>>, %arg5: memref<1x128xf32, #tpu.memory_space<vmem>>) attributes {dimension_semantics = [#tpu.dimension_semantics<arbitrary>], iteration_bounds = array<i64: 1>, scalar_prefetch = 0 : i64, scratch_operands = 0 : i64, tpu.core_type = #tpu.core_type<tc>, window_params = [{transform_indices = @transform_0, window_bounds = array<i64: 128, 288>}, {pipeline_mode = #tpu.pipeline_mode<synchronous>, transform_indices = @transform_1, window_bounds = array<i64: 288, 128>}, {transform_indices = @transform_2, window_bounds = array<i64: 128, 128>}, {pipeline_mode = #tpu.pipeline_mode<synchronous>, transform_indices = @transform_3, window_bounds = array<i64: 1, 128>}, {pipeline_mode = #tpu.pipeline_mode<synchronous>, transform_indices = @transform_4, window_bounds = array<i64: 1, 128>}]} {
    %c0_i32 = arith.constant 0 : i32
    %0 = arith.cmpi eq, %arg0, %c0_i32 : i32
    %1 = arith.extui %0 : i1 to i32
    %c0_i32_0 = arith.constant 0 : i32
    %2 = arith.cmpi ne, %1, %c0_i32_0 : i32
    scf.if %2 {
      %cst_16 = arith.constant 0.000000e+00 : f32
      %19 = vector.broadcast %cst_16 : f32 to vector<1x128xf32>
      %c0_17 = arith.constant 0 : index
      %c0_18 = arith.constant 0 : index
      %20 = vector.load %arg4[%c0_17, %c0_18] : memref<1x128xf32, #tpu.memory_space<vmem>>, vector<1x128xf32>
      tpu.vector_store %arg4[%c0_17, %c0_18], %19 {strides = array<i32>} : memref<1x128xf32, #tpu.memory_space<vmem>>, vector<1x128xf32>,
      %cst_19 = arith.constant 0.000000e+00 : f32
      %21 = vector.broadcast %cst_19 : f32 to vector<1x128xf32>
      %c0_20 = arith.constant 0 : index
      %c0_21 = arith.constant 0 : index
      %22 = vector.load %arg5[%c0_20, %c0_21] : memref<1x128xf32, #tpu.memory_space<vmem>>, vector<1x128xf32>
      tpu.vector_store %arg5[%c0_20, %c0_21], %21 {strides = array<i32>} : memref<1x128xf32, #tpu.memory_space<vmem>>, vector<1x128xf32>,
    } else {
    }
    %c0 = arith.constant 0 : index
    %c0_1 = arith.constant 0 : index
    %3 = vector.load %arg1[%c0, %c0_1] : memref<128x288xbf16, #tpu.memory_space<vmem>>, vector<128x288xbf16>
    %c0_2 = arith.constant 0 : index
    %c0_3 = arith.constant 0 : index
    %4 = vector.load %arg2[%c0_2, %c0_3] : memref<288x128xbf16, #tpu.memory_space<vmem>>, vector<288x128xbf16>
    %cst = arith.constant dense<0.000000e+00> : vector<128x128xf32>
    %5 = tpu.matmul %3, %4, %cst {dimension_numbers = #tpu.dot_dimension_numbers<[1], [0], [0], [1], [0, 0, 1, 1], [], []>} : vector<128x288xbf16>, vector<288x128xbf16>, vector<128x128xf32> -> vector<128x128xf32>
    %6 = arith.truncf %5 : vector<128x128xf32> to vector<128x128xbf16>
    %c0_4 = arith.constant 0 : index
    %c0_5 = arith.constant 0 : index
    %7 = vector.load %arg3[%c0_4, %c0_5] : memref<128x128xbf16, #tpu.memory_space<vmem>>, vector<128x128xbf16>
    tpu.vector_store %arg3[%c0_4, %c0_5], %6 {strides = array<i32>} : memref<128x128xbf16, #tpu.memory_space<vmem>>, vector<128x128xbf16>,
    %c0_6 = arith.constant 0 : index
    %c0_7 = arith.constant 0 : index
    %8 = vector.load %arg4[%c0_6, %c0_7] : memref<1x128xf32, #tpu.memory_space<vmem>>, vector<1x128xf32>
    %cst_8 = arith.constant dense<0.000000e+00> : vector<128xf32>
    %9 = vector.multi_reduction <add>, %5, %cst_8 [0] : vector<128x128xf32> to vector<128xf32>
    %10 = vector.shape_cast %9 : vector<128xf32> to vector<1x128xf32>
    %11 = arith.addf %8, %10 : vector<1x128xf32>
    %c0_9 = arith.constant 0 : index
    %c0_10 = arith.constant 0 : index
    %12 = vector.load %arg4[%c0_9, %c0_10] : memref<1x128xf32, #tpu.memory_space<vmem>>, vector<1x128xf32>
    tpu.vector_store %arg4[%c0_9, %c0_10], %11 {strides = array<i32>} : memref<1x128xf32, #tpu.memory_space<vmem>>, vector<1x128xf32>,
    %c0_11 = arith.constant 0 : index
    %c0_12 = arith.constant 0 : index
    %13 = vector.load %arg5[%c0_11, %c0_12] : memref<1x128xf32, #tpu.memory_space<vmem>>, vector<1x128xf32>
    %14 = arith.mulf %5, %5 : vector<128x128xf32>
    %cst_13 = arith.constant dense<0.000000e+00> : vector<128xf32>
    %15 = vector.multi_reduction <add>, %14, %cst_13 [0] : vector<128x128xf32> to vector<128xf32>
    %16 = vector.shape_cast %15 : vector<128xf32> to vector<1x128xf32>
    %17 = arith.addf %13, %16 : vector<1x128xf32>
    %c0_14 = arith.constant 0 : index
    %c0_15 = arith.constant 0 : index
    %18 = vector.load %arg5[%c0_14, %c0_15] : memref<1x128xf32, #tpu.memory_space<vmem>>, vector<1x128xf32>
    tpu.vector_store %arg5[%c0_14, %c0_15], %17 {strides = array<i32>} : memref<1x128xf32, #tpu.memory_space<vmem>>, vector<1x128xf32>,
    return
  }
  func.func @transform_0(%arg0: i32) -> (i32, i32) {
    %c0_i32 = arith.constant 0 : i32
    %c0_i32_0 = arith.constant 0 : i32
    return %arg0, %c0_i32 : i32, i32
  }
  func.func @transform_1(%arg0: i32) -> (i32, i32) {
    %c0_i32 = arith.constant 0 : i32
    %c0_i32_0 = arith.constant 0 : i32
    %c0_i32_1 = arith.constant 0 : i32
    return %c0_i32, %c0_i32_0 : i32, i32
  }
  func.func @transform_2(%arg0: i32) -> (i32, i32) {
    %c0_i32 = arith.constant 0 : i32
    %c0_i32_0 = arith.constant 0 : i32
    return %arg0, %c0_i32 : i32, i32
  }
  func.func @transform_3(%arg0: i32) -> (i32, i32) {
    %c0_i32 = arith.constant 0 : i32
    %c0_i32_0 = arith.constant 0 : i32
    %c0_i32_1 = arith.constant 0 : i32
    return %c0_i32, %c0_i32_0 : i32, i32
  }
  func.func @transform_4(%arg0: i32) -> (i32, i32) {
    %c0_i32 = arith.constant 0 : i32
    %c0_i32_0 = arith.constant 0 : i32
    %c0_i32_1 = arith.constant 0 : i32
    return %c0_i32, %c0_i32_0 : i32, i32
  }
}

module attributes {stable_mosaic.version = 11 : i64} {
  func.func @_norm_relu_kernel(%arg0: i32, %arg1: memref<128x128xbf16, #tpu.memory_space<vmem>>, %arg2: memref<1x128xf32, #tpu.memory_space<vmem>>, %arg3: memref<1x128xf32, #tpu.memory_space<vmem>>, %arg4: memref<128x128xbf16, #tpu.memory_space<vmem>>) attributes {dimension_semantics = [#tpu.dimension_semantics<parallel>], iteration_bounds = array<i64: 1>, scalar_prefetch = 0 : i64, scratch_operands = 0 : i64, tpu.core_type = #tpu.core_type<tc>, window_params = [{transform_indices = @transform_0, window_bounds = array<i64: 128, 128>}, {pipeline_mode = #tpu.pipeline_mode<synchronous>, transform_indices = @transform_1, window_bounds = array<i64: 1, 128>}, {pipeline_mode = #tpu.pipeline_mode<synchronous>, transform_indices = @transform_2, window_bounds = array<i64: 1, 128>}, {transform_indices = @transform_3, window_bounds = array<i64: 128, 128>}]} {
    %c0 = arith.constant 0 : index
    %c0_0 = arith.constant 0 : index
    %0 = vector.load %arg1[%c0, %c0_0] : memref<128x128xbf16, #tpu.memory_space<vmem>>, vector<128x128xbf16>
    %1 = arith.extf %0 : vector<128x128xbf16> to vector<128x128xf32>
    %c0_1 = arith.constant 0 : index
    %c0_2 = arith.constant 0 : index
    %2 = vector.load %arg2[%c0_1, %c0_2] : memref<1x128xf32, #tpu.memory_space<vmem>>, vector<1x128xf32>
    %3 = vector.broadcast %2 : vector<1x128xf32> to vector<128x128xf32>
    %4 = arith.mulf %1, %3 : vector<128x128xf32>
    %c0_3 = arith.constant 0 : index
    %c0_4 = arith.constant 0 : index
    %5 = vector.load %arg3[%c0_3, %c0_4] : memref<1x128xf32, #tpu.memory_space<vmem>>, vector<1x128xf32>
    %6 = vector.broadcast %5 : vector<1x128xf32> to vector<128x128xf32>
    %7 = arith.addf %4, %6 : vector<128x128xf32>
    %cst = arith.constant 0.000000e+00 : f32
    %8 = vector.broadcast %cst : f32 to vector<128x128xf32>
    %9 = arith.maximumf %7, %8 : vector<128x128xf32>
    %10 = arith.truncf %9 : vector<128x128xf32> to vector<128x128xbf16>
    %c0_5 = arith.constant 0 : index
    %c0_6 = arith.constant 0 : index
    %11 = vector.load %arg4[%c0_5, %c0_6] : memref<128x128xbf16, #tpu.memory_space<vmem>>, vector<128x128xbf16>
    tpu.vector_store %arg4[%c0_5, %c0_6], %10 {strides = array<i32>} : memref<128x128xbf16, #tpu.memory_space<vmem>>, vector<128x128xbf16>,
    return
  }
  func.func @transform_0(%arg0: i32) -> (i32, i32) {
    %c0_i32 = arith.constant 0 : i32
    %c0_i32_0 = arith.constant 0 : i32
    return %arg0, %c0_i32 : i32, i32
  }
  func.func @transform_1(%arg0: i32) -> (i32, i32) {
    %c0_i32 = arith.constant 0 : i32
    %c0_i32_0 = arith.constant 0 : i32
    %c0_i32_1 = arith.constant 0 : i32
    return %c0_i32, %c0_i32_0 : i32, i32
  }
  func.func @transform_2(%arg0: i32) -> (i32, i32) {
    %c0_i32 = arith.constant 0 : i32
    %c0_i32_0 = arith.constant 0 : i32
    %c0_i32_1 = arith.constant 0 : i32
    return %c0_i32, %c0_i32_0 : i32, i32
  }
  func.func @transform_3(%arg0: i32) -> (i32, i32) {
    %c0_i32 = arith.constant 0 : i32
    %c0_i32_0 = arith.constant 0 : i32
    return %arg0, %c0_i32 : i32, i32
  }
}

module attributes {stable_mosaic.version = 11 : i64} {
  func.func @_mm_stats_kernel(%arg0: i32, %arg1: memref<512x144xbf16, #tpu.memory_space<vmem>>, %arg2: memref<144x128xbf16, #tpu.memory_space<vmem>>, %arg3: memref<512x128xbf16, #tpu.memory_space<vmem>>, %arg4: memref<1x128xf32, #tpu.memory_space<vmem>>, %arg5: memref<1x128xf32, #tpu.memory_space<vmem>>) attributes {dimension_semantics = [#tpu.dimension_semantics<arbitrary>], iteration_bounds = array<i64: 1>, scalar_prefetch = 0 : i64, scratch_operands = 0 : i64, tpu.core_type = #tpu.core_type<tc>, window_params = [{transform_indices = @transform_0, window_bounds = array<i64: 512, 144>}, {pipeline_mode = #tpu.pipeline_mode<synchronous>, transform_indices = @transform_1, window_bounds = array<i64: 144, 128>}, {transform_indices = @transform_2, window_bounds = array<i64: 512, 128>}, {pipeline_mode = #tpu.pipeline_mode<synchronous>, transform_indices = @transform_3, window_bounds = array<i64: 1, 128>}, {pipeline_mode = #tpu.pipeline_mode<synchronous>, transform_indices = @transform_4, window_bounds = array<i64: 1, 128>}]} {
    %c0_i32 = arith.constant 0 : i32
    %0 = arith.cmpi eq, %arg0, %c0_i32 : i32
    %1 = arith.extui %0 : i1 to i32
    %c0_i32_0 = arith.constant 0 : i32
    %2 = arith.cmpi ne, %1, %c0_i32_0 : i32
    scf.if %2 {
      %cst_16 = arith.constant 0.000000e+00 : f32
      %19 = vector.broadcast %cst_16 : f32 to vector<1x128xf32>
      %c0_17 = arith.constant 0 : index
      %c0_18 = arith.constant 0 : index
      %20 = vector.load %arg4[%c0_17, %c0_18] : memref<1x128xf32, #tpu.memory_space<vmem>>, vector<1x128xf32>
      tpu.vector_store %arg4[%c0_17, %c0_18], %19 {strides = array<i32>} : memref<1x128xf32, #tpu.memory_space<vmem>>, vector<1x128xf32>,
      %cst_19 = arith.constant 0.000000e+00 : f32
      %21 = vector.broadcast %cst_19 : f32 to vector<1x128xf32>
      %c0_20 = arith.constant 0 : index
      %c0_21 = arith.constant 0 : index
      %22 = vector.load %arg5[%c0_20, %c0_21] : memref<1x128xf32, #tpu.memory_space<vmem>>, vector<1x128xf32>
      tpu.vector_store %arg5[%c0_20, %c0_21], %21 {strides = array<i32>} : memref<1x128xf32, #tpu.memory_space<vmem>>, vector<1x128xf32>,
    } else {
    }
    %c0 = arith.constant 0 : index
    %c0_1 = arith.constant 0 : index
    %3 = vector.load %arg1[%c0, %c0_1] : memref<512x144xbf16, #tpu.memory_space<vmem>>, vector<512x144xbf16>
    %c0_2 = arith.constant 0 : index
    %c0_3 = arith.constant 0 : index
    %4 = vector.load %arg2[%c0_2, %c0_3] : memref<144x128xbf16, #tpu.memory_space<vmem>>, vector<144x128xbf16>
    %cst = arith.constant dense<0.000000e+00> : vector<512x128xf32>
    %5 = tpu.matmul %3, %4, %cst {dimension_numbers = #tpu.dot_dimension_numbers<[1], [0], [0], [1], [0, 0, 1, 1], [], []>} : vector<512x144xbf16>, vector<144x128xbf16>, vector<512x128xf32> -> vector<512x128xf32>
    %6 = arith.truncf %5 : vector<512x128xf32> to vector<512x128xbf16>
    %c0_4 = arith.constant 0 : index
    %c0_5 = arith.constant 0 : index
    %7 = vector.load %arg3[%c0_4, %c0_5] : memref<512x128xbf16, #tpu.memory_space<vmem>>, vector<512x128xbf16>
    tpu.vector_store %arg3[%c0_4, %c0_5], %6 {strides = array<i32>} : memref<512x128xbf16, #tpu.memory_space<vmem>>, vector<512x128xbf16>,
    %c0_6 = arith.constant 0 : index
    %c0_7 = arith.constant 0 : index
    %8 = vector.load %arg4[%c0_6, %c0_7] : memref<1x128xf32, #tpu.memory_space<vmem>>, vector<1x128xf32>
    %cst_8 = arith.constant dense<0.000000e+00> : vector<128xf32>
    %9 = vector.multi_reduction <add>, %5, %cst_8 [0] : vector<512x128xf32> to vector<128xf32>
    %10 = vector.shape_cast %9 : vector<128xf32> to vector<1x128xf32>
    %11 = arith.addf %8, %10 : vector<1x128xf32>
    %c0_9 = arith.constant 0 : index
    %c0_10 = arith.constant 0 : index
    %12 = vector.load %arg4[%c0_9, %c0_10] : memref<1x128xf32, #tpu.memory_space<vmem>>, vector<1x128xf32>
    tpu.vector_store %arg4[%c0_9, %c0_10], %11 {strides = array<i32>} : memref<1x128xf32, #tpu.memory_space<vmem>>, vector<1x128xf32>,
    %c0_11 = arith.constant 0 : index
    %c0_12 = arith.constant 0 : index
    %13 = vector.load %arg5[%c0_11, %c0_12] : memref<1x128xf32, #tpu.memory_space<vmem>>, vector<1x128xf32>
    %14 = arith.mulf %5, %5 : vector<512x128xf32>
    %cst_13 = arith.constant dense<0.000000e+00> : vector<128xf32>
    %15 = vector.multi_reduction <add>, %14, %cst_13 [0] : vector<512x128xf32> to vector<128xf32>
    %16 = vector.shape_cast %15 : vector<128xf32> to vector<1x128xf32>
    %17 = arith.addf %13, %16 : vector<1x128xf32>
    %c0_14 = arith.constant 0 : index
    %c0_15 = arith.constant 0 : index
    %18 = vector.load %arg5[%c0_14, %c0_15] : memref<1x128xf32, #tpu.memory_space<vmem>>, vector<1x128xf32>
    tpu.vector_store %arg5[%c0_14, %c0_15], %17 {strides = array<i32>} : memref<1x128xf32, #tpu.memory_space<vmem>>, vector<1x128xf32>,
    return
  }
  func.func @transform_0(%arg0: i32) -> (i32, i32) {
    %c0_i32 = arith.constant 0 : i32
    %c0_i32_0 = arith.constant 0 : i32
    return %arg0, %c0_i32 : i32, i32
  }
  func.func @transform_1(%arg0: i32) -> (i32, i32) {
    %c0_i32 = arith.constant 0 : i32
    %c0_i32_0 = arith.constant 0 : i32
    %c0_i32_1 = arith.constant 0 : i32
    return %c0_i32, %c0_i32_0 : i32, i32
  }
  func.func @transform_2(%arg0: i32) -> (i32, i32) {
    %c0_i32 = arith.constant 0 : i32
    %c0_i32_0 = arith.constant 0 : i32
    return %arg0, %c0_i32 : i32, i32
  }
  func.func @transform_3(%arg0: i32) -> (i32, i32) {
    %c0_i32 = arith.constant 0 : i32
    %c0_i32_0 = arith.constant 0 : i32
    %c0_i32_1 = arith.constant 0 : i32
    return %c0_i32, %c0_i32_0 : i32, i32
  }
  func.func @transform_4(%arg0: i32) -> (i32, i32) {
    %c0_i32 = arith.constant 0 : i32
    %c0_i32_0 = arith.constant 0 : i32
    %c0_i32_1 = arith.constant 0 : i32
    return %c0_i32, %c0_i32_0 : i32, i32
  }
}

module attributes {stable_mosaic.version = 11 : i64} {
  func.func @_norm_relu_kernel(%arg0: i32, %arg1: memref<512x128xbf16, #tpu.memory_space<vmem>>, %arg2: memref<1x128xf32, #tpu.memory_space<vmem>>, %arg3: memref<1x128xf32, #tpu.memory_space<vmem>>, %arg4: memref<512x128xbf16, #tpu.memory_space<vmem>>) attributes {dimension_semantics = [#tpu.dimension_semantics<parallel>], iteration_bounds = array<i64: 1>, scalar_prefetch = 0 : i64, scratch_operands = 0 : i64, tpu.core_type = #tpu.core_type<tc>, window_params = [{transform_indices = @transform_0, window_bounds = array<i64: 512, 128>}, {pipeline_mode = #tpu.pipeline_mode<synchronous>, transform_indices = @transform_1, window_bounds = array<i64: 1, 128>}, {pipeline_mode = #tpu.pipeline_mode<synchronous>, transform_indices = @transform_2, window_bounds = array<i64: 1, 128>}, {transform_indices = @transform_3, window_bounds = array<i64: 512, 128>}]} {
    %c0 = arith.constant 0 : index
    %c0_0 = arith.constant 0 : index
    %0 = vector.load %arg1[%c0, %c0_0] : memref<512x128xbf16, #tpu.memory_space<vmem>>, vector<512x128xbf16>
    %1 = arith.extf %0 : vector<512x128xbf16> to vector<512x128xf32>
    %c0_1 = arith.constant 0 : index
    %c0_2 = arith.constant 0 : index
    %2 = vector.load %arg2[%c0_1, %c0_2] : memref<1x128xf32, #tpu.memory_space<vmem>>, vector<1x128xf32>
    %3 = vector.broadcast %2 : vector<1x128xf32> to vector<512x128xf32>
    %4 = arith.mulf %1, %3 : vector<512x128xf32>
    %c0_3 = arith.constant 0 : index
    %c0_4 = arith.constant 0 : index
    %5 = vector.load %arg3[%c0_3, %c0_4] : memref<1x128xf32, #tpu.memory_space<vmem>>, vector<1x128xf32>
    %6 = vector.broadcast %5 : vector<1x128xf32> to vector<512x128xf32>
    %7 = arith.addf %4, %6 : vector<512x128xf32>
    %cst = arith.constant 0.000000e+00 : f32
    %8 = vector.broadcast %cst : f32 to vector<512x128xf32>
    %9 = arith.maximumf %7, %8 : vector<512x128xf32>
    %10 = arith.truncf %9 : vector<512x128xf32> to vector<512x128xbf16>
    %c0_5 = arith.constant 0 : index
    %c0_6 = arith.constant 0 : index
    %11 = vector.load %arg4[%c0_5, %c0_6] : memref<512x128xbf16, #tpu.memory_space<vmem>>, vector<512x128xbf16>
    tpu.vector_store %arg4[%c0_5, %c0_6], %10 {strides = array<i32>} : memref<512x128xbf16, #tpu.memory_space<vmem>>, vector<512x128xbf16>,
    return
  }
  func.func @transform_0(%arg0: i32) -> (i32, i32) {
    %c0_i32 = arith.constant 0 : i32
    %c0_i32_0 = arith.constant 0 : i32
    return %arg0, %c0_i32 : i32, i32
  }
  func.func @transform_1(%arg0: i32) -> (i32, i32) {
    %c0_i32 = arith.constant 0 : i32
    %c0_i32_0 = arith.constant 0 : i32
    %c0_i32_1 = arith.constant 0 : i32
    return %c0_i32, %c0_i32_0 : i32, i32
  }
  func.func @transform_2(%arg0: i32) -> (i32, i32) {
    %c0_i32 = arith.constant 0 : i32
    %c0_i32_0 = arith.constant 0 : i32
    %c0_i32_1 = arith.constant 0 : i32
    return %c0_i32, %c0_i32_0 : i32, i32
  }
  func.func @transform_3(%arg0: i32) -> (i32, i32) {
    %c0_i32 = arith.constant 0 : i32
    %c0_i32_0 = arith.constant 0 : i32
    return %arg0, %c0_i32 : i32, i32
  }
}

module attributes {stable_mosaic.version = 11 : i64} {
  func.func @_mm_bias_tanh_kernel(%arg0: i32, %arg1: memref<2048x72xbf16, #tpu.memory_space<vmem>>, %arg2: memref<72x128xbf16, #tpu.memory_space<vmem>>, %arg3: memref<1x128xf32, #tpu.memory_space<vmem>>, %arg4: memref<2048x128xf32, #tpu.memory_space<vmem>>) attributes {dimension_semantics = [#tpu.dimension_semantics<parallel>], iteration_bounds = array<i64: 1>, scalar_prefetch = 0 : i64, scratch_operands = 0 : i64, tpu.core_type = #tpu.core_type<tc>, window_params = [{transform_indices = @transform_0, window_bounds = array<i64: 2048, 72>}, {pipeline_mode = #tpu.pipeline_mode<synchronous>, transform_indices = @transform_1, window_bounds = array<i64: 72, 128>}, {pipeline_mode = #tpu.pipeline_mode<synchronous>, transform_indices = @transform_2, window_bounds = array<i64: 1, 128>}, {transform_indices = @transform_3, window_bounds = array<i64: 2048, 128>}]} {
    %c0 = arith.constant 0 : index
    %c0_0 = arith.constant 0 : index
    %0 = vector.load %arg1[%c0, %c0_0] : memref<2048x72xbf16, #tpu.memory_space<vmem>>, vector<2048x72xbf16>
    %c0_1 = arith.constant 0 : index
    %c0_2 = arith.constant 0 : index
    %1 = vector.load %arg2[%c0_1, %c0_2] : memref<72x128xbf16, #tpu.memory_space<vmem>>, vector<72x128xbf16>
    %cst = arith.constant dense<0.000000e+00> : vector<2048x128xf32>
    %2 = tpu.matmul %0, %1, %cst {dimension_numbers = #tpu.dot_dimension_numbers<[1], [0], [0], [1], [0, 0, 1, 1], [], []>} : vector<2048x72xbf16>, vector<72x128xbf16>, vector<2048x128xf32> -> vector<2048x128xf32>
    %c0_3 = arith.constant 0 : index
    %c0_4 = arith.constant 0 : index
    %3 = vector.load %arg3[%c0_3, %c0_4] : memref<1x128xf32, #tpu.memory_space<vmem>>, vector<1x128xf32>
    %4 = vector.broadcast %3 : vector<1x128xf32> to vector<2048x128xf32>
    %5 = arith.addf %2, %4 : vector<2048x128xf32>
    %6 = math.tanh %5 : vector<2048x128xf32>
    %c0_5 = arith.constant 0 : index
    %c0_6 = arith.constant 0 : index
    %7 = vector.load %arg4[%c0_5, %c0_6] : memref<2048x128xf32, #tpu.memory_space<vmem>>, vector<2048x128xf32>
    tpu.vector_store %arg4[%c0_5, %c0_6], %6 {strides = array<i32>} : memref<2048x128xf32, #tpu.memory_space<vmem>>, vector<2048x128xf32>,
    return
  }
  func.func @transform_0(%arg0: i32) -> (i32, i32) {
    %c0_i32 = arith.constant 0 : i32
    %c0_i32_0 = arith.constant 0 : i32
    return %arg0, %c0_i32 : i32, i32
  }
  func.func @transform_1(%arg0: i32) -> (i32, i32) {
    %c0_i32 = arith.constant 0 : i32
    %c0_i32_0 = arith.constant 0 : i32
    %c0_i32_1 = arith.constant 0 : i32
    return %c0_i32, %c0_i32_0 : i32, i32
  }
  func.func @transform_2(%arg0: i32) -> (i32, i32) {
    %c0_i32 = arith.constant 0 : i32
    %c0_i32_0 = arith.constant 0 : i32
    %c0_i32_1 = arith.constant 0 : i32
    return %c0_i32, %c0_i32_0 : i32, i32
  }
  func.func @transform_3(%arg0: i32) -> (i32, i32) {
    %c0_i32 = arith.constant 0 : i32
    %c0_i32_0 = arith.constant 0 : i32
    return %arg0, %c0_i32 : i32, i32
  }
}

</mosaic_0001>

<bundles_post_ra>
// kernel: tile.48
= control target key start
LH: loop header
LB: loop body
LE: loop exit
PB: predicated region body
PF: predicated region fallthrough
CT: control target
= control target key end

     0   :  { %s28_s0 = inlined_call_operand.vmem [shape: f32[64], index: 0, kind: input, shape index: {}]   ;;  %s29_s1 = inlined_call_operand.vmem [shape: f32[16,64], index: 1, kind: output, shape index: {}]  }
   0x1   :  { %v4_v0 = vld [vmem:[%s28_s0] ss:$0 sm:$0xff] }
   0x2   :  { %5 = vst [vmem:[%s29_s1] sm:$0xff] %v4_v0  ;;  %8 = vst [vmem:[%s29_s1 + $0x8] sm:$0xff] %v4_v0 }

// kernel: tile.49
= control target key start
LH: loop header
LB: loop body
LE: loop exit
PB: predicated region body
PF: predicated region fallthrough
CT: control target
= control target key end

     0   :  { %vm3_vm0 = vcmask 523264   ;;  %vm10_vm1 = vcmask 1048064   ;;  %s116_s0 = inlined_call_operand.vmem [shape: f32[16,64], index: 0, kind: input, shape index: {}]   ;;  %s117_s1 = inlined_call_operand.vmem [shape: f32[1,1024], index: 1, kind: output, shape index: {}]  }
   0x1   :  { %v66_v0 = vld [vmem:[%s116_s0 + $0x1] ss:$2 sm:$0xff]   ;;  %v2_v1 = vld [vmem:[%s116_s0] ss:$2 sm:$0xff]   ;;  %s75_s0 = smov 64  }
   0x2   :  { %8 = vrot.lane.b32.xlu0 %v66_v0, %s75_s0  ;;  %4 = vst.msk [vmem:[#allocation0] ss:$8 sm:$0xf] %vm3_vm0, %v2_v1   ;;  %5 = vst.msk [vmem:[#allocation0] ss:$8 sm:$0xf0] %vm3_vm0, %v2_v1  }
  0x74   :  { %v9_v2 = vpop.permute.xlu0 %8  }
  0x75   :  { %11 = vst.msk [vmem:[#allocation0] ss:$8 sm:$0xf] %vm10_vm1, %v9_v2   ;;  %12 = vst.msk [vmem:[#allocation0] ss:$8 sm:$0xf0] %vm10_vm1, %v9_v2  }
  0x7c   :  { %v16_v3 = vld [vmem:[#allocation0] sm:$0x1]  ;;  %v20_v4 = vld [vmem:[#allocation0 + $0x8] sm:$0x1]  ;;  %v25_v5 = vld [vmem:[#allocation0 + $0x10] sm:$0x1] }
  0x7d   :  { %18 = vst [vmem:[%s117_s1] sm:$0x1] %v16_v3  ;;  %67 = vst [vmem:[%s117_s1 + $0x1] sm:$0x1] %v20_v4  ;;  %v31_v6 = vld [vmem:[#allocation0 + $0x18] sm:$0x1] }
  0x7e   :  { %68 = vst [vmem:[%s117_s1 + $0x2] sm:$0x1] %v25_v5  ;;  %v37_v7 = vld [vmem:[#allocation0 + $0x20] sm:$0x1]  ;;  %v43_v8 = vld [vmem:[#allocation0 + $0x28] sm:$0x1] }
  0x7f   :  { %69 = vst [vmem:[%s117_s1 + $0x3] sm:$0x1] %v31_v6  ;;  %70 = vst [vmem:[%s117_s1 + $0x4] sm:$0x1] %v37_v7  ;;  %v49_v9 = vld [vmem:[#allocation0 + $0x30] sm:$0x1] }
  0x80   :  { %71 = vst [vmem:[%s117_s1 + $0x5] sm:$0x1] %v43_v8  ;;  %v55_v10 = vld [vmem:[#allocation0 + $0x38] sm:$0x1]  ;;  %72 = vst [vmem:[%s117_s1 + $0x6] sm:$0x1] %v49_v9 }
  0x81   :  { %73 = vst [vmem:[%s117_s1 + $0x7] sm:$0x1] %v55_v10 }

// kernel: generator_forward.9
= control target key start
LH: loop header
LB: loop body
LE: loop exit
PB: predicated region body
PF: predicated region fallthrough
CT: control target
= control target key end

     0   :  { %10 = vsyncpa [#allocation3], 0  ;;  %s621_s15 = smov [#allocation2]   ;;  %s750_s0 = inlined_call_operand.vmem [shape: bf16[2,16], index: 0, kind: input, shape index: {}]   ;;  %s751_s1 = inlined_call_operand.hbm [shape: bf16[16,1024], index: 1, kind: input, shape index: {}]   ;;  %s752_s2 = inlined_call_operand.vmem [shape: bf16[2,1024], index: 2, kind: output, shape index: {0}]   ;;  %s753_s3 = inlined_call_operand.vmem [shape: f32[1,1024], index: 3, kind: output, shape index: {1}]   ;;  %s754_s4 = inlined_call_operand.vmem [shape: f32[1,1024], index: 4, kind: output, shape index: {2}]  }
   0x1   :  { %s18_s16 = sshll.u32 %s621_s15, 4  ;;  %s597_s19 = scalar_lea.hbm %s751_s1, 1024  ;;  %s19_s16 = int_to_ptr.vmem [resolvable:$true] %s18_s16 }
   0x2   :  { %p598_p0 = scmp.ne.s32.totalorder %s751_s1, %s597_s19  ;;  %p601_p1 = scmp.lt.u32.totalorder %s597_s19, %s751_s1 }
   0x4   :  { %p603_p2 = pnand %p601_p1, %p598_p0 }
   0x6   :  { %606 = shalt.err (!%p603_p2)
}
   0x7   :  { %s607_s24 = scalar_lea.vmem %s19_s16, 1024  ;;  %p612_p4 = scmp.lt.s32.totalorder %s19_s16, %s19_s16 }
   0x8   :  { %p608_p3 = scmp.ne.s32.totalorder %s19_s16, %s607_s24  ;;  %p613_p5 = scmp.lt.s32.totalorder %s607_s24, %s607_s24 }
   0xa   :  { %p614_p6 = por %p613_p5, %p612_p4 }
   0xc   :  { %p615_p7 = pnand %p614_p6, %p608_p3 }
   0xe   :  { %618 = shalt.err (!%p615_p7)
}
   0xf   :  { %s622_s25 = smov 512   ;;  %s623_s26 = smov 32  }
  0x10   :  { %24 = dma.hbm_to_vmem [thread:$0]  %s751_s1, 1024, %s19_s16, [#allocation3], %s622_s25, %s622_s25, %s623_s26  }
  0x11   :  { %619 = dma.done.wait [#allocation3], 1024  }
  0x12   :  { %620 = vsyncadd [#allocation3], 4294966272  ;;  %v624_v0 = vmov 0   ;;  %v36_v1 = vld [vmem:[#allocation2] sm:$0xff]  ;;  %v37_v3 = vld [vmem:[#allocation2 + $0x8] sm:$0xff]  ;;  %vm84_vm0 = vcmask 130048   ;;  %v275_v20 = vlaneseq }
  0x13   :  { %120 = vmatprep.mubr.bf16.mxu0 %v624_v0  ;;  %161 = vmatprep.mubr.bf16.mxu1 %v624_v0  ;;  %v40_v2 = vld [vmem:[#allocation2 + $0x20] sm:$0xff]  ;;  %v41_v5 = vld [vmem:[#allocation2 + $0x28] sm:$0xff]  ;;  %v38_v7 = vld [vmem:[#allocation2 + $0x10] sm:$0xff]  ;;  %v625_v18 = vmov 1966171168   ;;  %vm320_vm1 = vcmask 1041408  }
  0x14   :  { %v576_v4 = vcombine.high %v36_v1, %v40_v2  ;;  %v575_v6 = vcombine.low %v36_v1, %v40_v2  ;;  %v578_v8 = vcombine.high %v37_v3, %v41_v5  ;;  %v577_v9 = vcombine.low %v37_v3, %v41_v5  ;;  %v42_v10 = vld [vmem:[#allocation2 + $0x30] sm:$0xff]  ;;  %v39_v11 = vld [vmem:[#allocation2 + $0x18] sm:$0xff]  ;;  %v35_v15 = vld [vmem:[%s750_s0] sm:$0x1] }
  0x15   :  { %v43_v12 = vld [vmem:[#allocation2 + $0x38] sm:$0xff]  ;;  %v580_v13 = vcombine.high %v38_v7, %v42_v10  ;;  %v579_v16 = vcombine.low %v38_v7, %v42_v10  ;;  %v273_v19 = vunpack.c.l.s4 %v625_v18  ;;  %v276_v22 = vshrl.u32 %v275_v20, 7 }
  0x16   :  { %88 = vmatprep.subr.bf16.mxu0 %v576_v4  ;;  %v582_v14 = vcombine.high %v39_v11, %v43_v12  ;;  %129 = vmatprep.subr.bf16.mxu1 %v578_v8  ;;  %v581_v17 = vcombine.low %v39_v11, %v43_v12 }
  0x17   :  { %89 = vmatpush1.bf16.msra.mxu0 %v575_v6  ;;  %130 = vmatpush1.bf16.msra.mxu1 %v577_v9  ;;  %v274_v21 = vunpack.c.0.s8 %v273_v19 }
  0x18   :  { %170 = vmatprep.subr.bf16.mxu0 %v580_v13  ;;  %211 = vmatprep.subr.bf16.mxu1 %v582_v14 }
  0x19   :  { %v666_v24 = vsub.s32 %v274_v21, %v276_v22 }
  0x1a   :  { %583 = vmatmul.mubr.msk.bf16.vlgmr.msra.gmra.mrb[0].mxu0 %vm84_vm0, %v35_v15  ;;  %584 = vmatmul.mubr.msk.bf16.vlgmr.msra.gmra.mrb[0].mxu1 %vm84_vm0, %v35_v15 }
  0x1b   :  { %171 = vmatpush1.bf16.msra.mxu0 %v579_v16  ;;  %212 = vmatpush1.bf16.msra.mxu1 %v581_v17 }
  0x1c   :  { %202 = vmatprep.mubr.bf16.mxu0 %v624_v0  ;;  %243 = vmatprep.mubr.bf16.mxu1 %v624_v0 }
  0x22   :  { %585 = vmatmul.mubr.msk.bf16.vlgmr.msra.gmra.mrb[4].mxu0 %vm84_vm0, %v35_v15  ;;  %586 = vmatmul.mubr.msk.bf16.vlgmr.msra.gmra.mrb[4].mxu1 %vm84_vm0, %v35_v15 }
  0xed   :  { %v122_v23 = vpop.f32.mrb[0].mxu0  ;;  %v163_v27 = vpop.f32.mrb[0].mxu1 }
  0xee   :  { %v321_v25 = vsel %vm320_vm1, %v122_v23, 0.0  ;;  %v438_v26 = vmul.f32 %v122_v23, %v122_v23  ;;  %v124_v28 = vpop.f32.mrb[1].mxu0  ;;  %v335_v30 = vsel %vm320_vm1, %v163_v27, 0.0  ;;  %v440_v31 = vmul.f32 %v163_v27, %v163_v27  ;;  %v165_v33 = vpop.f32.mrb[1].mxu1 }
  0xef   :  { %v322_v29 = vrot.slane %v321_v25, 4  ;;  %v587_v32 = vpack.c.bf16 %v124_v28, %v122_v23  ;;  %v126_v34 = vpop.f32.mrb[2].mxu0  ;;  %v336_v36 = vrot.slane %v335_v30, 4  ;;  %v328_v37 = vsel %vm320_vm1, %v124_v28, 0.0  ;;  %v167_v39 = vpop.f32.mrb[2].mxu1 }
  0xf0   :  { %v446_v35 = vsel %vm320_vm1, %v438_v26, 0.0  ;;  %v439_v38 = vmul.f32 %v124_v28, %v124_v28  ;;  %v127_v40 = vpop.f32.mrb[3].mxu0  ;;  %v460_v43 = vsel %vm320_vm1, %v440_v31, 0.0  ;;  %v168_v45 = vpop.f32.mrb[3].mxu1  ;;  %v329_v48 = vrot.slane %v328_v37, 4 }
  0xf1   :  { %v323_v41 = vadd.f32 %v322_v29, %v321_v25  ;;  %v447_v42 = vrot.slane %v446_v35, 4  ;;  %v674_v44 = vrot.slane %v587_v32, %v666_v24  ;;  %v337_v46 = vadd.f32 %v336_v36, %v335_v30 }
  0xf2   :  { %v461_v47 = vrot.slane %v460_v43, 4  ;;  %v453_v49 = vsel %vm320_vm1, %v439_v38, 0.0  ;;  %v588_v53 = vpack.c.bf16 %v165_v33, %v163_v27  ;;  %v330_v56 = vadd.f32 %v329_v48, %v328_v37 }
  0xf3   :  { %v324_v50 = vrot.slane %v323_v41, 2  ;;  %v448_v51 = vadd.f32 %v447_v42, %v446_v35  ;;  %v454_v52 = vrot.slane %v453_v49, 4  ;;  %v338_v54 = vrot.slane %v337_v46, 2 }
  0xf4   :  { %v462_v55 = vadd.f32 %v461_v47, %v460_v43  ;;  %v342_v57 = vsel %vm320_vm1, %v165_v33, 0.0  ;;  %v679_v61 = vrot.slane %v588_v53, %v666_v24  ;;  %v331_v1 = vrot.slane %v330_v56, 2 }
  0xf5   :  { %v325_v58 = vadd.f32 %v324_v50, %v323_v41  ;;  %v449_v59 = vrot.slane %v448_v51, 2  ;;  %v455_v60 = vadd.f32 %v454_v52, %v453_v49  ;;  %v681_v62 = vpop.f32.mrb[4].mxu0  ;;  %v339_v63 = vadd.f32 %v338_v54, %v337_v46  ;;  %v683_v3 = vpop.f32.mrb[4].mxu1 }
  0xf6   :  { %v463_v0 = vrot.slane %v462_v55, 2  ;;  %v343_v2 = vrot.slane %v342_v57, 4  ;;  %v685_v4 = vpop.f32.mrb[5].mxu0  ;;  %v300_v8 = vcombine.low %v674_v44, %v679_v61  ;;  %v689_v9 = vpop.f32.mrb[5].mxu1  ;;  %v332_v12 = vadd.f32 %v331_v1, %v330_v56 }
  0xf7   :  { %v326_v5 = vrot.slane %v325_v58, 1  ;;  %v450_v6 = vadd.f32 %v449_v59, %v448_v51  ;;  %v456_v7 = vrot.slane %v455_v60, 2  ;;  %v208_v10 = vpop.f32.mrb[6].mxu0  ;;  %v340_v11 = vrot.slane %v339_v63, 1  ;;  %v249_v14 = vpop.f32.mrb[6].mxu1 }
  0xf8   :  { %v344_v13 = vadd.f32 %v343_v2, %v342_v57  ;;  %v209_v15 = vpop.f32.mrb[7].mxu0  ;;  %v250_v18 = vpop.f32.mrb[7].mxu1  ;;  %v464_v20 = vadd.f32 %v463_v0, %v462_v55  ;;  %v333_v21 = vrot.slane %v332_v12, 1  ;;  %v441_v26 = vmul.f32 %v165_v33, %v165_v33 }
  0xf9   :  { %v451_v16 = vrot.slane %v450_v6, 1  ;;  %v457_v17 = vadd.f32 %v456_v7, %v455_v60  ;;  %v327_v19 = vadd.f32 %v326_v5, %v325_v58  ;;  %v349_v27 = vsel %vm320_vm1, %v681_v62, 0.0 }
  0xfa   :  { %v345_v22 = vrot.slane %v344_v13, 2  ;;  %v341_v28 = vadd.f32 %v340_v11, %v339_v63  ;;  %v334_v29 = vadd.f32 %v333_v21, %v332_v12  ;;  %v350_v31 = vrot.slane %v349_v27, 4 }
  0xfb   :  { %v452_v23 = vadd.f32 %v451_v16, %v450_v6  ;;  %v458_v25 = vrot.slane %v457_v17, 1  ;;  %v467_v34 = vsel %vm320_vm1, %v441_v26, 0.0  ;;  %v442_v35 = vmul.f32 %v681_v62, %v681_v62 }
  0xfc   :  { %v346_v30 = vadd.f32 %v345_v22, %v344_v13  ;;  %v363_v36 = vsel %vm320_vm1, %v683_v3, 0.0  ;;  %v385_v37 = vcombine.low %v327_v19, %v334_v29  ;;  %v468_v39 = vrot.slane %v467_v34, 4 }
  0xfd   :  { %v459_v32 = vadd.f32 %v458_v25, %v457_v17  ;;  %v351_v33 = vadd.f32 %v350_v31, %v349_v27  ;;  %v474_v41 = vsel %vm320_vm1, %v442_v35, 0.0  ;;  %v364_v42 = vrot.slane %v363_v36, 4 }
  0xfe   :  { %v347_v38 = vrot.slane %v346_v30, 1  ;;  %v444_v43 = vmul.f32 %v683_v3, %v683_v3  ;;  %v469_v45 = vadd.f32 %v468_v39, %v467_v34  ;;  %v465_v47 = vrot.slane %v464_v20, 1 }
  0xff   :  { %v510_v40 = vcombine.low %v452_v23, %v459_v32  ;;  %v352_v46 = vrot.slane %v351_v33, 2  ;;  %v702_v48 = vrot.slane %v385_v37, %v666_v24  ;;  %v475_v49 = vrot.slane %v474_v41, 4 }
 0x100   :  { %v348_v44 = vadd.f32 %v347_v38, %v346_v30  ;;  %v488_v50 = vsel %vm320_vm1, %v444_v43, 0.0  ;;  %v470_v52 = vrot.slane %v469_v45, 2  ;;  %v365_v53 = vadd.f32 %v364_v42, %v363_v36 }
 0x101   :  { %v489_v54 = vrot.slane %v488_v50, 4  ;;  %v353_v55 = vadd.f32 %v352_v46, %v351_v33  ;;  %v476_v56 = vadd.f32 %v475_v49, %v474_v41  ;;  %v589_v57 = vpack.c.bf16 %v685_v4, %v681_v62 }
 0x102   :  { %v386_v51 = vcombine.low %v341_v28, %v348_v44  ;;  %v356_v58 = vsel %vm320_vm1, %v685_v4, 0.0  ;;  %v471_v60 = vadd.f32 %v470_v52, %v469_v45  ;;  %v466_v1 = vadd.f32 %v465_v47, %v464_v20 }
 0x103   :  { %v490_v61 = vadd.f32 %v489_v54, %v488_v50  ;;  %v477_v63 = vrot.slane %v476_v56, 2  ;;  %v357_v0 = vrot.slane %v356_v58, 4  ;;  %v366_v6 = vrot.slane %v365_v53, 2 }
 0x104   :  { %v710_v59 = vrot.slane %v386_v51, %v666_v24  ;;  %v472_v5 = vrot.slane %v471_v60, 1  ;;  %v308_v7 = vrot.slane %v300_v8, %v666_v24  ;;  %v354_v10 = vrot.slane %v353_v55, 1 }
 0x105   :  { %v358_v62 = vadd.f32 %v357_v0, %v356_v58  ;;  %v443_v11 = vmul.f32 %v685_v4, %v685_v4  ;;  %v491_v13 = vrot.slane %v490_v61, 2  ;;  %v292_v14 = vrot.slane %v589_v57, %v666_v24 }
 0x106   :  { %v417_v2 = vcombine.low %v702_v48, %v710_v59  ;;  %v473_v12 = vadd.f32 %v472_v5, %v471_v60  ;;  %v590_v15 = vpack.c.bf16 %v689_v9, %v683_v3  ;;  %v520_v16 = vrot.slane %v510_v40, %v666_v24 }
 0x107   :  { %v478_v17 = vadd.f32 %v477_v63, %v476_v56  ;;  %v359_v18 = vrot.slane %v358_v62, 2  ;;  %v481_v19 = vsel %vm320_vm1, %v443_v11, 0.0  ;;  %v367_v8 = vadd.f32 %v366_v6, %v365_v53 }
 0x108   :  { %v511_v20 = vcombine.low %v466_v1, %v473_v12  ;;  %v482_v21 = vrot.slane %v481_v19, 4  ;;  %v299_v22 = vrot.slane %v590_v15, %v666_v24  ;;  %v355_v23 = vadd.f32 %v354_v10, %v353_v55 }
 0x109   :  { %v360_v4 = vadd.f32 %v359_v18, %v358_v62  ;;  %v370_v25 = vsel %vm320_vm1, %v689_v9, 0.0  ;;  %v445_v26 = vmul.f32 %v689_v9, %v689_v9  ;;  %v492_v27 = vadd.f32 %v491_v13, %v490_v61 }
 0x10a   :  { %v527_v3 = vrot.slane %v511_v20, %v666_v24  ;;  %v483_v28 = vadd.f32 %v482_v21, %v481_v19  ;;  %v301_v29 = vcombine.low %v292_v14, %v299_v22  ;;  %v479_v30 = vrot.slane %v478_v17, 1 }
 0x10b   :  { %v361_v31 = vrot.slane %v360_v4, 1  ;;  %v371_v32 = vrot.slane %v370_v25, 4  ;;  %v495_v34 = vsel %vm320_vm1, %v445_v26, 0.0  ;;  %v368_v42 = vrot.slane %v367_v8, 1 }
 0x10c   :  { %v542_v35 = vcombine.low %v520_v16, %v527_v3  ;;  %v484_v36 = vrot.slane %v483_v28, 2  ;;  %v315_v37 = vrot.slane %v301_v29, %v666_v24  ;;  %v496_v38 = vrot.slane %v495_v34, 4 }
 0x10d   :  { %v362_v39 = vadd.f32 %v361_v31, %v360_v4  ;;  %v372_v33 = vadd.f32 %v371_v32, %v370_v25  ;;  %v480_v45 = vadd.f32 %v479_v30, %v478_v17  ;;  %v493_v46 = vrot.slane %v492_v27, 1 }
 0x10e   :  { %v485_v40 = vadd.f32 %v484_v36, %v483_v28  ;;  %v316_v41 = vcombine.low %v308_v7, %v315_v37  ;;  %v497_v9 = vadd.f32 %v496_v38, %v495_v34  ;;  %v369_v53 = vadd.f32 %v368_v42, %v367_v8 }
 0x10f   :  { %v387_v43 = vcombine.low %v355_v23, %v362_v39  ;;  %v373_v44 = vrot.slane %v372_v33, 2  ;;  %v494_v55 = vadd.f32 %v493_v46, %v492_v27  ;;  %v425_v62 = vrot.slane %v417_v2, %v666_v24 }
 0x110   :  { %v486_v47 = vrot.slane %v485_v40, 1  ;;  %318 = vst [vmem:[%s752_s2] sm:$0xff] %v316_v41  ;;  %v498_v49 = vrot.slane %v497_v9, 2  ;;  %v550_v12 = vrot.slane %v542_v35, %v666_v24 }
 0x111   :  { %v374_v50 = vadd.f32 %v373_v44, %v372_v33  ;;  %v409_v61 = vrot.slane %v387_v43, %v666_v24 }
 0x112   :  { %v487_v51 = vadd.f32 %v486_v47, %v485_v40  ;;  %v499_v52 = vadd.f32 %v498_v49, %v497_v9 }
 0x113   :  { %v375_v54 = vrot.slane %v374_v50, 1 }
 0x114   :  { %v512_v56 = vcombine.low %v480_v45, %v487_v51  ;;  %v500_v57 = vrot.slane %v499_v52, 1 }
 0x115   :  { %v376_v58 = vadd.f32 %v375_v54, %v374_v50 }
 0x116   :  { %v501_v60 = vadd.f32 %v500_v57, %v499_v52  ;;  %v534_v0 = vrot.slane %v512_v56, %v666_v24 }
 0x117   :  { %v388_v63 = vcombine.low %v369_v53, %v376_v58 }
 0x118   :  { %v513_v1 = vcombine.low %v494_v55, %v501_v60 }
 0x119   :  { %v416_v5 = vrot.slane %v388_v63, %v666_v24 }
 0x11a   :  { %v541_v6 = vrot.slane %v513_v1, %v666_v24 }
 0x11b   :  { %v418_v7 = vcombine.low %v409_v61, %v416_v5 }
 0x11c   :  { %v543_v10 = vcombine.low %v534_v0, %v541_v6 }
 0x11d   :  { %v432_v11 = vrot.slane %v418_v7, %v666_v24 }
 0x11e   :  { %v557_v13 = vrot.slane %v543_v10, %v666_v24 }
 0x11f   :  { %v433_v14 = vcombine.low %v425_v62, %v432_v11 }
 0x120   :  { %v558_v15 = vcombine.low %v550_v12, %v557_v13 }
 0x121   :  { %436 = vst [vmem:[%s753_s3] sm:$0xff] %v433_v14 }
 0x122   :  { %561 = vst [vmem:[%s754_s4] sm:$0xff] %v558_v15 }
 0x123   :  { %574 = vsyncpa [#allocation3], 1 }

// kernel: generator_forward.10
= control target key start
LH: loop header
LB: loop body
LE: loop exit
PB: predicated region body
PF: predicated region fallthrough
CT: control target
= control target key end

     0   :  { %v19_v0 = vlaneseq  ;;  %v284_v2 = vmov 1983009808   ;;  %v285_v53 = vmov 1966171168   ;;  %s318_s0 = inlined_call_operand.vmem [shape: bf16[2,1024], index: 0, kind: input, shape index: {}]   ;;  %s319_s1 = inlined_call_operand.vmem [shape: f32[1,1024], index: 1, kind: input, shape index: {}]   ;;  %s320_s2 = inlined_call_operand.vmem [shape: f32[1,1024], index: 2, kind: input, shape index: {}]   ;;  %s321_s3 = inlined_call_operand.vmem [shape: bf16[2,1024], index: 3, kind: output, shape index: {}]  }
   0x1   :  { %v14_v1 = vld [vmem:[%s318_s0] sm:$0xff]  ;;  %v54_v3 = vunpack.c.l.s4 %v284_v2  ;;  %v228_v54 = vunpack.c.l.s4 %v285_v53 }
   0x2   :  { %v20_v4 = vshrl.u32 %v19_v0, 7  ;;  %v15_v5 = vunpack.c.l.bf16 %v14_v1  ;;  %v16_v6 = vunpack.c.h.bf16 %v14_v1  ;;  %v17_v7 = vld [vmem:[%s319_s1] sm:$0xff] }
   0x3   :  { %v55_v8 = vunpack.c.0.s8 %v54_v3  ;;  %v89_v17 = vld [vmem:[%s320_s2] sm:$0xff]  ;;  %v229_v60 = vunpack.c.0.s8 %v228_v54 }
   0x4   :  { %v21_v9 = vsub.s32 0, %v20_v4  ;;  %v25_v10 = vsub.s32 1, %v20_v4  ;;  %v29_v11 = vsub.s32 2, %v20_v4  ;;  %v33_v12 = vsub.s32 3, %v20_v4 }
   0x5   :  { %v37_v13 = vsub.s32 4, %v20_v4  ;;  %v41_v14 = vsub.s32 5, %v20_v4  ;;  %v45_v15 = vsub.s32 6, %v20_v4  ;;  %v49_v16 = vsub.s32 7, %v20_v4 }
   0x6   :  { %v22_v18 = vrot.slane %v17_v7, %v21_v9  ;;  %v26_v19 = vrot.slane %v17_v7, %v25_v10  ;;  %v30_v20 = vrot.slane %v17_v7, %v29_v11  ;;  %v34_v21 = vrot.slane %v17_v7, %v33_v12 }
   0x7   :  { %v38_v22 = vrot.slane %v17_v7, %v37_v13  ;;  %v42_v23 = vrot.slane %v17_v7, %v41_v14  ;;  %v46_v24 = vrot.slane %v17_v7, %v45_v15  ;;  %v50_v25 = vrot.slane %v17_v7, %v49_v16 }
   0x8   :  { %v51_v26 = vcombine.low %v22_v18, %v26_v19  ;;  %v52_v27 = vcombine.low %v30_v20, %v34_v21  ;;  %v58_v28 = vsub.s32 %v55_v8, %v20_v4  ;;  %v94_v29 = vrot.slane %v89_v17, %v21_v9 }
   0x9   :  { %v68_v30 = vcombine.low %v38_v22, %v42_v23  ;;  %v69_v31 = vcombine.low %v46_v24, %v50_v25  ;;  %v98_v32 = vrot.slane %v89_v17, %v25_v10  ;;  %v102_v33 = vrot.slane %v89_v17, %v29_v11 }
   0xa   :  { %v59_v34 = vrot.slane %v51_v26, %v58_v28  ;;  %v66_v35 = vrot.slane %v52_v27, %v58_v28  ;;  %v106_v36 = vrot.slane %v89_v17, %v33_v12  ;;  %v110_v37 = vrot.slane %v89_v17, %v37_v13 }
   0xb   :  { %v76_v38 = vrot.slane %v68_v30, %v58_v28  ;;  %v83_v39 = vrot.slane %v69_v31, %v58_v28  ;;  %v114_v40 = vrot.slane %v89_v17, %v41_v14  ;;  %v118_v41 = vrot.slane %v89_v17, %v45_v15 }
   0xc   :  { %v67_v42 = vcombine.low %v59_v34, %v66_v35  ;;  %v122_v43 = vrot.slane %v89_v17, %v49_v16  ;;  %v123_v44 = vcombine.low %v94_v29, %v98_v32  ;;  %v124_v45 = vcombine.low %v102_v33, %v106_v36 }
   0xd   :  { %v84_v46 = vcombine.low %v76_v38, %v83_v39  ;;  %v140_v47 = vcombine.low %v110_v37, %v114_v40  ;;  %v232_v2 = vsub.s32 %v229_v60, %v20_v4 }
   0xe   :  { %v87_v48 = vmul.f32 %v67_v42, %v15_v5  ;;  %v131_v49 = vrot.slane %v123_v44, %v58_v28  ;;  %v138_v50 = vrot.slane %v124_v45, %v58_v28  ;;  %v141_v51 = vcombine.low %v118_v41, %v122_v43 }
   0xf   :  { %v148_v52 = vrot.slane %v140_v47, %v58_v28  ;;  %v88_v55 = vmul.f32 %v84_v46, %v16_v6 }
  0x10   :  { %v139_v56 = vcombine.low %v131_v49, %v138_v50  ;;  %v155_v57 = vrot.slane %v141_v51, %v58_v28 }
  0x12   :  { %v156_v58 = vcombine.low %v148_v52, %v155_v57  ;;  %v159_v59 = vadd.f32 %v139_v56, %v87_v48 }
  0x14   :  { %v160_v61 = vadd.f32 %v156_v58, %v88_v55  ;;  %v161_v62 = vmax.f32 %v159_v59, 0.0 }
  0x16   :  { %v162_v63 = vmax.f32 %v160_v61, 0.0  ;;  %v165_v0 = vcombine.high %v161_v62, %v161_v62  ;;  %v172_v1 = vrot.slane %v161_v62, %v58_v28 }
  0x18   :  { %v179_v3 = vrot.slane %v165_v0, %v58_v28  ;;  %v180_v5 = vcombine.high %v172_v1, %v172_v1  ;;  %v182_v7 = vcombine.high %v162_v63, %v162_v63  ;;  %v189_v8 = vrot.slane %v162_v63, %v58_v28 }
  0x1a   :  { %v181_v9 = vcombine.high %v179_v3, %v179_v3  ;;  %v196_v10 = vrot.slane %v182_v7, %v58_v28  ;;  %v197_v11 = vcombine.high %v189_v8, %v189_v8  ;;  %v278_v12 = vpack.c.bf16 %v180_v5, %v172_v1 }
  0x1c   :  { %v198_v6 = vcombine.high %v196_v10, %v196_v10  ;;  %v279_v13 = vpack.c.bf16 %v181_v9, %v179_v3  ;;  %v280_v14 = vpack.c.bf16 %v197_v11, %v189_v8  ;;  %v233_v15 = vrot.slane %v278_v12, %v232_v2 }
  0x1e   :  { %v281_v16 = vpack.c.bf16 %v198_v6, %v196_v10  ;;  %v240_v17 = vrot.slane %v279_v13, %v232_v2  ;;  %v247_v18 = vrot.slane %v280_v14, %v232_v2 }
  0x20   :  { %v254_v19 = vrot.slane %v281_v16, %v232_v2  ;;  %v255_v20 = vcombine.low %v233_v15, %v240_v17 }
  0x22   :  { %v256_v21 = vcombine.low %v247_v18, %v254_v19  ;;  %v263_v22 = vrot.slane %v255_v20, %v232_v2 }
  0x24   :  { %v270_v4 = vrot.slane %v256_v21, %v232_v2 }
  0x26   :  { %v271_v23 = vcombine.low %v263_v22, %v270_v4 }
  0x28   :  { %273 = vst [vmem:[%s321_s3] sm:$0xff] %v271_v23 }

// kernel: tile.58
= control target key start
LH: loop header
LB: loop body
LE: loop exit
PB: predicated region body
PF: predicated region fallthrough
CT: control target
= control target key end

     0   :  { %s22_s0 = inlined_call_operand.vmem [shape: f32[32], index: 0, kind: input, shape index: {}]   ;;  %s23_s1 = inlined_call_operand.vmem [shape: f32[4,32], index: 1, kind: output, shape index: {}]  }
   0x1   :  { %v4_v0 = vld [vmem:[%s22_s0] ss:$0 sm:$0xff] }
   0x2   :  { %5 = vst [vmem:[%s23_s1] sm:$0xf] %v4_v0 }

// kernel: tile.59
= control target key start
LH: loop header
LB: loop body
LE: loop exit
PB: predicated region body
PF: predicated region fallthrough
CT: control target
= control target key end

     0   :  { %vm7_vm0 = vcmask 261120   ;;  %s37_s8 = smov 32   ;;  %s38_s9 = smov 64   ;;  %vm13_vm1 = vcmask 1048320   ;;  %vm19_vm2 = vcmask 785920   ;;  %vm25_vm3 = vcmask 523520   ;;  %s55_s0 = inlined_call_operand.vmem [shape: f32[4,32], index: 0, kind: input, shape index: {}]   ;;  %s56_s1 = inlined_call_operand.vmem [shape: f32[1,128], index: 1, kind: output, shape index: {}]  }
   0x1   :  { %v4_v0 = vld [vmem:[%s55_s0] sm:$0xf]  ;;  %s36_s0 = smov 96  }
   0x2   :  { %5 = vst [vmem:[#allocation1] sm:$0xf] %v4_v0 }
   0x9   :  { %v10_v1 = vld [vmem:[#allocation1 + $0x3] sm:$0x1]   ;;  %v22_v2 = vld [vmem:[#allocation1 + $0x1] sm:$0x1]   ;;  %v6_v3 = vld [vmem:[#allocation1] sm:$0x1]  }
   0xa   :  { %11 = vrot.lane.b32.xlu0 %v10_v1, %s36_s0  ;;  %23 = vrot.lane.b32.xlu1 %v22_v2, %s37_s8  ;;  %v16_v4 = vld [vmem:[#allocation1 + $0x2] sm:$0x1]   ;;  %8 = vst.msk [vmem:[#allocation0] sm:$0x1] %vm7_vm0, %v6_v3  }
   0xe   :  { %17 = vrot.lane.b32.xlu0 %v16_v4, %s38_s9 }
  0x7c   :  { %v12_v5 = vpop.permute.xlu0 %11   ;;  %v24_v6 = vpop.permute.xlu1 %23  }
  0x7d   :  { %14 = vst.msk [vmem:[#allocation0] sm:$0x1] %vm13_vm1, %v12_v5  }
  0x80   :  { %v18_v7 = vpop.permute.xlu0 %17  }
  0x81   :  { %20 = vst.msk [vmem:[#allocation0] sm:$0x1] %vm19_vm2, %v18_v7  }
  0x82   :  { %26 = vst.msk [vmem:[#allocation0] sm:$0x1] %vm25_vm3, %v24_v6  }
  0x89   :  { %v30_v8 = vld [vmem:[#allocation0] sm:$0x1] }
  0x8a   :  { %32 = vst [vmem:[%s56_s1] sm:$0x1] %v30_v8 }

// kernel: generator_forward.11
= control target key start
LH: loop header
LB: loop body
LE: loop exit
PB: predicated region body
PF: predicated region fallthrough
CT: control target
= control target key end

     0   :  { %10 = vsyncpa [#allocation3], 0  ;;  %s819_s15 = smov [#allocation2]   ;;  %s914_s0 = inlined_call_operand.vmem [shape: bf16[32,576], index: 0, kind: input, shape index: {}]   ;;  %s915_s1 = inlined_call_operand.hbm [shape: bf16[576,128], index: 1, kind: input, shape index: {}]   ;;  %s916_s2 = inlined_call_operand.vmem [shape: bf16[32,128], index: 2, kind: output, shape index: {0}]   ;;  %s917_s3 = inlined_call_operand.vmem [shape: f32[1,128], index: 3, kind: output, shape index: {1}]   ;;  %s918_s4 = inlined_call_operand.vmem [shape: f32[1,128], index: 4, kind: output, shape index: {2}]  }
   0x1   :  { %s18_s16 = sshll.u32 %s819_s15, 4  ;;  %s795_s19 = scalar_lea.hbm %s915_s1, 4608  ;;  %s19_s16 = int_to_ptr.vmem [resolvable:$true] %s18_s16 }
   0x2   :  { %p796_p0 = scmp.ne.s32.totalorder %s915_s1, %s795_s19  ;;  %p799_p1 = scmp.lt.u32.totalorder %s795_s19, %s915_s1 }
   0x4   :  { %p801_p2 = pnand %p799_p1, %p796_p0 }
   0x6   :  { %804 = shalt.err (!%p801_p2)
}
   0x7   :  { %s805_s24 = scalar_lea.vmem %s19_s16, 4608  ;;  %p810_p4 = scmp.lt.s32.totalorder %s19_s16, %s19_s16 }
   0x8   :  { %p806_p3 = scmp.ne.s32.totalorder %s19_s16, %s805_s24  ;;  %p811_p5 = scmp.lt.s32.totalorder %s805_s24, %s805_s24 }
   0xa   :  { %p812_p6 = por %p811_p5, %p810_p4 }
   0xc   :  { %p813_p7 = pnand %p812_p6, %p806_p3 }
   0xe   :  { %816 = shalt.err (!%p813_p7)
}
   0xf   :  { %s820_s25 = smov 64   ;;  %s821_s26 = smov 4  }
  0x10   :  { %24 = dma.hbm_to_vmem [thread:$0]  %s915_s1, 4608, %s19_s16, [#allocation3], %s820_s25, %s820_s25, %s821_s26  }
  0x11   :  { %817 = dma.done.wait [#allocation3], 4608  }
  0x12   :  { %818 = vsyncadd [#allocation3], 4294962688  ;;  %v745_v0 = vld [vmem:[#allocation2 + $0x40] sm:$0xff]   ;;  %v749_v4 = vld [vmem:[#allocation2 + $0x48] sm:$0xff]   ;;  %vm385_vm0 = vcmask 523264   ;;  %v822_v46 = vmov 0.0  }
  0x13   :  { %v746_v1 = vld [vmem:[#allocation2 + $0xc0] sm:$0xff]   ;;  %667 = vmatprep.subr.bf16.mxu0 %v745_v0  ;;  %v750_v5 = vld [vmem:[#allocation2 + $0xc8] sm:$0xff]   ;;  %v753_v8 = vld [vmem:[#allocation2 + $0x50] sm:$0xff]   ;;  %33 = vst [vmem:[%s917_s3] sm:$0x1] %v822_v46 }
  0x14   :  { %v747_v2 = vld [vmem:[#allocation2] sm:$0xff]   ;;  %695 = vmatprep.subr.bf16.mxu1 %v746_v1  ;;  %v751_v6 = vld [vmem:[#allocation2 + $0x8] sm:$0xff]   ;;  %v754_v9 = vld [vmem:[#allocation2 + $0xd0] sm:$0xff]   ;;  %34 = vst [vmem:[%s918_s4] sm:$0x1] %v822_v46 }
  0x15   :  { %v748_v3 = vld [vmem:[#allocation2 + $0x80] sm:$0xff]   ;;  %668 = vmatpush3.bf16.msra.mxu0 %v747_v2  ;;  %v752_v7 = vld [vmem:[#allocation2 + $0x88] sm:$0xff]   ;;  %v755_v10 = vld [vmem:[#allocation2 + $0x10] sm:$0xff]  }
  0x16   :  { %696 = vmatpush3.bf16.msra.mxu1 %v748_v3  ;;  %669 = vmatprep.subr.bf16.mxu0 %v749_v4  ;;  %v756_v11 = vld [vmem:[#allocation2 + $0x90] sm:$0xff]   ;;  %v757_v12 = vld [vmem:[#allocation2 + $0x58] sm:$0xff]   ;;  %v761_v16 = vld [vmem:[#allocation2 + $0x60] sm:$0xff]  }
  0x17   :  { %697 = vmatprep.subr.bf16.mxu1 %v750_v5  ;;  %v758_v13 = vld [vmem:[#allocation2 + $0xd8] sm:$0xff]   ;;  %v762_v17 = vld [vmem:[#allocation2 + $0xe0] sm:$0xff]   ;;  %v765_v20 = vld [vmem:[#allocation2 + $0x68] sm:$0xff]  }
  0x18   :  { %v759_v14 = vld [vmem:[#allocation2 + $0x18] sm:$0xff]   ;;  %v763_v18 = vld [vmem:[#allocation2 + $0x20] sm:$0xff]   ;;  %v766_v21 = vld [vmem:[#allocation2 + $0xe8] sm:$0xff]  }
  0x19   :  { %670 = vmatpush3.bf16.msra.mxu0 %v751_v6  ;;  %v760_v15 = vld [vmem:[#allocation2 + $0x98] sm:$0xff]   ;;  %v764_v19 = vld [vmem:[#allocation2 + $0xa0] sm:$0xff]   ;;  %v767_v22 = vld [vmem:[#allocation2 + $0x28] sm:$0xff]  }
  0x1a   :  { %698 = vmatpush3.bf16.msra.mxu1 %v752_v7  ;;  %671 = vmatprep.subr.bf16.mxu0 %v753_v8  ;;  %v768_v23 = vld [vmem:[#allocation2 + $0xa8] sm:$0xff]   ;;  %v769_v24 = vld [vmem:[#allocation2 + $0x70] sm:$0xff]   ;;  %v773_v28 = vld [vmem:[#allocation2 + $0x78] sm:$0xff]  }
  0x1b   :  { %699 = vmatprep.subr.bf16.mxu1 %v754_v9  ;;  %v770_v25 = vld [vmem:[#allocation2 + $0xf0] sm:$0xff]   ;;  %v774_v29 = vld [vmem:[#allocation2 + $0xf8] sm:$0xff]   ;;  %v782_v35 = vld [vmem:[%s914_s0 + $0xc] ss:$20 sps:$4 sm:$0xff]  }
  0x1c   :  { %v771_v26 = vld [vmem:[#allocation2 + $0x30] sm:$0xff]   ;;  %v775_v30 = vld [vmem:[#allocation2 + $0x38] sm:$0xff]   ;;  %v783_v36 = vld [vmem:[#allocation2 + $0x100] sm:$0xff]   ;;  %473 = vmatprep.mubr.bf16.mxu1 %v782_v35 }
  0x1d   :  { %672 = vmatpush3.bf16.msra.mxu0 %v755_v10  ;;  %v772_v27 = vld [vmem:[#allocation2 + $0xb0] sm:$0xff]   ;;  %v776_v31 = vld [vmem:[#allocation2 + $0xb8] sm:$0xff]   ;;  %v784_v37 = vld [vmem:[#allocation2 + $0x108] sm:$0xff]  }
  0x1e   :  { %700 = vmatpush3.bf16.msra.mxu1 %v756_v11  ;;  %673 = vmatprep.subr.bf16.mxu0 %v757_v12  ;;  %v777_v32 = vld [vmem:[%s914_s0] ss:$20 sps:$4 sm:$0xff]   ;;  %v779_v33 = vld [vmem:[%s914_s0 + $0x4] ss:$20 sps:$4 sm:$0xff]   ;;  %v780_v34 = vld [vmem:[%s914_s0 + $0x8] ss:$20 sps:$4 sm:$0xff]  }
  0x1f   :  { %701 = vmatprep.subr.bf16.mxu1 %v758_v13  ;;  %424 = vmatprep.mubr.bf16.mxu0 %v779_v33  ;;  %v785_v38 = vld [vmem:[%s914_s0 + $0x2c] ss:$20 sps:$4 sm:$0xff]   ;;  %v787_v39 = vld [vmem:[%s914_s0 + $0x34] ss:$20 sps:$4 sm:$0xff]   ;;  %v790_v42 = vld [vmem:[%s914_s0 + $0x30] ss:$20 sps:$4 sm:$0xff]  }
  0x20   :  { %v789_v40 = vld [vmem:[%s914_s0 + $0x28] ss:$20 sps:$4 sm:$0xff]   ;;  %v791_v41 = vld [vmem:[#allocation2 + $0x110] sm:$0xff]   ;;  %v794_v45 = vld [vmem:[%s914_s0 + $0x38] ss:$20 sps:$4 sm:$0xff]  }
  0x21   :  { %674 = vmatpush3.bf16.msra.mxu0 %v759_v14  ;;  %v793_v43 = vld [vmem:[%s914_s0 + $0x10] ss:$20 sps:$4 sm:$0xff]   ;;  %v792_v44 = vld [vmem:[#allocation2 + $0x118] sm:$0xff]  }
  0x22   :  { %702 = vmatpush3.bf16.msra.mxu1 %v760_v15  ;;  %675 = vmatprep.subr.bf16.mxu0 %v761_v16 }
  0x23   :  { %703 = vmatprep.subr.bf16.mxu1 %v762_v17 }
  0x25   :  { %676 = vmatpush3.bf16.msra.mxu0 %v763_v18 }
  0x26   :  { %704 = vmatpush3.bf16.msra.mxu1 %v764_v19  ;;  %677 = vmatprep.subr.bf16.mxu0 %v765_v20 }
  0x27   :  { %705 = vmatprep.subr.bf16.mxu1 %v766_v21 }
  0x29   :  { %678 = vmatpush3.bf16.msra.mxu0 %v767_v22 }
  0x2a   :  { %706 = vmatpush3.bf16.msra.mxu1 %v768_v23  ;;  %679 = vmatprep.subr.bf16.mxu0 %v769_v24 }
  0x2b   :  { %707 = vmatprep.subr.bf16.mxu1 %v770_v25 }
  0x2d   :  { %680 = vmatpush3.bf16.msra.mxu0 %v771_v26 }
  0x2e   :  { %708 = vmatpush3.bf16.msra.mxu1 %v772_v27  ;;  %681 = vmatprep.subr.bf16.mxu0 %v773_v28 }
  0x2f   :  { %709 = vmatprep.subr.bf16.mxu1 %v774_v29 }
  0x31   :  { %682 = vmatpush3.bf16.msra.mxu0 %v775_v30 }
  0x32   :  { %710 = vmatpush3.bf16.msra.mxu1 %v776_v31  ;;  %729 = vmatprep.subr.bf16.mxu0 %v783_v36 }
  0x34   :  { %425 = vmatmul.mubr.bf16.vlgmr.msra.gmra.mrb[0].mxu0 %v777_v32 }
  0x35   :  { %474 = vmatmul.mubr.bf16.vlgmr.msra.gmra.mrb[0].mxu1 %v780_v34  ;;  %730 = vmatpush3.bf16.msra.mxu0 %v783_v36 }
  0x36   :  { %731 = vmatprep.subr.bf16.mxu0 %v784_v37  ;;  %432 = vmatprep.mubr.bf16.mxu0 %v785_v38 }
  0x37   :  { %481 = vmatprep.mubr.bf16.mxu1 %v787_v39 }
  0x39   :  { %732 = vmatpush3.bf16.msra.mxu0 %v784_v37 }
  0x3a   :  { %733 = vmatprep.subr.bf16.mxu0 %v791_v41 }
  0x3c   :  { %433 = vmatmul.mubr.bf16.gmra.mrb[4].mxu0 %v789_v40  ;;  %v559_v40 = vld [vmem:[%s917_s3] sm:$0x1] }
  0x3d   :  { %482 = vmatmul.mubr.bf16.gmra.mrb[4].mxu1 %v790_v42  ;;  %737 = vmatprep.mubr.msk.bf16.mxu0 %vm385_vm0, %v793_v43  ;;  %v571_v43 = vld [vmem:[%s918_s4] sm:$0x1] }
  0x3e   :  { %734 = vmatpush3.bf16.msra.mxu0 %v791_v41 }
  0x3f   :  { %735 = vmatprep.subr.bf16.mxu0 %v792_v44 }
  0x42   :  { %736 = vmatpush3.bf16.msra.mxu0 %v792_v44 }
  0x45   :  { %738 = vmatmul.mubr.msk.bf16.vlgmr.msra.gmra.mrb[8].mxu0 %vm385_vm0, %v794_v45 }
 0x107   :  { %v683_v47 = vpop.f32.mrb[0].mxu0 }
 0x108   :  { %v711_v48 = vpop.f32.mrb[0].mxu1  ;;  %v684_v49 = vpop.f32.mrb[1].mxu0 }
 0x109   :  { %v685_v50 = vadd.f32 %v684_v49, %v683_v47  ;;  %v712_v51 = vpop.f32.mrb[1].mxu1  ;;  %v686_v52 = vpop.f32.mrb[2].mxu0 }
 0x10a   :  { %v713_v53 = vadd.f32 %v712_v51, %v711_v48  ;;  %v714_v54 = vpop.f32.mrb[2].mxu1  ;;  %v687_v55 = vpop.f32.mrb[3].mxu0 }
 0x10b   :  { %v688_v56 = vadd.f32 %v687_v55, %v686_v52  ;;  %v715_v57 = vpop.f32.mrb[3].mxu1 }
 0x10c   :  { %v716_v58 = vadd.f32 %v715_v57, %v714_v54  ;;  %v476_v59 = vadd.f32 %v713_v53, %v685_v50 }
 0x10e   :  { %v479_v60 = vadd.f32 %v716_v58, %v688_v56 }
 0x10f   :  { %v689_v61 = vpop.f32.mrb[4].mxu0 }
 0x110   :  { %v717_v62 = vpop.f32.mrb[4].mxu1  ;;  %v690_v63 = vpop.f32.mrb[5].mxu0 }
 0x111   :  { %v691_v0 = vadd.f32 %v690_v63, %v689_v61  ;;  %v718_v1 = vpop.f32.mrb[5].mxu1  ;;  %v692_v2 = vpop.f32.mrb[6].mxu0 }
 0x112   :  { %v719_v3 = vadd.f32 %v718_v1, %v717_v62  ;;  %v720_v4 = vpop.f32.mrb[6].mxu1  ;;  %v693_v5 = vpop.f32.mrb[7].mxu0 }
 0x113   :  { %v694_v6 = vadd.f32 %v693_v5, %v692_v2  ;;  %v721_v7 = vpop.f32.mrb[7].mxu1 }
 0x114   :  { %v722_v8 = vadd.f32 %v721_v7, %v720_v4  ;;  %v484_v9 = vadd.f32 %v719_v3, %v691_v0 }
 0x116   :  { %v487_v10 = vadd.f32 %v722_v8, %v694_v6 }
 0x118   :  { %v739_v11 = vpop.f32.mrb[8].mxu0 }
 0x119   :  { %v533_v12 = vadd.f32 %v739_v11, %v484_v9  ;;  %v524_v13 = vpop.f32.mrb[9].mxu0 }
 0x11a   :  { %v525_v14 = vadd.f32 %v524_v13, %v476_v59  ;;  %v740_v15 = vpop.f32.mrb[10].mxu0 }
 0x11b   :  { %v536_v16 = vadd.f32 %v740_v15, %v487_v10  ;;  %v527_v17 = vpop.f32.mrb[11].mxu0  ;;  %v574_v24 = vmul.f32 %v533_v12, %v533_v12 }
 0x11c   :  { %v528_v18 = vadd.f32 %v527_v17, %v479_v60  ;;  %v572_v20 = vmul.f32 %v525_v14, %v525_v14 }
 0x11d   :  { %v664_v19 = vpack.c.bf16 %v536_v16, %v533_v12  ;;  %v575_v27 = vmul.f32 %v536_v16, %v536_v16 }
 0x11e   :  { %v659_v21 = vpack.c.bf16 %v528_v18, %v525_v14  ;;  %v560_v22 = vadd.f32 %v528_v18, %v525_v14  ;;  %v573_v23 = vmul.f32 %v528_v18, %v528_v18 }
 0x11f   :  { %666 = vst [vmem:[%s916_s2 + $0x8] sm:$0xff] %v664_v19  }
 0x120   :  { %660 = vst [vmem:[%s916_s2] sm:$0xff] %v659_v21   ;;  %v561_v25 = vadd.f32 %v560_v22, %v533_v12  ;;  %v576_v26 = vadd.f32 %v573_v23, %v572_v20 }
 0x122   :  { %v562_v28 = vadd.f32 %v561_v25, %v536_v16  ;;  %v577_v29 = vadd.f32 %v576_v26, %v574_v24 }
 0x124   :  { %v563_v30 = vrot.slane %v562_v28, 4  ;;  %v578_v31 = vadd.f32 %v577_v29, %v575_v27 }
 0x126   :  { %v564_v32 = vadd.f32 %v563_v30, %v562_v28  ;;  %v579_v33 = vrot.slane %v578_v31, 4 }
 0x128   :  { %v565_v34 = vrot.slane %v564_v32, 2  ;;  %v580_v35 = vadd.f32 %v579_v33, %v578_v31 }
 0x12a   :  { %v566_v36 = vadd.f32 %v565_v34, %v564_v32  ;;  %v581_v37 = vrot.slane %v580_v35, 2 }
 0x12c   :  { %v567_v38 = vrot.slane %v566_v36, 1  ;;  %v582_v39 = vadd.f32 %v581_v37, %v580_v35 }
 0x12e   :  { %v568_v41 = vadd.f32 %v567_v38, %v566_v36  ;;  %v583_v42 = vrot.slane %v582_v39, 1 }
 0x130   :  { %v569_v44 = vadd.f32 %v568_v41, %v559_v40  ;;  %v584_v45 = vadd.f32 %v583_v42, %v582_v39 }
 0x132   :  { %570 = vst [vmem:[%s917_s3] sm:$0x1] %v569_v44  ;;  %v585_v46 = vadd.f32 %v584_v45, %v571_v43 }
 0x134   :  { %586 = vst [vmem:[%s918_s4] sm:$0x1] %v585_v46 }
 0x135   :  { %599 = vsyncpa [#allocation3], 1 }

// kernel: generator_forward.12
= control target key start
LH: loop header
LB: loop body
LE: loop exit
PB: predicated region body
PF: predicated region fallthrough
CT: control target
= control target key end

     0   :  { %s140_s0 = inlined_call_operand.vmem [shape: bf16[32,128], index: 0, kind: input, shape index: {}]   ;;  %s141_s1 = inlined_call_operand.vmem [shape: f32[1,128], index: 1, kind: input, shape index: {}]   ;;  %s142_s2 = inlined_call_operand.vmem [shape: f32[1,128], index: 2, kind: input, shape index: {}]   ;;  %s143_s3 = inlined_call_operand.vmem [shape: bf16[32,128], index: 3, kind: output, shape index: {}]  }
   0x1   :  { %v83_v0 = vld [vmem:[%s140_s0] sm:$0xff]   ;;  %v100_v4 = vld [vmem:[%s140_s0 + $0x8] sm:$0xff]  }
   0x2   :  { %v72_v1 = vld [vmem:[%s141_s1] ss:$0 sm:$0xff]  ;;  %v84_v2 = vunpack.c.l.bf16 %v83_v0  ;;  %v85_v3 = vunpack.c.h.bf16 %v83_v0  ;;  %v88_v6 = vunpack.c.l.bf16 %v100_v4  ;;  %v89_v7 = vunpack.c.h.bf16 %v100_v4 }
   0x3   :  { %v73_v5 = vld [vmem:[%s142_s2] ss:$0 sm:$0xff] }
   0x4   :  { %v29_v8 = vmul.f32 %v84_v2, %v72_v1  ;;  %v30_v9 = vmul.f32 %v85_v3, %v72_v1  ;;  %v31_v10 = vmul.f32 %v88_v6, %v72_v1  ;;  %v32_v11 = vmul.f32 %v89_v7, %v72_v1 }
   0x6   :  { %v40_v12 = vadd.f32 %v73_v5, %v29_v8  ;;  %v41_v13 = vadd.f32 %v73_v5, %v30_v9  ;;  %v42_v14 = vadd.f32 %v73_v5, %v31_v10  ;;  %v43_v15 = vadd.f32 %v73_v5, %v32_v11 }
   0x8   :  { %v44_v16 = vmax.f32 %v40_v12, 0.0  ;;  %v45_v17 = vmax.f32 %v41_v13, 0.0  ;;  %v46_v18 = vmax.f32 %v42_v14, 0.0  ;;  %v47_v19 = vmax.f32 %v43_v15, 0.0 }
   0xa   :  { %v93_v20 = vpack.c.bf16 %v45_v17, %v44_v16  ;;  %v98_v21 = vpack.c.bf16 %v47_v19, %v46_v18 }
   0xc   :  { %94 = vst [vmem:[%s143_s3] sm:$0xff] %v93_v20   ;;  %101 = vst [vmem:[%s143_s3 + $0x8] sm:$0xff] %v98_v21  }

// kernel: generator_forward.13
= control target key start
LH: loop header
LB: loop body
LE: loop exit
PB: predicated region body
PF: predicated region fallthrough
CT: control target
= control target key end

     0   :  { %10 = vsyncpa [#allocation3], 0  ;;  %s1024_s15 = smov [#allocation2]   ;;  %s1199_s0 = inlined_call_operand.vmem [shape: bf16[128,288], index: 0, kind: input, shape index: {}]   ;;  %s1200_s1 = inlined_call_operand.hbm [shape: bf16[288,128], index: 1, kind: input, shape index: {}]   ;;  %s1201_s2 = inlined_call_operand.vmem [shape: bf16[128,128], index: 2, kind: output, shape index: {0}]   ;;  %s1202_s3 = inlined_call_operand.vmem [shape: f32[1,128], index: 3, kind: output, shape index: {1}]   ;;  %s1203_s4 = inlined_call_operand.vmem [shape: f32[1,128], index: 4, kind: output, shape index: {2}]  }
   0x1   :  { %s18_s16 = sshll.u32 %s1024_s15, 4  ;;  %s1000_s19 = scalar_lea.hbm %s1200_s1, 2304  ;;  %s19_s16 = int_to_ptr.vmem [resolvable:$true] %s18_s16 }
   0x2   :  { %p1001_p0 = scmp.ne.s32.totalorder %s1200_s1, %s1000_s19  ;;  %p1004_p1 = scmp.lt.u32.totalorder %s1000_s19, %s1200_s1 }
   0x4   :  { %p1006_p2 = pnand %p1004_p1, %p1001_p0 }
   0x6   :  { %1009 = shalt.err (!%p1006_p2)
}
   0x7   :  { %s1010_s24 = scalar_lea.vmem %s19_s16, 2304  ;;  %p1015_p4 = scmp.lt.s32.totalorder %s19_s16, %s19_s16 }
   0x8   :  { %p1011_p3 = scmp.ne.s32.totalorder %s19_s16, %s1010_s24  ;;  %p1016_p5 = scmp.lt.s32.totalorder %s1010_s24, %s1010_s24 }
   0xa   :  { %p1017_p6 = por %p1016_p5, %p1015_p4 }
   0xc   :  { %p1018_p7 = pnand %p1017_p6, %p1011_p3 }
   0xe   :  { %1021 = shalt.err (!%p1018_p7)
}
   0xf   :  { %s1025_s25 = smov 64   ;;  %s1026_s26 = smov 4  }
  0x10   :  { %24 = dma.hbm_to_vmem [thread:$0]  %s1200_s1, 2304, %s19_s16, [#allocation3], %s1025_s25, %s1025_s25, %s1026_s26  }
  0x11   :  { %1022 = dma.done.wait [#allocation3], 2304  }
  0x12   :  { %1023 = vsyncadd [#allocation3], 4294964992  ;;  %v950_v0 = vld [vmem:[#allocation2 + $0x40] sm:$0xff]   ;;  %v952_v2 = vld [vmem:[#allocation2 + $0x48] sm:$0xff]   ;;  %vm331_vm0 = vcmask 261120   ;;  %v1027_v42 = vmov 0.0  }
  0x13   :  { %v951_v1 = vld [vmem:[#allocation2] sm:$0xff]   ;;  %836 = vmatprep.subr.bf16.mxu0 %v950_v0  ;;  %930 = vmatprep.subr.bf16.mxu1 %v950_v0  ;;  %v953_v3 = vld [vmem:[#allocation2 + $0x8] sm:$0xff]   ;;  %v954_v4 = vld [vmem:[#allocation2 + $0x50] sm:$0xff]   ;;  %33 = vst [vmem:[%s1202_s3] sm:$0x1] %v1027_v42 }
  0x14   :  { %837 = vmatpush3.bf16.msra.mxu0 %v951_v1  ;;  %938 = vmatpush3.bf16.msra.mxu1 %v951_v1  ;;  %v955_v5 = vld [vmem:[#allocation2 + $0x10] sm:$0xff]   ;;  %v956_v6 = vld [vmem:[#allocation2 + $0x58] sm:$0xff]   ;;  %v958_v8 = vld [vmem:[#allocation2 + $0x60] sm:$0xff]   ;;  %34 = vst [vmem:[%s1203_s4] sm:$0x1] %v1027_v42 }
  0x15   :  { %838 = vmatprep.subr.bf16.mxu0 %v952_v2  ;;  %931 = vmatprep.subr.bf16.mxu1 %v952_v2  ;;  %v957_v7 = vld [vmem:[#allocation2 + $0x18] sm:$0xff]   ;;  %v959_v9 = vld [vmem:[#allocation2 + $0x20] sm:$0xff]   ;;  %v960_v10 = vld [vmem:[#allocation2 + $0x68] sm:$0xff]  }
  0x16   :  { %v968_v11 = vld [vmem:[%s1199_s0 + $0x4] ss:$12 sps:$4 sm:$0xff]   ;;  %v971_v12 = vld [vmem:[%s1199_s0 + $0x94] ss:$12 sps:$4 sm:$0xff]   ;;  %v961_v13 = vld [vmem:[#allocation2 + $0x28] sm:$0xff]  }
  0x17   :  { %v962_v14 = vld [vmem:[#allocation2 + $0x70] sm:$0xff]   ;;  %388 = vmatprep.mubr.bf16.mxu0 %v968_v11  ;;  %436 = vmatprep.mubr.bf16.mxu1 %v971_v12  ;;  %v964_v16 = vld [vmem:[#allocation2 + $0x78] sm:$0xff]   ;;  %v966_v18 = vld [vmem:[%s1199_s0] ss:$12 sps:$4 sm:$0xff]  }
  0x18   :  { %839 = vmatpush3.bf16.msra.mxu0 %v953_v3  ;;  %939 = vmatpush3.bf16.msra.mxu1 %v953_v3  ;;  %v963_v15 = vld [vmem:[#allocation2 + $0x30] sm:$0xff]   ;;  %v965_v17 = vld [vmem:[#allocation2 + $0x38] sm:$0xff]   ;;  %v972_v19 = vld [vmem:[#allocation2 + $0x80] sm:$0xff]  }
  0x19   :  { %840 = vmatprep.subr.bf16.mxu0 %v954_v4  ;;  %932 = vmatprep.subr.bf16.mxu1 %v954_v4  ;;  %v969_v20 = vld [vmem:[%s1199_s0 + $0x90] ss:$12 sps:$4 sm:$0xff]   ;;  %v975_v22 = vld [vmem:[%s1199_s0 + $0xac] ss:$12 sps:$4 sm:$0xff]   ;;  %v978_v25 = vld [vmem:[%s1199_s0 + $0xa8] ss:$12 sps:$4 sm:$0xff]  }
  0x1a   :  { %v973_v21 = vld [vmem:[%s1199_s0 + $0x1c] ss:$12 sps:$4 sm:$0xff]   ;;  %v977_v24 = vld [vmem:[%s1199_s0 + $0x18] ss:$12 sps:$4 sm:$0xff]   ;;  %v980_v26 = vld [vmem:[%s1199_s0 + $0x34] ss:$12 sps:$4 sm:$0xff]  }
  0x1b   :  { %v979_v23 = vld [vmem:[#allocation2 + $0x88] sm:$0xff]   ;;  %v983_v28 = vld [vmem:[%s1199_s0 + $0x30] ss:$12 sps:$4 sm:$0xff]   ;;  %v987_v31 = vld [vmem:[%s1199_s0 + $0x38] ss:$12 sps:$4 sm:$0xff]  }
  0x1c   :  { %841 = vmatpush3.bf16.msra.mxu0 %v955_v5  ;;  %940 = vmatpush3.bf16.msra.mxu1 %v955_v5  ;;  %v982_v27 = vld [vmem:[%s1199_s0 + $0x8] ss:$12 sps:$4 sm:$0xff]   ;;  %v984_v29 = vld [vmem:[%s1199_s0 + $0x20] ss:$12 sps:$4 sm:$0xff]   ;;  %v989_v33 = vld [vmem:[%s1199_s0 + $0x50] ss:$12 sps:$4 sm:$0xff]  }
  0x1d   :  { %842 = vmatprep.subr.bf16.mxu0 %v956_v6  ;;  %933 = vmatprep.subr.bf16.mxu1 %v956_v6  ;;  %v985_v30 = vld [vmem:[%s1199_s0 + $0x4c] ss:$12 sps:$4 sm:$0xff]   ;;  %v988_v32 = vld [vmem:[%s1199_s0 + $0x48] ss:$12 sps:$4 sm:$0xff]   ;;  %v990_v34 = vld [vmem:[%s1199_s0 + $0x64] ss:$12 sps:$4 sm:$0xff]  }
  0x1e   :  { %v992_v35 = vld [vmem:[%s1199_s0 + $0x68] ss:$12 sps:$4 sm:$0xff]   ;;  %v993_v36 = vld [vmem:[%s1199_s0 + $0x60] ss:$12 sps:$4 sm:$0xff]   ;;  %v997_v39 = vld [vmem:[%s1199_s0 + $0x98] ss:$12 sps:$4 sm:$0xff]  }
  0x1f   :  { %v994_v37 = vld [vmem:[%s1199_s0 + $0x80] ss:$12 sps:$4 sm:$0xff]   ;;  %v995_v38 = vld [vmem:[%s1199_s0 + $0x7c] ss:$12 sps:$4 sm:$0xff]   ;;  %v998_v40 = vld [vmem:[%s1199_s0 + $0x78] ss:$12 sps:$4 sm:$0xff]  }
  0x20   :  { %843 = vmatpush3.bf16.msra.mxu0 %v957_v7  ;;  %941 = vmatpush3.bf16.msra.mxu1 %v957_v7  ;;  %v999_v41 = vld [vmem:[%s1199_s0 + $0xb0] ss:$12 sps:$4 sm:$0xff]  }
  0x21   :  { %844 = vmatprep.subr.bf16.mxu0 %v958_v8  ;;  %934 = vmatprep.subr.bf16.mxu1 %v958_v8 }
  0x24   :  { %845 = vmatpush3.bf16.msra.mxu0 %v959_v9  ;;  %942 = vmatpush3.bf16.msra.mxu1 %v959_v9 }
  0x25   :  { %846 = vmatprep.subr.bf16.mxu0 %v960_v10  ;;  %935 = vmatprep.subr.bf16.mxu1 %v960_v10 }
  0x28   :  { %847 = vmatpush3.bf16.msra.mxu0 %v961_v13  ;;  %943 = vmatpush3.bf16.msra.mxu1 %v961_v13 }
  0x29   :  { %848 = vmatprep.subr.bf16.mxu0 %v962_v14  ;;  %936 = vmatprep.subr.bf16.mxu1 %v962_v14 }
  0x2c   :  { %849 = vmatpush3.bf16.msra.mxu0 %v963_v15  ;;  %944 = vmatpush3.bf16.msra.mxu1 %v963_v15 }
  0x2d   :  { %850 = vmatprep.subr.bf16.mxu0 %v964_v16  ;;  %937 = vmatprep.subr.bf16.mxu1 %v964_v16 }
  0x30   :  { %851 = vmatpush3.bf16.msra.mxu0 %v965_v17  ;;  %945 = vmatpush3.bf16.msra.mxu1 %v965_v17 }
  0x31   :  { %910 = vmatprep.subr.bf16.mxu1 %v972_v19 }
  0x33   :  { %389 = vmatmul.mubr.bf16.vlgmr.msra.gmra.mrb[0].mxu0 %v966_v18  ;;  %437 = vmatmul.mubr.bf16.vlgmr.msra.gmra.mrb[0].mxu1 %v969_v20 }
  0x34   :  { %911 = vmatpush3.bf16.msra.mxu1 %v972_v19  ;;  %396 = vmatprep.mubr.bf16.mxu0 %v973_v21 }
  0x35   :  { %444 = vmatprep.mubr.bf16.mxu1 %v975_v22  ;;  %912 = vmatprep.subr.bf16.mxu1 %v979_v23 }
  0x38   :  { %913 = vmatpush3.bf16.msra.mxu1 %v979_v23 }
  0x3b   :  { %397 = vmatmul.mubr.bf16.gmra.mrb[4].mxu0 %v977_v24  ;;  %445 = vmatmul.mubr.bf16.gmra.mrb[4].mxu1 %v978_v25 }
  0x3c   :  { %404 = vmatprep.mubr.bf16.mxu0 %v980_v26  ;;  %914 = vmatprep.mubr.msk.bf16.mxu1 %vm331_vm0, %v982_v27 }
  0x43   :  { %405 = vmatmul.mubr.bf16.gmra.mrb[8].mxu0 %v983_v28  ;;  %915 = vmatmul.mubr.msk.bf16.vlgmr.msra.gmra.mrb[8].mxu1 %vm331_vm0, %v984_v29 }
  0x44   :  { %412 = vmatprep.mubr.bf16.mxu0 %v985_v30  ;;  %918 = vmatprep.mubr.msk.bf16.mxu1 %vm331_vm0, %v987_v31 }
  0x4b   :  { %413 = vmatmul.mubr.bf16.gmra.mrb[12].mxu0 %v988_v32  ;;  %919 = vmatmul.mubr.msk.bf16.gmra.mrb[12].mxu1 %vm331_vm0, %v989_v33 }
  0x4c   :  { %420 = vmatprep.mubr.bf16.mxu0 %v990_v34  ;;  %922 = vmatprep.mubr.msk.bf16.mxu1 %vm331_vm0, %v992_v35 }
  0x53   :  { %421 = vmatmul.mubr.bf16.gmra.mrb[16].mxu0 %v993_v36  ;;  %923 = vmatmul.mubr.msk.bf16.gmra.mrb[16].mxu1 %vm331_vm0, %v994_v37 }
  0x54   :  { %428 = vmatprep.mubr.bf16.mxu0 %v995_v38  ;;  %926 = vmatprep.mubr.msk.bf16.mxu1 %vm331_vm0, %v997_v39 }
  0x5b   :  { %429 = vmatmul.mubr.bf16.gmra.mrb[20].mxu0 %v998_v40  ;;  %927 = vmatmul.mubr.msk.bf16.gmra.mrb[20].mxu1 %vm331_vm0, %v999_v41 }
 0x106   :  { %v852_v43 = vpop.f32.mrb[0].mxu0  ;;  %v888_v44 = vpop.f32.mrb[0].mxu1 }
 0x107   :  { %v853_v45 = vpop.f32.mrb[1].mxu0  ;;  %v889_v46 = vpop.f32.mrb[1].mxu1 }
 0x108   :  { %v854_v47 = vadd.f32 %v853_v45, %v852_v43  ;;  %v855_v48 = vpop.f32.mrb[2].mxu0  ;;  %v1151_v49 = vadd.f32 %v889_v46, %v888_v44  ;;  %v891_v50 = vpop.f32.mrb[2].mxu1 }
 0x109   :  { %v856_v51 = vpop.f32.mrb[3].mxu0  ;;  %v892_v52 = vpop.f32.mrb[3].mxu1 }
 0x10a   :  { %v857_v53 = vadd.f32 %v856_v51, %v855_v48  ;;  %v1153_v54 = vadd.f32 %v892_v52, %v891_v50 }
 0x10e   :  { %v858_v55 = vpop.f32.mrb[4].mxu0  ;;  %v894_v56 = vpop.f32.mrb[4].mxu1 }
 0x10f   :  { %v859_v57 = vpop.f32.mrb[5].mxu0  ;;  %v895_v58 = vpop.f32.mrb[5].mxu1 }
 0x110   :  { %v860_v59 = vadd.f32 %v859_v57, %v858_v55  ;;  %v861_v60 = vpop.f32.mrb[6].mxu0  ;;  %v1155_v61 = vadd.f32 %v895_v58, %v894_v56  ;;  %v897_v62 = vpop.f32.mrb[6].mxu1 }
 0x111   :  { %v862_v63 = vpop.f32.mrb[7].mxu0  ;;  %v898_v0 = vpop.f32.mrb[7].mxu1 }
 0x112   :  { %v863_v1 = vadd.f32 %v862_v63, %v861_v60  ;;  %v1157_v2 = vadd.f32 %v898_v0, %v897_v62 }
 0x116   :  { %v864_v3 = vpop.f32.mrb[8].mxu0  ;;  %v916_v4 = vpop.f32.mrb[8].mxu1 }
 0x117   :  { %v496_v5 = vadd.f32 %v916_v4, %v860_v59  ;;  %v865_v6 = vpop.f32.mrb[9].mxu0  ;;  %v487_v7 = vpop.f32.mrb[9].mxu1 }
 0x118   :  { %v866_v8 = vadd.f32 %v865_v6, %v864_v3  ;;  %v488_v9 = vadd.f32 %v854_v47, %v487_v7  ;;  %v867_v10 = vpop.f32.mrb[10].mxu0  ;;  %v917_v11 = vpop.f32.mrb[10].mxu1 }
 0x119   :  { %v499_v12 = vadd.f32 %v917_v11, %v863_v1  ;;  %v868_v13 = vpop.f32.mrb[11].mxu0  ;;  %v490_v14 = vpop.f32.mrb[11].mxu1  ;;  %v657_v22 = vmul.f32 %v496_v5, %v496_v5 }
 0x11a   :  { %v869_v15 = vadd.f32 %v868_v13, %v867_v10  ;;  %v491_v16 = vadd.f32 %v857_v53, %v490_v14  ;;  %v655_v18 = vmul.f32 %v488_v9, %v488_v9 }
 0x11b   :  { %v797_v17 = vpack.c.bf16 %v499_v12, %v496_v5  ;;  %v658_v27 = vmul.f32 %v499_v12, %v499_v12 }
 0x11c   :  { %v792_v19 = vpack.c.bf16 %v491_v16, %v488_v9  ;;  %v631_v20 = vadd.f32 %v491_v16, %v488_v9  ;;  %v656_v21 = vmul.f32 %v491_v16, %v491_v16 }
 0x11d   :  { %829 = vst [vmem:[%s1201_s2 + $0x8] sm:$0xff] %v797_v17  }
 0x11e   :  { %793 = vst [vmem:[%s1201_s2] sm:$0xff] %v792_v19   ;;  %v632_v23 = vadd.f32 %v631_v20, %v496_v5  ;;  %v671_v24 = vadd.f32 %v656_v21, %v655_v18  ;;  %v870_v25 = vpop.f32.mrb[12].mxu0  ;;  %v920_v26 = vpop.f32.mrb[12].mxu1 }
 0x11f   :  { %v871_v28 = vpop.f32.mrb[13].mxu0  ;;  %v503_v29 = vpop.f32.mrb[13].mxu1 }
 0x120   :  { %v672_v30 = vadd.f32 %v671_v24, %v657_v22  ;;  %v872_v31 = vadd.f32 %v871_v28, %v870_v25  ;;  %v504_v32 = vadd.f32 %v866_v8, %v503_v29  ;;  %v633_v33 = vadd.f32 %v632_v23, %v499_v12  ;;  %v873_v34 = vpop.f32.mrb[14].mxu0  ;;  %v921_v35 = vpop.f32.mrb[14].mxu1 }
 0x121   :  { %v874_v36 = vpop.f32.mrb[15].mxu0  ;;  %v506_v37 = vpop.f32.mrb[15].mxu1 }
 0x122   :  { %v512_v38 = vadd.f32 %v920_v26, %v872_v31  ;;  %v634_v39 = vadd.f32 %v633_v33, %v504_v32  ;;  %v659_v40 = vmul.f32 %v504_v32, %v504_v32  ;;  %v673_v41 = vadd.f32 %v672_v30, %v658_v27 }
 0x123   :  { %v875_v42 = vadd.f32 %v874_v36, %v873_v34  ;;  %v507_v43 = vadd.f32 %v869_v15, %v506_v37 }
 0x124   :  { %v674_v44 = vadd.f32 %v673_v41, %v659_v40  ;;  %v661_v52 = vmul.f32 %v512_v38, %v512_v38 }
 0x125   :  { %v515_v45 = vadd.f32 %v921_v35, %v875_v42  ;;  %v802_v46 = vpack.c.bf16 %v507_v43, %v504_v32  ;;  %v635_v47 = vadd.f32 %v634_v39, %v507_v43  ;;  %v660_v48 = vmul.f32 %v507_v43, %v507_v43 }
 0x126   :  { %v876_v50 = vpop.f32.mrb[16].mxu0  ;;  %v924_v51 = vpop.f32.mrb[16].mxu1 }
 0x127   :  { %v807_v53 = vpack.c.bf16 %v515_v45, %v512_v38  ;;  %830 = vst [vmem:[%s1201_s2 + $0x10] sm:$0xff] %v802_v46   ;;  %v636_v55 = vadd.f32 %v635_v47, %v512_v38  ;;  %v675_v56 = vadd.f32 %v674_v44, %v660_v48  ;;  %v877_v57 = vpop.f32.mrb[17].mxu0  ;;  %v519_v58 = vpop.f32.mrb[17].mxu1  ;;  %v662_v63 = vmul.f32 %v515_v45, %v515_v45 }
 0x128   :  { %v878_v59 = vadd.f32 %v877_v57, %v876_v50  ;;  %v879_v60 = vpop.f32.mrb[18].mxu0  ;;  %v925_v62 = vpop.f32.mrb[18].mxu1 }
 0x129   :  { %831 = vst [vmem:[%s1201_s2 + $0x18] sm:$0xff] %v807_v53   ;;  %v676_v0 = vadd.f32 %v675_v56, %v661_v52  ;;  %v880_v1 = vpop.f32.mrb[19].mxu0  ;;  %v637_v3 = vadd.f32 %v636_v55, %v515_v45  ;;  %v522_v4 = vpop.f32.mrb[19].mxu1 }
 0x12a   :  { %v881_v5 = vadd.f32 %v880_v1, %v879_v60  ;;  %v520_v6 = vadd.f32 %v878_v59, %v519_v58  ;;  %v630_v60 = vld [vmem:[%s1202_s3] sm:$0x1] }
 0x12b   :  { %v677_v7 = vadd.f32 %v676_v0, %v662_v63  ;;  %v654_v0 = vld [vmem:[%s1203_s4] sm:$0x1] }
 0x12c   :  { %v638_v8 = vadd.f32 %v637_v3, %v520_v6  ;;  %v663_v9 = vmul.f32 %v520_v6, %v520_v6  ;;  %v523_v10 = vadd.f32 %v881_v5, %v522_v4 }
 0x12e   :  { %v678_v11 = vadd.f32 %v677_v7, %v663_v9  ;;  %v812_v12 = vpack.c.bf16 %v523_v10, %v520_v6  ;;  %v639_v13 = vadd.f32 %v638_v8, %v523_v10  ;;  %v664_v14 = vmul.f32 %v523_v10, %v523_v10  ;;  %v882_v15 = vpop.f32.mrb[20].mxu0  ;;  %v928_v16 = vpop.f32.mrb[20].mxu1 }
 0x12f   :  { %v544_v17 = vadd.f32 %v928_v16, %v1155_v61  ;;  %v883_v18 = vpop.f32.mrb[21].mxu0  ;;  %v535_v19 = vpop.f32.mrb[21].mxu1 }
 0x130   :  { %832 = vst [vmem:[%s1201_s2 + $0x20] sm:$0xff] %v812_v12   ;;  %v679_v20 = vadd.f32 %v678_v11, %v664_v14  ;;  %v884_v21 = vadd.f32 %v883_v18, %v882_v15  ;;  %v536_v22 = vadd.f32 %v1151_v49, %v535_v19  ;;  %v885_v23 = vpop.f32.mrb[22].mxu0  ;;  %v929_v24 = vpop.f32.mrb[22].mxu1 }
 0x131   :  { %v547_v25 = vadd.f32 %v929_v24, %v1157_v2  ;;  %v886_v26 = vpop.f32.mrb[23].mxu0  ;;  %v538_v27 = vpop.f32.mrb[23].mxu1  ;;  %v669_v42 = vmul.f32 %v544_v17, %v544_v17 }
 0x132   :  { %v528_v28 = vadd.f32 %v924_v51, %v884_v21  ;;  %v887_v29 = vadd.f32 %v886_v26, %v885_v23  ;;  %v539_v61 = vadd.f32 %v1153_v54, %v538_v27  ;;  %v667_v2 = vmul.f32 %v536_v22, %v536_v22 }
 0x133   :  { %v827_v30 = vpack.c.bf16 %v547_v25, %v544_v17  ;;  %v670_v45 = vmul.f32 %v547_v25, %v547_v25 }
 0x134   :  { %v640_v31 = vadd.f32 %v639_v13, %v528_v28  ;;  %v665_v32 = vmul.f32 %v528_v28, %v528_v28  ;;  %v531_v33 = vadd.f32 %v925_v62, %v887_v29  ;;  %v822_v34 = vpack.c.bf16 %v539_v61, %v536_v22 }
 0x135   :  { %835 = vst [vmem:[%s1201_s2 + $0x38] sm:$0xff] %v827_v30   ;;  %v668_v40 = vmul.f32 %v539_v61, %v539_v61 }
 0x136   :  { %v680_v49 = vadd.f32 %v679_v20, %v665_v32  ;;  %v817_v35 = vpack.c.bf16 %v531_v33, %v528_v28  ;;  %v641_v36 = vadd.f32 %v640_v31, %v531_v33  ;;  %v666_v37 = vmul.f32 %v531_v33, %v531_v33  ;;  %834 = vst [vmem:[%s1201_s2 + $0x30] sm:$0xff] %v822_v34  }
 0x138   :  { %833 = vst [vmem:[%s1201_s2 + $0x28] sm:$0xff] %v817_v35   ;;  %v681_v54 = vadd.f32 %v680_v49, %v666_v37  ;;  %v642_v38 = vadd.f32 %v641_v36, %v536_v22 }
 0x13a   :  { %v643_v39 = vadd.f32 %v642_v38, %v539_v61  ;;  %v682_v41 = vadd.f32 %v681_v54, %v667_v2 }
 0x13c   :  { %v644_v43 = vadd.f32 %v643_v39, %v544_v17  ;;  %v683_v44 = vadd.f32 %v682_v41, %v668_v40 }
 0x13e   :  { %v645_v46 = vadd.f32 %v644_v43, %v547_v25  ;;  %v684_v47 = vadd.f32 %v683_v44, %v669_v42 }
 0x140   :  { %v646_v48 = vrot.slane %v645_v46, 4  ;;  %v685_v50 = vadd.f32 %v684_v47, %v670_v45 }
 0x142   :  { %v647_v51 = vadd.f32 %v646_v48, %v645_v46  ;;  %v686_v52 = vrot.slane %v685_v50, 4 }
 0x144   :  { %v648_v53 = vrot.slane %v647_v51, 2  ;;  %v687_v55 = vadd.f32 %v686_v52, %v685_v50 }
 0x146   :  { %v649_v56 = vadd.f32 %v648_v53, %v647_v51  ;;  %v688_v57 = vrot.slane %v687_v55, 2 }
 0x148   :  { %v650_v58 = vrot.slane %v649_v56, 1  ;;  %v689_v59 = vadd.f32 %v688_v57, %v687_v55 }
 0x14a   :  { %v651_v62 = vadd.f32 %v650_v58, %v649_v56  ;;  %v690_v63 = vrot.slane %v689_v59, 1 }
 0x14c   :  { %v652_v1 = vadd.f32 %v651_v62, %v630_v60  ;;  %v691_v3 = vadd.f32 %v690_v63, %v689_v59 }
 0x14e   :  { %653 = vst [vmem:[%s1202_s3] sm:$0x1] %v652_v1  ;;  %v692_v4 = vadd.f32 %v691_v3, %v654_v0 }
 0x150   :  { %693 = vst [vmem:[%s1203_s4] sm:$0x1] %v692_v4 }
 0x151   :  { %706 = vsyncpa [#allocation3], 1 }

// kernel: generator_forward.14
= control target key start
LH: loop header
LB: loop body
LE: loop exit
PB: predicated region body
PF: predicated region fallthrough
CT: control target
= control target key end

     0   :  { %s422_s0 = inlined_call_operand.vmem [shape: bf16[128,128], index: 0, kind: input, shape index: {}]   ;;  %s423_s1 = inlined_call_operand.vmem [shape: f32[1,128], index: 1, kind: input, shape index: {}]   ;;  %s424_s2 = inlined_call_operand.vmem [shape: f32[1,128], index: 2, kind: input, shape index: {}]   ;;  %s425_s3 = inlined_call_operand.vmem [shape: bf16[128,128], index: 3, kind: output, shape index: {}]  }
   0x1   :  { %v227_v0 = vld [vmem:[%s422_s0] sm:$0xff]   ;;  %v298_v4 = vld [vmem:[%s422_s0 + $0x8] sm:$0xff]   ;;  %v299_v5 = vld [vmem:[%s422_s0 + $0x10] sm:$0xff]  }
   0x2   :  { %v338_v1 = vld [vmem:[%s423_s1] ss:$0 sm:$0xff]  ;;  %v228_v2 = vunpack.c.l.bf16 %v227_v0  ;;  %v229_v3 = vunpack.c.h.bf16 %v227_v0  ;;  %v300_v6 = vld [vmem:[%s422_s0 + $0x18] sm:$0xff]   ;;  %v232_v8 = vunpack.c.l.bf16 %v298_v4  ;;  %v233_v9 = vunpack.c.h.bf16 %v298_v4  ;;  %v302_v33 = vld [vmem:[%s422_s0 + $0x28] sm:$0xff]  }
   0x3   :  { %v352_v7 = vld [vmem:[%s424_s2] ss:$0 sm:$0xff]  ;;  %v236_v10 = vunpack.c.l.bf16 %v299_v5  ;;  %v237_v11 = vunpack.c.h.bf16 %v299_v5  ;;  %v240_v14 = vunpack.c.l.bf16 %v300_v6  ;;  %v241_v15 = vunpack.c.h.bf16 %v300_v6  ;;  %v303_v38 = vld [vmem:[%s422_s0 + $0x30] sm:$0xff]   ;;  %v304_v43 = vld [vmem:[%s422_s0 + $0x38] sm:$0xff]  }
   0x4   :  { %v53_v12 = vmul.f32 %v228_v2, %v338_v1  ;;  %v54_v13 = vmul.f32 %v229_v3, %v338_v1  ;;  %v55_v16 = vmul.f32 %v232_v8, %v338_v1  ;;  %v56_v17 = vmul.f32 %v233_v9, %v338_v1  ;;  %v301_v28 = vld [vmem:[%s422_s0 + $0x20] sm:$0xff]  }
   0x5   :  { %v57_v18 = vmul.f32 %v236_v10, %v338_v1  ;;  %v58_v19 = vmul.f32 %v237_v11, %v338_v1  ;;  %v59_v22 = vmul.f32 %v240_v14, %v338_v1  ;;  %v60_v23 = vmul.f32 %v241_v15, %v338_v1 }
   0x6   :  { %v76_v20 = vadd.f32 %v352_v7, %v53_v12  ;;  %v77_v21 = vadd.f32 %v352_v7, %v54_v13  ;;  %v78_v24 = vadd.f32 %v352_v7, %v55_v16  ;;  %v79_v25 = vadd.f32 %v352_v7, %v56_v17 }
   0x7   :  { %v80_v26 = vadd.f32 %v352_v7, %v57_v18  ;;  %v81_v27 = vadd.f32 %v352_v7, %v58_v19  ;;  %v82_v31 = vadd.f32 %v352_v7, %v59_v22  ;;  %v83_v32 = vadd.f32 %v352_v7, %v60_v23 }
   0x8   :  { %v92_v29 = vmax.f32 %v76_v20, 0.0  ;;  %v93_v30 = vmax.f32 %v77_v21, 0.0  ;;  %v94_v34 = vmax.f32 %v78_v24, 0.0  ;;  %v95_v35 = vmax.f32 %v79_v25, 0.0 }
   0x9   :  { %v96_v36 = vmax.f32 %v80_v26, 0.0  ;;  %v97_v37 = vmax.f32 %v81_v27, 0.0  ;;  %v98_v40 = vmax.f32 %v82_v31, 0.0  ;;  %v99_v41 = vmax.f32 %v83_v32, 0.0 }
   0xa   :  { %v261_v39 = vpack.c.bf16 %v93_v30, %v92_v29  ;;  %v244_v42 = vunpack.c.l.bf16 %v301_v28  ;;  %v266_v44 = vpack.c.bf16 %v95_v35, %v94_v34  ;;  %v245_v46 = vunpack.c.h.bf16 %v301_v28 }
   0xb   :  { %v271_v45 = vpack.c.bf16 %v97_v37, %v96_v36  ;;  %v248_v47 = vunpack.c.l.bf16 %v302_v33  ;;  %v276_v48 = vpack.c.bf16 %v99_v41, %v98_v40  ;;  %v249_v50 = vunpack.c.h.bf16 %v302_v33 }
   0xc   :  { %262 = vst [vmem:[%s425_s3] sm:$0xff] %v261_v39   ;;  %v61_v49 = vmul.f32 %v244_v42, %v338_v1  ;;  %v252_v51 = vunpack.c.l.bf16 %v303_v38  ;;  %305 = vst [vmem:[%s425_s3 + $0x8] sm:$0xff] %v266_v44   ;;  %v62_v52 = vmul.f32 %v245_v46, %v338_v1  ;;  %v253_v54 = vunpack.c.h.bf16 %v303_v38 }
   0xd   :  { %306 = vst [vmem:[%s425_s3 + $0x10] sm:$0xff] %v271_v45   ;;  %v63_v53 = vmul.f32 %v248_v47, %v338_v1  ;;  %v256_v55 = vunpack.c.l.bf16 %v304_v43  ;;  %307 = vst [vmem:[%s425_s3 + $0x18] sm:$0xff] %v276_v48   ;;  %v64_v57 = vmul.f32 %v249_v50, %v338_v1  ;;  %v257_v59 = vunpack.c.h.bf16 %v304_v43 }
   0xe   :  { %v84_v56 = vadd.f32 %v352_v7, %v61_v49  ;;  %v65_v58 = vmul.f32 %v252_v51, %v338_v1  ;;  %v85_v60 = vadd.f32 %v352_v7, %v62_v52  ;;  %v66_v62 = vmul.f32 %v253_v54, %v338_v1 }
   0xf   :  { %v86_v61 = vadd.f32 %v352_v7, %v63_v53  ;;  %v67_v63 = vmul.f32 %v256_v55, %v338_v1  ;;  %v87_v2 = vadd.f32 %v352_v7, %v64_v57  ;;  %v68_v4 = vmul.f32 %v257_v59, %v338_v1 }
  0x10   :  { %v100_v0 = vmax.f32 %v84_v56, 0.0  ;;  %v88_v3 = vadd.f32 %v352_v7, %v65_v58  ;;  %v101_v5 = vmax.f32 %v85_v60, 0.0  ;;  %v89_v8 = vadd.f32 %v352_v7, %v66_v62 }
  0x11   :  { %v102_v6 = vmax.f32 %v86_v61, 0.0  ;;  %v90_v9 = vadd.f32 %v352_v7, %v67_v63  ;;  %v103_v10 = vmax.f32 %v87_v2, 0.0  ;;  %v91_v12 = vadd.f32 %v352_v7, %v68_v4 }
  0x12   :  { %v104_v11 = vmax.f32 %v88_v3, 0.0  ;;  %v281_v13 = vpack.c.bf16 %v101_v5, %v100_v0  ;;  %v105_v14 = vmax.f32 %v89_v8, 0.0 }
  0x13   :  { %v106_v15 = vmax.f32 %v90_v9, 0.0  ;;  %v286_v16 = vpack.c.bf16 %v103_v10, %v102_v6  ;;  %v107_v17 = vmax.f32 %v91_v12, 0.0 }
  0x14   :  { %308 = vst [vmem:[%s425_s3 + $0x20] sm:$0xff] %v281_v13   ;;  %v291_v1 = vpack.c.bf16 %v105_v14, %v104_v11 }
  0x15   :  { %309 = vst [vmem:[%s425_s3 + $0x28] sm:$0xff] %v286_v16   ;;  %v296_v18 = vpack.c.bf16 %v107_v17, %v106_v15 }
  0x16   :  { %310 = vst [vmem:[%s425_s3 + $0x30] sm:$0xff] %v291_v1  }
  0x17   :  { %311 = vst [vmem:[%s425_s3 + $0x38] sm:$0xff] %v296_v18  }

// kernel: generator_forward.16
= control target key start
LH: loop header
LB: loop body
LE: loop exit
PB: predicated region body
PF: predicated region fallthrough
CT: control target
= control target key end

     0   :  { %s1502_s0 = inlined_call_operand.vmem [shape: bf16[512,128], index: 0, kind: input, shape index: {}]   ;;  %s1503_s1 = inlined_call_operand.vmem [shape: f32[1,128], index: 1, kind: input, shape index: {}]   ;;  %s1504_s2 = inlined_call_operand.vmem [shape: f32[1,128], index: 2, kind: input, shape index: {}]   ;;  %s1505_s3 = inlined_call_operand.vmem [shape: bf16[512,128], index: 3, kind: output, shape index: {}]  }
   0x1   :  { %v803_v0 = vld [vmem:[%s1502_s0] sm:$0xff]   ;;  %v1090_v4 = vld [vmem:[%s1502_s0 + $0x8] sm:$0xff]   ;;  %v1091_v5 = vld [vmem:[%s1502_s0 + $0x10] sm:$0xff]  }
   0x2   :  { %v1178_v1 = vld [vmem:[%s1503_s1] ss:$0 sm:$0xff]  ;;  %v804_v2 = vunpack.c.l.bf16 %v803_v0  ;;  %v805_v3 = vunpack.c.h.bf16 %v803_v0  ;;  %v1092_v6 = vld [vmem:[%s1502_s0 + $0x18] sm:$0xff]   ;;  %v808_v8 = vunpack.c.l.bf16 %v1090_v4  ;;  %v809_v9 = vunpack.c.h.bf16 %v1090_v4  ;;  %v1094_v33 = vld [vmem:[%s1502_s0 + $0x28] sm:$0xff]  }
   0x3   :  { %v1192_v7 = vld [vmem:[%s1504_s2] ss:$0 sm:$0xff]  ;;  %v812_v10 = vunpack.c.l.bf16 %v1091_v5  ;;  %v813_v11 = vunpack.c.h.bf16 %v1091_v5  ;;  %v816_v14 = vunpack.c.l.bf16 %v1092_v6  ;;  %v817_v15 = vunpack.c.h.bf16 %v1092_v6  ;;  %v1095_v38 = vld [vmem:[%s1502_s0 + $0x30] sm:$0xff]   ;;  %v1096_v43 = vld [vmem:[%s1502_s0 + $0x38] sm:$0xff]  }
   0x4   :  { %v149_v12 = vmul.f32 %v804_v2, %v1178_v1  ;;  %v150_v13 = vmul.f32 %v805_v3, %v1178_v1  ;;  %v151_v16 = vmul.f32 %v808_v8, %v1178_v1  ;;  %v152_v17 = vmul.f32 %v809_v9, %v1178_v1  ;;  %v1093_v28 = vld [vmem:[%s1502_s0 + $0x20] sm:$0xff]  }
   0x5   :  { %v153_v18 = vmul.f32 %v812_v10, %v1178_v1  ;;  %v154_v19 = vmul.f32 %v813_v11, %v1178_v1  ;;  %v155_v22 = vmul.f32 %v816_v14, %v1178_v1  ;;  %v156_v23 = vmul.f32 %v817_v15, %v1178_v1  ;;  %v1097_v0 = vld [vmem:[%s1502_s0 + $0x40] sm:$0xff]   ;;  %v1098_v11 = vld [vmem:[%s1502_s0 + $0x48] sm:$0xff]  }
   0x6   :  { %v220_v20 = vadd.f32 %v1192_v7, %v149_v12  ;;  %v221_v21 = vadd.f32 %v1192_v7, %v150_v13  ;;  %v222_v24 = vadd.f32 %v1192_v7, %v151_v16  ;;  %v223_v25 = vadd.f32 %v1192_v7, %v152_v17  ;;  %v1099_v16 = vld [vmem:[%s1502_s0 + $0x50] sm:$0xff]  }
   0x7   :  { %v224_v26 = vadd.f32 %v1192_v7, %v153_v18  ;;  %v225_v27 = vadd.f32 %v1192_v7, %v154_v19  ;;  %v226_v31 = vadd.f32 %v1192_v7, %v155_v22  ;;  %v227_v32 = vadd.f32 %v1192_v7, %v156_v23 }
   0x8   :  { %v284_v29 = vmax.f32 %v220_v20, 0.0  ;;  %v285_v30 = vmax.f32 %v221_v21, 0.0  ;;  %v286_v34 = vmax.f32 %v222_v24, 0.0  ;;  %v287_v35 = vmax.f32 %v223_v25, 0.0  ;;  %v1100_v25 = vld [vmem:[%s1502_s0 + $0x58] sm:$0xff]  }
   0x9   :  { %v288_v36 = vmax.f32 %v224_v26, 0.0  ;;  %v289_v37 = vmax.f32 %v225_v27, 0.0  ;;  %v290_v40 = vmax.f32 %v226_v31, 0.0  ;;  %v291_v41 = vmax.f32 %v227_v32, 0.0 }
   0xa   :  { %v933_v39 = vpack.c.bf16 %v285_v30, %v284_v29  ;;  %v820_v42 = vunpack.c.l.bf16 %v1093_v28  ;;  %v938_v44 = vpack.c.bf16 %v287_v35, %v286_v34  ;;  %v821_v46 = vunpack.c.h.bf16 %v1093_v28 }
   0xb   :  { %v943_v45 = vpack.c.bf16 %v289_v37, %v288_v36  ;;  %v824_v47 = vunpack.c.l.bf16 %v1094_v33  ;;  %v948_v48 = vpack.c.bf16 %v291_v41, %v290_v40  ;;  %v825_v50 = vunpack.c.h.bf16 %v1094_v33 }
   0xc   :  { %934 = vst [vmem:[%s1505_s3] sm:$0xff] %v933_v39   ;;  %v157_v49 = vmul.f32 %v820_v42, %v1178_v1  ;;  %v828_v51 = vunpack.c.l.bf16 %v1095_v38  ;;  %1121 = vst [vmem:[%s1505_s3 + $0x8] sm:$0xff] %v938_v44   ;;  %v158_v52 = vmul.f32 %v821_v46, %v1178_v1  ;;  %v829_v54 = vunpack.c.h.bf16 %v1095_v38  ;;  %v1101_v38 = vld [vmem:[%s1502_s0 + $0x60] sm:$0xff]  }
   0xd   :  { %1122 = vst [vmem:[%s1505_s3 + $0x10] sm:$0xff] %v943_v45   ;;  %v159_v53 = vmul.f32 %v824_v47, %v1178_v1  ;;  %v832_v55 = vunpack.c.l.bf16 %v1096_v43  ;;  %1123 = vst [vmem:[%s1505_s3 + $0x18] sm:$0xff] %v948_v48   ;;  %v160_v57 = vmul.f32 %v825_v50, %v1178_v1  ;;  %v833_v59 = vunpack.c.h.bf16 %v1096_v43 }
   0xe   :  { %v228_v56 = vadd.f32 %v1192_v7, %v157_v49  ;;  %v161_v58 = vmul.f32 %v828_v51, %v1178_v1  ;;  %v229_v60 = vadd.f32 %v1192_v7, %v158_v52  ;;  %v162_v62 = vmul.f32 %v829_v54, %v1178_v1  ;;  %v1102_v51 = vld [vmem:[%s1502_s0 + $0x68] sm:$0xff]  }
   0xf   :  { %v230_v61 = vadd.f32 %v1192_v7, %v159_v53  ;;  %v163_v63 = vmul.f32 %v832_v55, %v1178_v1  ;;  %v231_v3 = vadd.f32 %v1192_v7, %v160_v57  ;;  %v164_v5 = vmul.f32 %v833_v59, %v1178_v1 }
  0x10   :  { %v292_v2 = vmax.f32 %v228_v56, 0.0  ;;  %v232_v4 = vadd.f32 %v1192_v7, %v161_v58  ;;  %v293_v6 = vmax.f32 %v229_v60, 0.0  ;;  %v233_v9 = vadd.f32 %v1192_v7, %v162_v62  ;;  %v1103_v60 = vld [vmem:[%s1502_s0 + $0x70] sm:$0xff]  }
  0x11   :  { %v294_v8 = vmax.f32 %v230_v61, 0.0  ;;  %v234_v10 = vadd.f32 %v1192_v7, %v163_v63  ;;  %v295_v12 = vmax.f32 %v231_v3, 0.0  ;;  %v235_v14 = vadd.f32 %v1192_v7, %v164_v5 }
  0x12   :  { %v296_v13 = vmax.f32 %v232_v4, 0.0  ;;  %v836_v15 = vunpack.c.l.bf16 %v1097_v0  ;;  %v953_v17 = vpack.c.bf16 %v293_v6, %v292_v2  ;;  %v297_v18 = vmax.f32 %v233_v9, 0.0  ;;  %v1104_v2 = vld [vmem:[%s1502_s0 + $0x78] sm:$0xff]  }
  0x13   :  { %v298_v19 = vmax.f32 %v234_v10, 0.0  ;;  %v837_v20 = vunpack.c.h.bf16 %v1097_v0  ;;  %v958_v21 = vpack.c.bf16 %v295_v12, %v294_v8  ;;  %v299_v22 = vmax.f32 %v235_v14, 0.0  ;;  %v1105_v12 = vld [vmem:[%s1502_s0 + $0x80] sm:$0xff]  }
  0x14   :  { %v165_v23 = vmul.f32 %v836_v15, %v1178_v1  ;;  %v840_v24 = vunpack.c.l.bf16 %v1098_v11  ;;  %1124 = vst [vmem:[%s1505_s3 + $0x20] sm:$0xff] %v953_v17   ;;  %v963_v26 = vpack.c.bf16 %v297_v18, %v296_v13  ;;  %v841_v28 = vunpack.c.h.bf16 %v1098_v11 }
  0x15   :  { %v166_v27 = vmul.f32 %v837_v20, %v1178_v1  ;;  %v844_v29 = vunpack.c.l.bf16 %v1099_v16  ;;  %1125 = vst [vmem:[%s1505_s3 + $0x28] sm:$0xff] %v958_v21   ;;  %v968_v30 = vpack.c.bf16 %v299_v22, %v298_v19  ;;  %v845_v33 = vunpack.c.h.bf16 %v1099_v16 }
  0x16   :  { %v236_v31 = vadd.f32 %v1192_v7, %v165_v23  ;;  %v167_v32 = vmul.f32 %v840_v24, %v1178_v1  ;;  %1126 = vst [vmem:[%s1505_s3 + $0x30] sm:$0xff] %v963_v26   ;;  %v168_v35 = vmul.f32 %v841_v28, %v1178_v1  ;;  %v848_v37 = vunpack.c.l.bf16 %v1100_v25 }
  0x17   :  { %v237_v34 = vadd.f32 %v1192_v7, %v166_v27  ;;  %v169_v36 = vmul.f32 %v844_v29, %v1178_v1  ;;  %1127 = vst [vmem:[%s1505_s3 + $0x38] sm:$0xff] %v968_v30   ;;  %v170_v41 = vmul.f32 %v845_v33, %v1178_v1  ;;  %v849_v42 = vunpack.c.h.bf16 %v1100_v25  ;;  %v1106_v29 = vld [vmem:[%s1502_s0 + $0x88] sm:$0xff]  }
  0x18   :  { %v300_v39 = vmax.f32 %v236_v31, 0.0  ;;  %v238_v40 = vadd.f32 %v1192_v7, %v167_v32  ;;  %v239_v44 = vadd.f32 %v1192_v7, %v168_v35  ;;  %v171_v46 = vmul.f32 %v848_v37, %v1178_v1 }
  0x19   :  { %v301_v43 = vmax.f32 %v237_v34, 0.0  ;;  %v240_v45 = vadd.f32 %v1192_v7, %v169_v36  ;;  %v241_v48 = vadd.f32 %v1192_v7, %v170_v41  ;;  %v172_v49 = vmul.f32 %v849_v42, %v1178_v1  ;;  %v1107_v34 = vld [vmem:[%s1502_s0 + $0x90] sm:$0xff]  }
  0x1a   :  { %v302_v47 = vmax.f32 %v238_v40, 0.0  ;;  %v852_v50 = vunpack.c.l.bf16 %v1101_v38  ;;  %v303_v53 = vmax.f32 %v239_v44, 0.0  ;;  %v242_v55 = vadd.f32 %v1192_v7, %v171_v46 }
  0x1b   :  { %v973_v52 = vpack.c.bf16 %v301_v43, %v300_v39  ;;  %v304_v54 = vmax.f32 %v240_v45, 0.0  ;;  %v305_v56 = vmax.f32 %v241_v48, 0.0  ;;  %v243_v57 = vadd.f32 %v1192_v7, %v172_v49  ;;  %v1108_v43 = vld [vmem:[%s1502_s0 + $0x98] sm:$0xff]  }
  0x1c   :  { %v853_v58 = vunpack.c.h.bf16 %v1101_v38  ;;  %v173_v59 = vmul.f32 %v852_v50, %v1178_v1  ;;  %v978_v61 = vpack.c.bf16 %v303_v53, %v302_v47  ;;  %v306_v62 = vmax.f32 %v242_v55, 0.0 }
  0x1d   :  { %1128 = vst [vmem:[%s1505_s3 + $0x40] sm:$0xff] %v973_v52   ;;  %v856_v63 = vunpack.c.l.bf16 %v1102_v51  ;;  %v857_v0 = vunpack.c.h.bf16 %v1102_v51  ;;  %v983_v3 = vpack.c.bf16 %v305_v56, %v304_v54  ;;  %v307_v4 = vmax.f32 %v243_v57, 0.0  ;;  %v1109_v56 = vld [vmem:[%s1502_s0 + $0xa0] sm:$0xff]  }
  0x1e   :  { %v174_v5 = vmul.f32 %v853_v58, %v1178_v1  ;;  %v244_v6 = vadd.f32 %v1192_v7, %v173_v59  ;;  %1129 = vst [vmem:[%s1505_s3 + $0x48] sm:$0xff] %v978_v61   ;;  %v860_v10 = vunpack.c.l.bf16 %v1103_v60  ;;  %v861_v11 = vunpack.c.h.bf16 %v1103_v60 }
  0x1f   :  { %v175_v8 = vmul.f32 %v856_v63, %v1178_v1  ;;  %v176_v9 = vmul.f32 %v857_v0, %v1178_v1  ;;  %1130 = vst [vmem:[%s1505_s3 + $0x50] sm:$0xff] %v983_v3   ;;  %v988_v13 = vpack.c.bf16 %v307_v4, %v306_v62  ;;  %v864_v16 = vunpack.c.l.bf16 %v1104_v2 }
  0x20   :  { %v245_v14 = vadd.f32 %v1192_v7, %v174_v5  ;;  %v308_v15 = vmax.f32 %v244_v6, 0.0  ;;  %v177_v19 = vmul.f32 %v860_v10, %v1178_v1  ;;  %v178_v20 = vmul.f32 %v861_v11, %v1178_v1 }
  0x21   :  { %v246_v17 = vadd.f32 %v1192_v7, %v175_v8  ;;  %v247_v18 = vadd.f32 %v1192_v7, %v176_v9  ;;  %1131 = vst [vmem:[%s1505_s3 + $0x58] sm:$0xff] %v988_v13   ;;  %v865_v22 = vunpack.c.h.bf16 %v1104_v2  ;;  %v179_v23 = vmul.f32 %v864_v16, %v1178_v1  ;;  %v1110_v2 = vld [vmem:[%s1502_s0 + $0xa8] sm:$0xff]   ;;  %v1111_v16 = vld [vmem:[%s1502_s0 + $0xb0] sm:$0xff]  }
  0x22   :  { %v309_v21 = vmax.f32 %v245_v14, 0.0  ;;  %v868_v24 = vunpack.c.l.bf16 %v1105_v12  ;;  %v248_v27 = vadd.f32 %v1192_v7, %v177_v19  ;;  %v249_v28 = vadd.f32 %v1192_v7, %v178_v20 }
  0x23   :  { %v310_v25 = vmax.f32 %v246_v17, 0.0  ;;  %v311_v26 = vmax.f32 %v247_v18, 0.0  ;;  %v180_v31 = vmul.f32 %v865_v22, %v1178_v1  ;;  %v250_v32 = vadd.f32 %v1192_v7, %v179_v23 }
  0x24   :  { %v993_v30 = vpack.c.bf16 %v309_v21, %v308_v15  ;;  %v869_v33 = vunpack.c.h.bf16 %v1105_v12  ;;  %v312_v36 = vmax.f32 %v248_v27, 0.0  ;;  %v313_v37 = vmax.f32 %v249_v28, 0.0  ;;  %v1112_v21 = vld [vmem:[%s1502_s0 + $0xb8] sm:$0xff]  }
  0x25   :  { %v998_v35 = vpack.c.bf16 %v311_v26, %v310_v25  ;;  %v181_v38 = vmul.f32 %v868_v24, %v1178_v1  ;;  %v251_v39 = vadd.f32 %v1192_v7, %v180_v31  ;;  %v314_v40 = vmax.f32 %v250_v32, 0.0 }
  0x26   :  { %1132 = vst [vmem:[%s1505_s3 + $0x60] sm:$0xff] %v993_v30   ;;  %v182_v41 = vmul.f32 %v869_v33, %v1178_v1  ;;  %v872_v42 = vunpack.c.l.bf16 %v1106_v29  ;;  %v1003_v44 = vpack.c.bf16 %v313_v37, %v312_v36  ;;  %v873_v46 = vunpack.c.h.bf16 %v1106_v29 }
  0x27   :  { %1133 = vst [vmem:[%s1505_s3 + $0x68] sm:$0xff] %v998_v35   ;;  %v252_v45 = vadd.f32 %v1192_v7, %v181_v38  ;;  %v876_v47 = vunpack.c.l.bf16 %v1107_v34  ;;  %v315_v48 = vmax.f32 %v251_v39, 0.0  ;;  %v877_v51 = vunpack.c.h.bf16 %v1107_v34  ;;  %v1113_v34 = vld [vmem:[%s1502_s0 + $0xc0] sm:$0xff]  }
  0x28   :  { %v253_v49 = vadd.f32 %v1192_v7, %v182_v41  ;;  %v183_v50 = vmul.f32 %v872_v42, %v1178_v1  ;;  %1134 = vst [vmem:[%s1505_s3 + $0x70] sm:$0xff] %v1003_v44   ;;  %v184_v53 = vmul.f32 %v873_v46, %v1178_v1  ;;  %v880_v55 = vunpack.c.l.bf16 %v1108_v43 }
  0x29   :  { %v316_v52 = vmax.f32 %v252_v45, 0.0  ;;  %v185_v54 = vmul.f32 %v876_v47, %v1178_v1  ;;  %v1008_v57 = vpack.c.bf16 %v315_v48, %v314_v40  ;;  %v186_v60 = vmul.f32 %v877_v51, %v1178_v1  ;;  %v1114_v47 = vld [vmem:[%s1502_s0 + $0xc8] sm:$0xff]  }
  0x2a   :  { %v317_v58 = vmax.f32 %v253_v49, 0.0  ;;  %v254_v59 = vadd.f32 %v1192_v7, %v183_v50  ;;  %v255_v61 = vadd.f32 %v1192_v7, %v184_v53  ;;  %v881_v63 = vunpack.c.h.bf16 %v1108_v43 }
  0x2b   :  { %v256_v62 = vadd.f32 %v1192_v7, %v185_v54  ;;  %v187_v0 = vmul.f32 %v880_v55, %v1178_v1  ;;  %1135 = vst [vmem:[%s1505_s3 + $0x78] sm:$0xff] %v1008_v57   ;;  %v257_v5 = vadd.f32 %v1192_v7, %v186_v60  ;;  %v884_v6 = vunpack.c.l.bf16 %v1109_v56 }
  0x2c   :  { %v1013_v3 = vpack.c.bf16 %v317_v58, %v316_v52  ;;  %v318_v4 = vmax.f32 %v254_v59, 0.0  ;;  %v319_v8 = vmax.f32 %v255_v61, 0.0  ;;  %v188_v10 = vmul.f32 %v881_v63, %v1178_v1  ;;  %v1115_v52 = vld [vmem:[%s1502_s0 + $0xd0] sm:$0xff]   ;;  %v1116_v61 = vld [vmem:[%s1502_s0 + $0xd8] sm:$0xff]  }
  0x2d   :  { %v320_v9 = vmax.f32 %v256_v62, 0.0  ;;  %v258_v11 = vadd.f32 %v1192_v7, %v187_v0  ;;  %v321_v12 = vmax.f32 %v257_v5, 0.0  ;;  %v885_v13 = vunpack.c.h.bf16 %v1109_v56 }
  0x2e   :  { %1136 = vst [vmem:[%s1505_s3 + $0x80] sm:$0xff] %v1013_v3   ;;  %v189_v14 = vmul.f32 %v884_v6, %v1178_v1  ;;  %v888_v15 = vunpack.c.l.bf16 %v1110_v2  ;;  %v1018_v17 = vpack.c.bf16 %v319_v8, %v318_v4  ;;  %v259_v18 = vadd.f32 %v1192_v7, %v188_v10 }
  0x2f   :  { %v322_v19 = vmax.f32 %v258_v11, 0.0  ;;  %v889_v20 = vunpack.c.h.bf16 %v1110_v2  ;;  %v1023_v22 = vpack.c.bf16 %v321_v12, %v320_v9  ;;  %v190_v23 = vmul.f32 %v885_v13, %v1178_v1  ;;  %v1117_v12 = vld [vmem:[%s1502_s0 + $0xe0] sm:$0xff]  }
  0x30   :  { %v260_v24 = vadd.f32 %v1192_v7, %v189_v14  ;;  %v191_v25 = vmul.f32 %v888_v15, %v1178_v1  ;;  %1137 = vst [vmem:[%s1505_s3 + $0x88] sm:$0xff] %v1018_v17   ;;  %v323_v26 = vmax.f32 %v259_v18, 0.0  ;;  %v892_v28 = vunpack.c.l.bf16 %v1111_v16 }
  0x31   :  { %v192_v27 = vmul.f32 %v889_v20, %v1178_v1  ;;  %v893_v29 = vunpack.c.h.bf16 %v1111_v16  ;;  %1138 = vst [vmem:[%s1505_s3 + $0x90] sm:$0xff] %v1023_v22   ;;  %v261_v30 = vadd.f32 %v1192_v7, %v190_v23  ;;  %v896_v33 = vunpack.c.l.bf16 %v1112_v21 }
  0x32   :  { %v324_v31 = vmax.f32 %v260_v24, 0.0  ;;  %v262_v32 = vadd.f32 %v1192_v7, %v191_v25  ;;  %v1028_v35 = vpack.c.bf16 %v323_v26, %v322_v19  ;;  %v193_v37 = vmul.f32 %v892_v28, %v1178_v1 }
  0x33   :  { %v263_v36 = vadd.f32 %v1192_v7, %v192_v27  ;;  %v194_v38 = vmul.f32 %v893_v29, %v1178_v1  ;;  %v325_v39 = vmax.f32 %v261_v30, 0.0  ;;  %v897_v41 = vunpack.c.h.bf16 %v1112_v21  ;;  %v1118_v21 = vld [vmem:[%s1502_s0 + $0xe8] sm:$0xff]  }
  0x34   :  { %v326_v40 = vmax.f32 %v262_v32, 0.0  ;;  %v195_v42 = vmul.f32 %v896_v33, %v1178_v1  ;;  %1139 = vst [vmem:[%s1505_s3 + $0x98] sm:$0xff] %v1028_v35   ;;  %v264_v44 = vadd.f32 %v1192_v7, %v193_v37  ;;  %v900_v46 = vunpack.c.l.bf16 %v1113_v34 }
  0x35   :  { %v327_v43 = vmax.f32 %v263_v36, 0.0  ;;  %v265_v45 = vadd.f32 %v1192_v7, %v194_v38  ;;  %v1033_v48 = vpack.c.bf16 %v325_v39, %v324_v31  ;;  %v196_v49 = vmul.f32 %v897_v41, %v1178_v1  ;;  %v1120_v39 = vld [vmem:[%s1502_s0 + $0xf8] sm:$0xff]  }
  0x36   :  { %v266_v50 = vadd.f32 %v1192_v7, %v195_v42  ;;  %v901_v51 = vunpack.c.h.bf16 %v1113_v34  ;;  %v328_v54 = vmax.f32 %v264_v44, 0.0  ;;  %v197_v56 = vmul.f32 %v900_v46, %v1178_v1  ;;  %v1119_v34 = vld [vmem:[%s1502_s0 + $0xf0] sm:$0xff]  }
  0x37   :  { %v1038_v53 = vpack.c.bf16 %v327_v43, %v326_v40  ;;  %v329_v55 = vmax.f32 %v265_v45, 0.0  ;;  %1140 = vst [vmem:[%s1505_s3 + $0xa0] sm:$0xff] %v1033_v48   ;;  %v267_v57 = vadd.f32 %v1192_v7, %v196_v49  ;;  %v904_v60 = vunpack.c.l.bf16 %v1114_v47 }
  0x38   :  { %v330_v58 = vmax.f32 %v266_v50, 0.0  ;;  %v198_v59 = vmul.f32 %v901_v51, %v1178_v1  ;;  %v268_v63 = vadd.f32 %v1192_v7, %v197_v56  ;;  %v905_v0 = vunpack.c.h.bf16 %v1114_v47 }
  0x39   :  { %1141 = vst [vmem:[%s1505_s3 + $0xa8] sm:$0xff] %v1038_v53   ;;  %v1043_v62 = vpack.c.bf16 %v329_v55, %v328_v54  ;;  %v908_v2 = vunpack.c.l.bf16 %v1115_v52  ;;  %v331_v3 = vmax.f32 %v267_v57, 0.0  ;;  %v199_v5 = vmul.f32 %v904_v60, %v1178_v1 }
  0x3a   :  { %v269_v4 = vadd.f32 %v1192_v7, %v198_v59  ;;  %v909_v6 = vunpack.c.h.bf16 %v1115_v52  ;;  %v332_v8 = vmax.f32 %v268_v63, 0.0  ;;  %v200_v9 = vmul.f32 %v905_v0, %v1178_v1 }
  0x3b   :  { %1142 = vst [vmem:[%s1505_s3 + $0xb0] sm:$0xff] %v1043_v62   ;;  %v201_v10 = vmul.f32 %v908_v2, %v1178_v1  ;;  %v912_v11 = vunpack.c.l.bf16 %v1116_v61  ;;  %v1048_v13 = vpack.c.bf16 %v331_v3, %v330_v58  ;;  %v270_v15 = vadd.f32 %v1192_v7, %v199_v5 }
  0x3c   :  { %v333_v14 = vmax.f32 %v269_v4, 0.0  ;;  %v202_v16 = vmul.f32 %v909_v6, %v1178_v1  ;;  %v271_v17 = vadd.f32 %v1192_v7, %v200_v9  ;;  %v913_v19 = vunpack.c.h.bf16 %v1116_v61 }
  0x3d   :  { %v272_v18 = vadd.f32 %v1192_v7, %v201_v10  ;;  %v203_v20 = vmul.f32 %v912_v11, %v1178_v1  ;;  %1143 = vst [vmem:[%s1505_s3 + $0xb8] sm:$0xff] %v1048_v13   ;;  %v334_v23 = vmax.f32 %v270_v15, 0.0  ;;  %v916_v25 = vunpack.c.l.bf16 %v1117_v12 }
  0x3e   :  { %v1053_v22 = vpack.c.bf16 %v333_v14, %v332_v8  ;;  %v273_v24 = vadd.f32 %v1192_v7, %v202_v16  ;;  %v335_v26 = vmax.f32 %v271_v17, 0.0  ;;  %v204_v28 = vmul.f32 %v913_v19, %v1178_v1 }
  0x3f   :  { %v336_v27 = vmax.f32 %v272_v18, 0.0  ;;  %v274_v29 = vadd.f32 %v1192_v7, %v203_v20  ;;  %v917_v31 = vunpack.c.h.bf16 %v1117_v12  ;;  %v205_v32 = vmul.f32 %v916_v25, %v1178_v1 }
  0x40   :  { %1144 = vst [vmem:[%s1505_s3 + $0xc0] sm:$0xff] %v1053_v22   ;;  %v337_v30 = vmax.f32 %v273_v24, 0.0  ;;  %v920_v33 = vunpack.c.l.bf16 %v1118_v21  ;;  %v1058_v35 = vpack.c.bf16 %v335_v26, %v334_v23  ;;  %v275_v36 = vadd.f32 %v1192_v7, %v204_v28 }
  0x41   :  { %v338_v37 = vmax.f32 %v274_v29, 0.0  ;;  %v921_v38 = vunpack.c.h.bf16 %v1118_v21  ;;  %v206_v41 = vmul.f32 %v917_v31, %v1178_v1  ;;  %v276_v42 = vadd.f32 %v1192_v7, %v205_v32 }
  0x42   :  { %v1063_v40 = vpack.c.bf16 %v337_v30, %v336_v27  ;;  %v207_v43 = vmul.f32 %v920_v33, %v1178_v1  ;;  %1145 = vst [vmem:[%s1505_s3 + $0xc8] sm:$0xff] %v1058_v35   ;;  %v339_v44 = vmax.f32 %v275_v36, 0.0  ;;  %v924_v46 = vunpack.c.l.bf16 %v1119_v34 }
  0x43   :  { %v208_v45 = vmul.f32 %v921_v38, %v1178_v1  ;;  %v925_v47 = vunpack.c.h.bf16 %v1119_v34  ;;  %v277_v48 = vadd.f32 %v1192_v7, %v206_v41  ;;  %v340_v49 = vmax.f32 %v276_v42, 0.0 }
  0x44   :  { %1146 = vst [vmem:[%s1505_s3 + $0xd0] sm:$0xff] %v1063_v40   ;;  %v278_v50 = vadd.f32 %v1192_v7, %v207_v43  ;;  %v928_v51 = vunpack.c.l.bf16 %v1120_v39  ;;  %v1068_v52 = vpack.c.bf16 %v339_v44, %v338_v37  ;;  %v209_v54 = vmul.f32 %v924_v46, %v1178_v1 }
  0x45   :  { %v279_v53 = vadd.f32 %v1192_v7, %v208_v45  ;;  %v210_v55 = vmul.f32 %v925_v47, %v1178_v1  ;;  %v341_v56 = vmax.f32 %v277_v48, 0.0  ;;  %v929_v58 = vunpack.c.h.bf16 %v1120_v39 }
  0x46   :  { %v342_v57 = vmax.f32 %v278_v50, 0.0  ;;  %v211_v59 = vmul.f32 %v928_v51, %v1178_v1  ;;  %1147 = vst [vmem:[%s1505_s3 + $0xd8] sm:$0xff] %v1068_v52   ;;  %v280_v61 = vadd.f32 %v1192_v7, %v209_v54 }
  0x47   :  { %v343_v60 = vmax.f32 %v279_v53, 0.0  ;;  %v281_v62 = vadd.f32 %v1192_v7, %v210_v55  ;;  %v1073_v63 = vpack.c.bf16 %v341_v56, %v340_v49  ;;  %v212_v0 = vmul.f32 %v929_v58, %v1178_v1 }
  0x48   :  { %v282_v2 = vadd.f32 %v1192_v7, %v211_v59  ;;  %v344_v4 = vmax.f32 %v280_v61, 0.0 }
  0x49   :  { %v1078_v3 = vpack.c.bf16 %v343_v60, %v342_v57  ;;  %v345_v5 = vmax.f32 %v281_v62, 0.0  ;;  %1148 = vst [vmem:[%s1505_s3 + $0xe0] sm:$0xff] %v1073_v63   ;;  %v283_v6 = vadd.f32 %v1192_v7, %v212_v0 }
  0x4a   :  { %v346_v8 = vmax.f32 %v282_v2, 0.0 }
  0x4b   :  { %1149 = vst [vmem:[%s1505_s3 + $0xe8] sm:$0xff] %v1078_v3   ;;  %v1083_v9 = vpack.c.bf16 %v345_v5, %v344_v4  ;;  %v347_v10 = vmax.f32 %v283_v6, 0.0 }
  0x4d   :  { %1150 = vst [vmem:[%s1505_s3 + $0xf0] sm:$0xff] %v1083_v9   ;;  %v1088_v1 = vpack.c.bf16 %v347_v10, %v346_v8 }
  0x4f   :  { %1151 = vst [vmem:[%s1505_s3 + $0xf8] sm:$0xff] %v1088_v1  }

// kernel: generator_forward.15
= control target key start
LH: loop header
LB: loop body
LE: loop exit
PB: predicated region body
PF: predicated region fallthrough
CT: control target
= control target key end

     0   :  { %v1920_v0 = vmov 0   ;;  %vm445_vm0 = vcmask 130048   ;;  %s2504_s1 = inlined_call_operand.vmem [shape: bf16[144,128], index: 1, kind: input, shape index: {}]   ;;  %s2505_s0 = inlined_call_operand.vmem [shape: bf16[512,144], index: 0, kind: input, shape index: {}]   ;;  %s2506_s2 = inlined_call_operand.vmem [shape: bf16[512,128], index: 2, kind: output, shape index: {0}]   ;;  %s2507_s3 = inlined_call_operand.vmem [shape: f32[1,128], index: 3, kind: output, shape index: {1}]   ;;  %s2508_s4 = inlined_call_operand.vmem [shape: f32[1,128], index: 4, kind: output, shape index: {2}]  }
   0x1   :  { %542 = vmatprep.subr.bf16.mxu0 %v1920_v0  ;;  %v1815_v1 = vld [vmem:[%s2504_s1] sm:$0xff]   ;;  %1795 = vmatprep.subr.bf16.mxu1 %v1920_v0  ;;  %v1816_v2 = vld [vmem:[%s2504_s1 + $0x8] sm:$0xff]   ;;  %v1817_v3 = vld [vmem:[%s2504_s1 + $0x10] sm:$0xff]  }
   0x2   :  { %543 = vmatpush1.bf16.msra.mxu0 %v1815_v1  ;;  %1804 = vmatpush1.bf16.msra.mxu1 %v1815_v1  ;;  %v1818_v4 = vld [vmem:[%s2504_s1 + $0x18] sm:$0xff]   ;;  %v1826_v5 = vld [vmem:[%s2505_s0 + $0x4] ss:$8 sps:$4 sm:$0xff]   ;;  %v1821_v9 = vld [vmem:[%s2504_s1 + $0x30] sm:$0xff]  }
   0x3   :  { %544 = vmatprep.subr.bf16.mxu0 %v1920_v0  ;;  %1796 = vmatprep.subr.bf16.mxu1 %v1920_v0  ;;  %v1819_v6 = vld [vmem:[%s2504_s1 + $0x20] sm:$0xff]   ;;  %v1820_v7 = vld [vmem:[%s2504_s1 + $0x28] sm:$0xff]   ;;  %v1822_v10 = vld [vmem:[%s2504_s1 + $0x38] sm:$0xff]  }
   0x4   :  { %1444 = vmatprep.mubr.msk.bf16.mxu0 %vm445_vm0, %v1826_v5  ;;  %v1850_v8 = vld [vmem:[%s2505_s0 + $0x104] ss:$8 sps:$4 sm:$0xff]   ;;  %v1824_v12 = vld [vmem:[%s2505_s0] ss:$8 sps:$4 sm:$0xff]   ;;  %v1827_v13 = vld [vmem:[%s2505_s0 + $0x14] ss:$8 sps:$4 sm:$0xff]  }
   0x5   :  { %1460 = vmatprep.mubr.msk.bf16.mxu1 %vm445_vm0, %v1850_v8  ;;  %v1823_v11 = vld [vmem:[%s2504_s1 + $0x40] sm:$0xff]   ;;  %v1854_v15 = vld [vmem:[%s2505_s0 + $0x114] ss:$8 sps:$4 sm:$0xff]   ;;  %v1829_v16 = vld [vmem:[%s2505_s0 + $0x10] ss:$8 sps:$4 sm:$0xff]  }
   0x6   :  { %545 = vmatpush1.bf16.msra.mxu0 %v1816_v2  ;;  %1805 = vmatpush1.bf16.msra.mxu1 %v1816_v2  ;;  %v1848_v14 = vld [vmem:[%s2505_s0 + $0x100] ss:$8 sps:$4 sm:$0xff]   ;;  %v1830_v17 = vld [vmem:[%s2505_s0 + $0x24] ss:$8 sps:$4 sm:$0xff]   ;;  %v1856_v18 = vld [vmem:[%s2505_s0 + $0x110] ss:$8 sps:$4 sm:$0xff]  }
   0x7   :  { %546 = vmatprep.subr.bf16.mxu0 %v1920_v0  ;;  %1797 = vmatprep.subr.bf16.mxu1 %v1920_v0  ;;  %v1860_v19 = vld [vmem:[%s2505_s0 + $0x124] ss:$8 sps:$4 sm:$0xff]   ;;  %v1832_v20 = vld [vmem:[%s2505_s0 + $0x20] ss:$8 sps:$4 sm:$0xff]   ;;  %v1833_v21 = vld [vmem:[%s2505_s0 + $0x34] ss:$8 sps:$4 sm:$0xff]  }
   0x8   :  { %v1862_v22 = vld [vmem:[%s2505_s0 + $0x120] ss:$8 sps:$4 sm:$0xff]   ;;  %v1866_v23 = vld [vmem:[%s2505_s0 + $0x134] ss:$8 sps:$4 sm:$0xff]   ;;  %v1835_v24 = vld [vmem:[%s2505_s0 + $0x30] ss:$8 sps:$4 sm:$0xff]  }
   0x9   :  { %v1868_v25 = vld [vmem:[%s2505_s0 + $0x130] ss:$8 sps:$4 sm:$0xff]   ;;  %v1836_v26 = vld [vmem:[%s2505_s0 + $0x44] ss:$8 sps:$4 sm:$0xff]   ;;  %v1838_v28 = vld [vmem:[%s2505_s0 + $0x40] ss:$8 sps:$4 sm:$0xff]  }
   0xa   :  { %547 = vmatpush1.bf16.msra.mxu0 %v1817_v3  ;;  %1806 = vmatpush1.bf16.msra.mxu1 %v1817_v3  ;;  %v1872_v27 = vld [vmem:[%s2505_s0 + $0x144] ss:$8 sps:$4 sm:$0xff]   ;;  %v1874_v29 = vld [vmem:[%s2505_s0 + $0x140] ss:$8 sps:$4 sm:$0xff]   ;;  %v1839_v30 = vld [vmem:[%s2505_s0 + $0x54] ss:$8 sps:$4 sm:$0xff]  }
   0xb   :  { %548 = vmatprep.subr.bf16.mxu0 %v1920_v0  ;;  %1798 = vmatprep.subr.bf16.mxu1 %v1920_v0  ;;  %v1878_v31 = vld [vmem:[%s2505_s0 + $0x154] ss:$8 sps:$4 sm:$0xff]   ;;  %v1841_v32 = vld [vmem:[%s2505_s0 + $0x50] ss:$8 sps:$4 sm:$0xff]   ;;  %v1842_v34 = vld [vmem:[%s2505_s0 + $0x64] ss:$8 sps:$4 sm:$0xff]  }
   0xc   :  { %v1880_v33 = vld [vmem:[%s2505_s0 + $0x150] ss:$8 sps:$4 sm:$0xff]   ;;  %v1884_v35 = vld [vmem:[%s2505_s0 + $0x164] ss:$8 sps:$4 sm:$0xff]   ;;  %v1844_v36 = vld [vmem:[%s2505_s0 + $0x60] ss:$8 sps:$4 sm:$0xff]  }
   0xd   :  { %v1886_v37 = vld [vmem:[%s2505_s0 + $0x160] ss:$8 sps:$4 sm:$0xff]   ;;  %v1845_v38 = vld [vmem:[%s2505_s0 + $0x74] ss:$8 sps:$4 sm:$0xff]   ;;  %v1847_v40 = vld [vmem:[%s2505_s0 + $0x70] ss:$8 sps:$4 sm:$0xff]  }
   0xe   :  { %549 = vmatpush1.bf16.msra.mxu0 %v1818_v4  ;;  %1807 = vmatpush1.bf16.msra.mxu1 %v1818_v4  ;;  %v1890_v39 = vld [vmem:[%s2505_s0 + $0x174] ss:$8 sps:$4 sm:$0xff]   ;;  %v1892_v41 = vld [vmem:[%s2505_s0 + $0x170] ss:$8 sps:$4 sm:$0xff]   ;;  %v1851_v42 = vld [vmem:[%s2505_s0 + $0x84] ss:$8 sps:$4 sm:$0xff]  }
   0xf   :  { %550 = vmatprep.subr.bf16.mxu0 %v1920_v0  ;;  %1799 = vmatprep.subr.bf16.mxu1 %v1920_v0  ;;  %v1896_v43 = vld [vmem:[%s2505_s0 + $0x184] ss:$8 sps:$4 sm:$0xff]   ;;  %v1853_v44 = vld [vmem:[%s2505_s0 + $0x80] ss:$8 sps:$4 sm:$0xff]   ;;  %v1857_v46 = vld [vmem:[%s2505_s0 + $0x94] ss:$8 sps:$4 sm:$0xff]  }
  0x10   :  { %v1898_v45 = vld [vmem:[%s2505_s0 + $0x180] ss:$8 sps:$4 sm:$0xff]   ;;  %v1899_v47 = vld [vmem:[%s2505_s0 + $0x194] ss:$8 sps:$4 sm:$0xff]   ;;  %v1859_v48 = vld [vmem:[%s2505_s0 + $0x90] ss:$8 sps:$4 sm:$0xff]  }
  0x11   :  { %v1901_v49 = vld [vmem:[%s2505_s0 + $0x190] ss:$8 sps:$4 sm:$0xff]   ;;  %v1863_v50 = vld [vmem:[%s2505_s0 + $0xa4] ss:$8 sps:$4 sm:$0xff]   ;;  %v1865_v52 = vld [vmem:[%s2505_s0 + $0xa0] ss:$8 sps:$4 sm:$0xff]  }
  0x12   :  { %551 = vmatpush1.bf16.msra.mxu0 %v1819_v6  ;;  %1808 = vmatpush1.bf16.msra.mxu1 %v1819_v6  ;;  %v1902_v51 = vld [vmem:[%s2505_s0 + $0x1a4] ss:$8 sps:$4 sm:$0xff]   ;;  %v1904_v53 = vld [vmem:[%s2505_s0 + $0x1a0] ss:$8 sps:$4 sm:$0xff]   ;;  %v1869_v54 = vld [vmem:[%s2505_s0 + $0xb4] ss:$8 sps:$4 sm:$0xff]  }
  0x13   :  { %552 = vmatprep.subr.bf16.mxu0 %v1920_v0  ;;  %1800 = vmatprep.subr.bf16.mxu1 %v1920_v0  ;;  %v1905_v55 = vld [vmem:[%s2505_s0 + $0x1b4] ss:$8 sps:$4 sm:$0xff]   ;;  %v1871_v56 = vld [vmem:[%s2505_s0 + $0xb0] ss:$8 sps:$4 sm:$0xff]   ;;  %v1875_v58 = vld [vmem:[%s2505_s0 + $0xc4] ss:$8 sps:$4 sm:$0xff]  }
  0x14   :  { %v1907_v57 = vld [vmem:[%s2505_s0 + $0x1b0] ss:$8 sps:$4 sm:$0xff]   ;;  %v1908_v59 = vld [vmem:[%s2505_s0 + $0x1c4] ss:$8 sps:$4 sm:$0xff]   ;;  %v1877_v60 = vld [vmem:[%s2505_s0 + $0xc0] ss:$8 sps:$4 sm:$0xff]  }
  0x15   :  { %v1910_v61 = vld [vmem:[%s2505_s0 + $0x1c0] ss:$8 sps:$4 sm:$0xff]   ;;  %v1881_v62 = vld [vmem:[%s2505_s0 + $0xd4] ss:$8 sps:$4 sm:$0xff]   ;;  %v1913_v1 = vld [vmem:[%s2505_s0 + $0x1d0] ss:$8 sps:$4 sm:$0xff]  }
  0x16   :  { %553 = vmatpush1.bf16.msra.mxu0 %v1820_v7  ;;  %1809 = vmatpush1.bf16.msra.mxu1 %v1820_v7  ;;  %v1911_v63 = vld [vmem:[%s2505_s0 + $0x1d4] ss:$8 sps:$4 sm:$0xff]   ;;  %v1887_v2 = vld [vmem:[%s2505_s0 + $0xe4] ss:$8 sps:$4 sm:$0xff]   ;;  %v1889_v4 = vld [vmem:[%s2505_s0 + $0xe0] ss:$8 sps:$4 sm:$0xff]  }
  0x17   :  { %554 = vmatprep.subr.bf16.mxu0 %v1920_v0  ;;  %1801 = vmatprep.subr.bf16.mxu1 %v1920_v0  ;;  %v1914_v3 = vld [vmem:[%s2505_s0 + $0x1e4] ss:$8 sps:$4 sm:$0xff]   ;;  %v1916_v5 = vld [vmem:[%s2505_s0 + $0x1e0] ss:$8 sps:$4 sm:$0xff]   ;;  %v1893_v6 = vld [vmem:[%s2505_s0 + $0xf4] ss:$8 sps:$4 sm:$0xff]  }
  0x18   :  { %v1917_v7 = vld [vmem:[%s2505_s0 + $0x1f4] ss:$8 sps:$4 sm:$0xff]   ;;  %v1895_v8 = vld [vmem:[%s2505_s0 + $0xf0] ss:$8 sps:$4 sm:$0xff]  }
  0x1a   :  { %555 = vmatpush1.bf16.msra.mxu0 %v1821_v9  ;;  %1810 = vmatpush1.bf16.msra.mxu1 %v1821_v9  ;;  %v1919_v9 = vld [vmem:[%s2505_s0 + $0x1f0] ss:$8 sps:$4 sm:$0xff]  }
  0x1b   :  { %556 = vmatprep.subr.bf16.mxu0 %v1920_v0  ;;  %1802 = vmatprep.subr.bf16.mxu1 %v1920_v0 }
  0x1e   :  { %557 = vmatpush1.bf16.msra.mxu0 %v1822_v10  ;;  %1811 = vmatpush1.bf16.msra.mxu1 %v1822_v10 }
  0x1f   :  { %558 = vmatprep.subr.bf16.mxu0 %v1920_v0  ;;  %1803 = vmatprep.subr.bf16.mxu1 %v1920_v0  ;;  %v1883_v0 = vld [vmem:[%s2505_s0 + $0xd0] ss:$8 sps:$4 sm:$0xff]  }
  0x22   :  { %559 = vmatpush1.bf16.msra.mxu0 %v1823_v11  ;;  %1812 = vmatpush1.bf16.msra.mxu1 %v1823_v11 }
  0x25   :  { %575 = vmatmul.mubr.bf16.vlgmr.msra.gmra.mrb[0].mxu0 %v1824_v12  ;;  %703 = vmatmul.mubr.bf16.vlgmr.msra.gmra.mrb[0].mxu1 %v1848_v14 }
  0x26   :  { %1445 = vmatprep.mubr.msk.bf16.mxu0 %vm445_vm0, %v1827_v13  ;;  %1461 = vmatprep.mubr.msk.bf16.mxu1 %vm445_vm0, %v1854_v15 }
  0x2d   :  { %583 = vmatmul.mubr.bf16.gmra.mrb[4].mxu0 %v1829_v16  ;;  %711 = vmatmul.mubr.bf16.gmra.mrb[4].mxu1 %v1856_v18 }
  0x2e   :  { %1446 = vmatprep.mubr.msk.bf16.mxu0 %vm445_vm0, %v1830_v17  ;;  %1462 = vmatprep.mubr.msk.bf16.mxu1 %vm445_vm0, %v1860_v19 }
  0x35   :  { %591 = vmatmul.mubr.bf16.gmra.mrb[8].mxu0 %v1832_v20  ;;  %719 = vmatmul.mubr.bf16.gmra.mrb[8].mxu1 %v1862_v22 }
  0x36   :  { %1447 = vmatprep.mubr.msk.bf16.mxu0 %vm445_vm0, %v1833_v21  ;;  %1463 = vmatprep.mubr.msk.bf16.mxu1 %vm445_vm0, %v1866_v23 }
  0x3d   :  { %599 = vmatmul.mubr.bf16.gmra.mrb[12].mxu0 %v1835_v24  ;;  %727 = vmatmul.mubr.bf16.gmra.mrb[12].mxu1 %v1868_v25 }
  0x3e   :  { %1448 = vmatprep.mubr.msk.bf16.mxu0 %vm445_vm0, %v1836_v26  ;;  %1464 = vmatprep.mubr.msk.bf16.mxu1 %vm445_vm0, %v1872_v27 }
  0x45   :  { %607 = vmatmul.mubr.bf16.gmra.mrb[16].mxu0 %v1838_v28  ;;  %735 = vmatmul.mubr.bf16.gmra.mrb[16].mxu1 %v1874_v29 }
  0x46   :  { %1449 = vmatprep.mubr.msk.bf16.mxu0 %vm445_vm0, %v1839_v30  ;;  %1465 = vmatprep.mubr.msk.bf16.mxu1 %vm445_vm0, %v1878_v31 }
  0x4d   :  { %615 = vmatmul.mubr.bf16.gmra.mrb[20].mxu0 %v1841_v32  ;;  %743 = vmatmul.mubr.bf16.gmra.mrb[20].mxu1 %v1880_v33 }
  0x4e   :  { %1450 = vmatprep.mubr.msk.bf16.mxu0 %vm445_vm0, %v1842_v34  ;;  %1466 = vmatprep.mubr.msk.bf16.mxu1 %vm445_vm0, %v1884_v35 }
  0x55   :  { %623 = vmatmul.mubr.bf16.gmra.mrb[24].mxu0 %v1844_v36  ;;  %751 = vmatmul.mubr.bf16.gmra.mrb[24].mxu1 %v1886_v37 }
  0x56   :  { %1451 = vmatprep.mubr.msk.bf16.mxu0 %vm445_vm0, %v1845_v38  ;;  %1467 = vmatprep.mubr.msk.bf16.mxu1 %vm445_vm0, %v1890_v39 }
  0x5d   :  { %631 = vmatmul.mubr.bf16.gmra.mrb[28].mxu0 %v1847_v40  ;;  %759 = vmatmul.mubr.bf16.gmra.mrb[28].mxu1 %v1892_v41 }
  0x5e   :  { %1452 = vmatprep.mubr.msk.bf16.mxu0 %vm445_vm0, %v1851_v42  ;;  %1468 = vmatprep.mubr.msk.bf16.mxu1 %vm445_vm0, %v1896_v43 }
  0x65   :  { %639 = vmatmul.mubr.bf16.gmra.mrb[32].mxu0 %v1853_v44  ;;  %767 = vmatmul.mubr.bf16.gmra.mrb[32].mxu1 %v1898_v45 }
  0x66   :  { %1453 = vmatprep.mubr.msk.bf16.mxu0 %vm445_vm0, %v1857_v46  ;;  %1469 = vmatprep.mubr.msk.bf16.mxu1 %vm445_vm0, %v1899_v47 }
  0x6d   :  { %647 = vmatmul.mubr.bf16.gmra.mrb[36].mxu0 %v1859_v48  ;;  %775 = vmatmul.mubr.bf16.gmra.mrb[36].mxu1 %v1901_v49 }
  0x6e   :  { %1454 = vmatprep.mubr.msk.bf16.mxu0 %vm445_vm0, %v1863_v50  ;;  %1470 = vmatprep.mubr.msk.bf16.mxu1 %vm445_vm0, %v1902_v51 }
  0x75   :  { %655 = vmatmul.mubr.bf16.gmra.mrb[40].mxu0 %v1865_v52  ;;  %783 = vmatmul.mubr.bf16.gmra.mrb[40].mxu1 %v1904_v53 }
  0x76   :  { %1455 = vmatprep.mubr.msk.bf16.mxu0 %vm445_vm0, %v1869_v54  ;;  %1471 = vmatprep.mubr.msk.bf16.mxu1 %vm445_vm0, %v1905_v55 }
  0x7d   :  { %663 = vmatmul.mubr.bf16.gmra.mrb[44].mxu0 %v1871_v56  ;;  %791 = vmatmul.mubr.bf16.gmra.mrb[44].mxu1 %v1907_v57 }
  0x7e   :  { %1456 = vmatprep.mubr.msk.bf16.mxu0 %vm445_vm0, %v1875_v58  ;;  %1472 = vmatprep.mubr.msk.bf16.mxu1 %vm445_vm0, %v1908_v59 }
  0x85   :  { %671 = vmatmul.mubr.bf16.gmra.mrb[48].mxu0 %v1877_v60  ;;  %799 = vmatmul.mubr.bf16.gmra.mrb[48].mxu1 %v1910_v61 }
  0x86   :  { %1457 = vmatprep.mubr.msk.bf16.mxu0 %vm445_vm0, %v1881_v62  ;;  %1473 = vmatprep.mubr.msk.bf16.mxu1 %vm445_vm0, %v1911_v63 }
  0x8d   :  { %679 = vmatmul.mubr.bf16.gmra.mrb[52].mxu0 %v1883_v0  ;;  %807 = vmatmul.mubr.bf16.gmra.mrb[52].mxu1 %v1913_v1 }
  0x8e   :  { %1458 = vmatprep.mubr.msk.bf16.mxu0 %vm445_vm0, %v1887_v2  ;;  %1474 = vmatprep.mubr.msk.bf16.mxu1 %vm445_vm0, %v1914_v3 }
  0x95   :  { %687 = vmatmul.mubr.bf16.gmra.mrb[56].mxu0 %v1889_v4  ;;  %815 = vmatmul.mubr.bf16.gmra.mrb[56].mxu1 %v1916_v5 }
  0x96   :  { %1459 = vmatprep.mubr.msk.bf16.mxu0 %vm445_vm0, %v1893_v6  ;;  %1475 = vmatprep.mubr.msk.bf16.mxu1 %vm445_vm0, %v1917_v7 }
  0x9d   :  { %695 = vmatmul.mubr.bf16.gmra.mrb[60].mxu0 %v1895_v8  ;;  %823 = vmatmul.mubr.bf16.gmra.mrb[60].mxu1 %v1919_v9 }
  0xf8   :  { %v576_v10 = vpop.f32.mrb[0].mxu0  ;;  %v2198_v11 = vpop.f32.mrb[0].mxu1 }
  0xf9   :  { %v578_v12 = vpop.f32.mrb[1].mxu0  ;;  %v706_v13 = vpop.f32.mrb[1].mxu1  ;;  %v1224_v14 = vmul.f32 %v576_v10, %v576_v10 }
  0xfa   :  { %v579_v15 = vpop.f32.mrb[2].mxu0  ;;  %v2200_v16 = vpop.f32.mrb[2].mxu1 }
  0xfb   :  { %v1607_v17 = vpack.c.bf16 %v579_v15, %v576_v10  ;;  %v1152_v18 = vadd.f32 %v579_v15, %v576_v10  ;;  %v1225_v19 = vmul.f32 %v579_v15, %v579_v15  ;;  %v581_v20 = vpop.f32.mrb[3].mxu0  ;;  %v1687_v21 = vpack.c.bf16 %v2200_v16, %v2198_v11  ;;  %v709_v22 = vpop.f32.mrb[3].mxu1 }
  0xfd   :  { %1608 = vst [vmem:[%s2506_s2] sm:$0xff] %v1607_v17   ;;  %v1288_v23 = vadd.f32 %v1225_v19, %v1224_v14  ;;  %1779 = vst [vmem:[%s2506_s2 + $0x80] sm:$0xff] %v1687_v21  }
 0x100   :  { %v584_v24 = vpop.f32.mrb[4].mxu0  ;;  %v2210_v25 = vpop.f32.mrb[4].mxu1 }
 0x101   :  { %v1153_v26 = vadd.f32 %v1152_v18, %v584_v24  ;;  %v1226_v27 = vmul.f32 %v584_v24, %v584_v24  ;;  %v586_v28 = vpop.f32.mrb[5].mxu0  ;;  %v714_v29 = vpop.f32.mrb[5].mxu1 }
 0x102   :  { %v587_v30 = vpop.f32.mrb[6].mxu0  ;;  %v2212_v31 = vpop.f32.mrb[6].mxu1 }
 0x103   :  { %v1289_v32 = vadd.f32 %v1288_v23, %v1226_v27  ;;  %v1612_v33 = vpack.c.bf16 %v587_v30, %v584_v24  ;;  %v1154_v34 = vadd.f32 %v1153_v26, %v587_v30  ;;  %v1227_v35 = vmul.f32 %v587_v30, %v587_v30  ;;  %v589_v36 = vpop.f32.mrb[7].mxu0  ;;  %v717_v37 = vpop.f32.mrb[7].mxu1 }
 0x104   :  { %v1692_v38 = vpack.c.bf16 %v2212_v31, %v2210_v25 }
 0x105   :  { %1764 = vst [vmem:[%s2506_s2 + $0x8] sm:$0xff] %v1612_v33   ;;  %v1290_v39 = vadd.f32 %v1289_v32, %v1227_v35 }
 0x106   :  { %1780 = vst [vmem:[%s2506_s2 + $0x88] sm:$0xff] %v1692_v38  }
 0x108   :  { %v592_v40 = vpop.f32.mrb[8].mxu0  ;;  %v2222_v41 = vpop.f32.mrb[8].mxu1 }
 0x109   :  { %v1155_v42 = vadd.f32 %v1154_v34, %v592_v40  ;;  %v1228_v43 = vmul.f32 %v592_v40, %v592_v40  ;;  %v594_v44 = vpop.f32.mrb[9].mxu0  ;;  %v722_v45 = vpop.f32.mrb[9].mxu1 }
 0x10a   :  { %v595_v46 = vpop.f32.mrb[10].mxu0  ;;  %v2224_v47 = vpop.f32.mrb[10].mxu1 }
 0x10b   :  { %v1291_v48 = vadd.f32 %v1290_v39, %v1228_v43  ;;  %v1617_v49 = vpack.c.bf16 %v595_v46, %v592_v40  ;;  %v1156_v50 = vadd.f32 %v1155_v42, %v595_v46  ;;  %v1229_v51 = vmul.f32 %v595_v46, %v595_v46  ;;  %v597_v52 = vpop.f32.mrb[11].mxu0  ;;  %v725_v53 = vpop.f32.mrb[11].mxu1 }
 0x10c   :  { %v1697_v54 = vpack.c.bf16 %v2224_v47, %v2222_v41 }
 0x10d   :  { %1765 = vst [vmem:[%s2506_s2 + $0x10] sm:$0xff] %v1617_v49   ;;  %v1292_v55 = vadd.f32 %v1291_v48, %v1229_v51 }
 0x10e   :  { %1781 = vst [vmem:[%s2506_s2 + $0x90] sm:$0xff] %v1697_v54  }
 0x110   :  { %v600_v56 = vpop.f32.mrb[12].mxu0  ;;  %v2234_v57 = vpop.f32.mrb[12].mxu1 }
 0x111   :  { %v1157_v58 = vadd.f32 %v1156_v50, %v600_v56  ;;  %v1230_v59 = vmul.f32 %v600_v56, %v600_v56  ;;  %v602_v60 = vpop.f32.mrb[13].mxu0  ;;  %v730_v61 = vpop.f32.mrb[13].mxu1 }
 0x112   :  { %v603_v62 = vpop.f32.mrb[14].mxu0  ;;  %v2236_v63 = vpop.f32.mrb[14].mxu1 }
 0x113   :  { %v1293_v0 = vadd.f32 %v1292_v55, %v1230_v59  ;;  %v1622_v1 = vpack.c.bf16 %v603_v62, %v600_v56  ;;  %v1158_v2 = vadd.f32 %v1157_v58, %v603_v62  ;;  %v1231_v3 = vmul.f32 %v603_v62, %v603_v62  ;;  %v605_v4 = vpop.f32.mrb[15].mxu0  ;;  %v733_v5 = vpop.f32.mrb[15].mxu1 }
 0x114   :  { %v1702_v6 = vpack.c.bf16 %v2236_v63, %v2234_v57 }
 0x115   :  { %1766 = vst [vmem:[%s2506_s2 + $0x18] sm:$0xff] %v1622_v1   ;;  %v1294_v7 = vadd.f32 %v1293_v0, %v1231_v3 }
 0x116   :  { %1782 = vst [vmem:[%s2506_s2 + $0x98] sm:$0xff] %v1702_v6  }
 0x118   :  { %v608_v8 = vpop.f32.mrb[16].mxu0  ;;  %v2246_v9 = vpop.f32.mrb[16].mxu1 }
 0x119   :  { %v1159_v10 = vadd.f32 %v1158_v2, %v608_v8  ;;  %v1232_v12 = vmul.f32 %v608_v8, %v608_v8  ;;  %v610_v13 = vpop.f32.mrb[17].mxu0  ;;  %v738_v14 = vpop.f32.mrb[17].mxu1 }
 0x11a   :  { %v611_v15 = vpop.f32.mrb[18].mxu0  ;;  %v2248_v17 = vpop.f32.mrb[18].mxu1 }
 0x11b   :  { %v1295_v18 = vadd.f32 %v1294_v7, %v1232_v12  ;;  %v1627_v19 = vpack.c.bf16 %v611_v15, %v608_v8  ;;  %v1160_v20 = vadd.f32 %v1159_v10, %v611_v15  ;;  %v1233_v21 = vmul.f32 %v611_v15, %v611_v15  ;;  %v613_v22 = vpop.f32.mrb[19].mxu0  ;;  %v741_v23 = vpop.f32.mrb[19].mxu1 }
 0x11c   :  { %v1707_v24 = vpack.c.bf16 %v2248_v17, %v2246_v9 }
 0x11d   :  { %1767 = vst [vmem:[%s2506_s2 + $0x20] sm:$0xff] %v1627_v19   ;;  %v1296_v26 = vadd.f32 %v1295_v18, %v1233_v21 }
 0x11e   :  { %1783 = vst [vmem:[%s2506_s2 + $0xa0] sm:$0xff] %v1707_v24  }
 0x120   :  { %v616_v27 = vpop.f32.mrb[20].mxu0  ;;  %v2258_v28 = vpop.f32.mrb[20].mxu1 }
 0x121   :  { %v1161_v29 = vadd.f32 %v1160_v20, %v616_v27  ;;  %v1234_v30 = vmul.f32 %v616_v27, %v616_v27  ;;  %v618_v32 = vpop.f32.mrb[21].mxu0  ;;  %v746_v33 = vpop.f32.mrb[21].mxu1  ;;  %v1921_v20 = vmov 0.0  }
 0x122   :  { %v619_v34 = vpop.f32.mrb[22].mxu0  ;;  %v2260_v35 = vpop.f32.mrb[22].mxu1  ;;  %19 = vst [vmem:[%s2507_s3] sm:$0x1] %v1921_v20  ;;  %20 = vst [vmem:[%s2508_s4] sm:$0x1] %v1921_v20 }
 0x123   :  { %v1297_v36 = vadd.f32 %v1296_v26, %v1234_v30  ;;  %v1632_v37 = vpack.c.bf16 %v619_v34, %v616_v27  ;;  %v1162_v38 = vadd.f32 %v1161_v29, %v619_v34  ;;  %v1235_v39 = vmul.f32 %v619_v34, %v619_v34  ;;  %v621_v40 = vpop.f32.mrb[23].mxu0  ;;  %v749_v42 = vpop.f32.mrb[23].mxu1 }
 0x124   :  { %v1712_v43 = vpack.c.bf16 %v2260_v35, %v2258_v28 }
 0x125   :  { %1768 = vst [vmem:[%s2506_s2 + $0x28] sm:$0xff] %v1632_v37   ;;  %v1298_v44 = vadd.f32 %v1297_v36, %v1235_v39 }
 0x126   :  { %1784 = vst [vmem:[%s2506_s2 + $0xa8] sm:$0xff] %v1712_v43  }
 0x128   :  { %v624_v45 = vpop.f32.mrb[24].mxu0  ;;  %v2270_v46 = vpop.f32.mrb[24].mxu1 }
 0x129   :  { %v1163_v48 = vadd.f32 %v1162_v38, %v624_v45  ;;  %v1236_v49 = vmul.f32 %v624_v45, %v624_v45  ;;  %v626_v50 = vpop.f32.mrb[25].mxu0  ;;  %v754_v51 = vpop.f32.mrb[25].mxu1 }
 0x12a   :  { %v627_v52 = vpop.f32.mrb[26].mxu0  ;;  %v2272_v53 = vpop.f32.mrb[26].mxu1 }
 0x12b   :  { %v1299_v54 = vadd.f32 %v1298_v44, %v1236_v49  ;;  %v1637_v55 = vpack.c.bf16 %v627_v52, %v624_v45  ;;  %v1164_v56 = vadd.f32 %v1163_v48, %v627_v52  ;;  %v1237_v58 = vmul.f32 %v627_v52, %v627_v52  ;;  %v629_v59 = vpop.f32.mrb[27].mxu0  ;;  %v757_v60 = vpop.f32.mrb[27].mxu1 }
 0x12c   :  { %v1717_v61 = vpack.c.bf16 %v2272_v53, %v2270_v46 }
 0x12d   :  { %1769 = vst [vmem:[%s2506_s2 + $0x30] sm:$0xff] %v1637_v55   ;;  %v1300_v62 = vadd.f32 %v1299_v54, %v1237_v58 }
 0x12e   :  { %1785 = vst [vmem:[%s2506_s2 + $0xb0] sm:$0xff] %v1717_v61  }
 0x130   :  { %v632_v0 = vpop.f32.mrb[28].mxu0  ;;  %v2282_v1 = vpop.f32.mrb[28].mxu1 }
 0x131   :  { %v1165_v2 = vadd.f32 %v1164_v56, %v632_v0  ;;  %v1238_v3 = vmul.f32 %v632_v0, %v632_v0  ;;  %v634_v4 = vpop.f32.mrb[29].mxu0  ;;  %v762_v5 = vpop.f32.mrb[29].mxu1 }
 0x132   :  { %v635_v6 = vpop.f32.mrb[30].mxu0  ;;  %v2284_v7 = vpop.f32.mrb[30].mxu1 }
 0x133   :  { %v1301_v8 = vadd.f32 %v1300_v62, %v1238_v3  ;;  %v1642_v10 = vpack.c.bf16 %v635_v6, %v632_v0  ;;  %v1166_v12 = vadd.f32 %v1165_v2, %v635_v6  ;;  %v1239_v13 = vmul.f32 %v635_v6, %v635_v6  ;;  %v637_v14 = vpop.f32.mrb[31].mxu0  ;;  %v765_v15 = vpop.f32.mrb[31].mxu1 }
 0x134   :  { %v1722_v18 = vpack.c.bf16 %v2284_v7, %v2282_v1 }
 0x135   :  { %1770 = vst [vmem:[%s2506_s2 + $0x38] sm:$0xff] %v1642_v10   ;;  %v1302_v19 = vadd.f32 %v1301_v8, %v1239_v13 }
 0x136   :  { %1786 = vst [vmem:[%s2506_s2 + $0xb8] sm:$0xff] %v1722_v18  }
 0x138   :  { %v640_v21 = vpop.f32.mrb[32].mxu0  ;;  %v2300_v22 = vpop.f32.mrb[32].mxu1 }
 0x139   :  { %v1167_v23 = vadd.f32 %v1166_v12, %v640_v21  ;;  %v1240_v24 = vmul.f32 %v640_v21, %v640_v21  ;;  %v642_v26 = vpop.f32.mrb[33].mxu0  ;;  %v770_v27 = vpop.f32.mrb[33].mxu1 }
 0x13a   :  { %v643_v29 = vpop.f32.mrb[34].mxu0  ;;  %v2302_v30 = vpop.f32.mrb[34].mxu1 }
 0x13b   :  { %v1303_v32 = vadd.f32 %v1302_v19, %v1240_v24  ;;  %v1647_v33 = vpack.c.bf16 %v643_v29, %v640_v21  ;;  %v1168_v34 = vadd.f32 %v1167_v23, %v643_v29  ;;  %v1241_v36 = vmul.f32 %v643_v29, %v643_v29  ;;  %v645_v37 = vpop.f32.mrb[35].mxu0  ;;  %v773_v38 = vpop.f32.mrb[35].mxu1 }
 0x13c   :  { %v1727_v39 = vpack.c.bf16 %v2302_v30, %v2300_v22 }
 0x13d   :  { %1771 = vst [vmem:[%s2506_s2 + $0x40] sm:$0xff] %v1647_v33   ;;  %v1304_v40 = vadd.f32 %v1303_v32, %v1241_v36 }
 0x13e   :  { %1787 = vst [vmem:[%s2506_s2 + $0xc0] sm:$0xff] %v1727_v39  }
 0x140   :  { %v648_v42 = vpop.f32.mrb[36].mxu0  ;;  %v2312_v43 = vpop.f32.mrb[36].mxu1 }
 0x141   :  { %v1169_v44 = vadd.f32 %v1168_v34, %v648_v42  ;;  %v1242_v45 = vmul.f32 %v648_v42, %v648_v42  ;;  %v650_v48 = vpop.f32.mrb[37].mxu0  ;;  %v778_v49 = vpop.f32.mrb[37].mxu1 }
 0x142   :  { %v651_v50 = vpop.f32.mrb[38].mxu0  ;;  %v2314_v51 = vpop.f32.mrb[38].mxu1 }
 0x143   :  { %v1305_v52 = vadd.f32 %v1304_v40, %v1242_v45  ;;  %v1652_v54 = vpack.c.bf16 %v651_v50, %v648_v42  ;;  %v1170_v55 = vadd.f32 %v1169_v44, %v651_v50  ;;  %v1243_v56 = vmul.f32 %v651_v50, %v651_v50  ;;  %v653_v58 = vpop.f32.mrb[39].mxu0  ;;  %v781_v59 = vpop.f32.mrb[39].mxu1 }
 0x144   :  { %v1732_v60 = vpack.c.bf16 %v2314_v51, %v2312_v43 }
 0x145   :  { %1772 = vst [vmem:[%s2506_s2 + $0x48] sm:$0xff] %v1652_v54   ;;  %v1306_v61 = vadd.f32 %v1305_v52, %v1243_v56 }
 0x146   :  { %1788 = vst [vmem:[%s2506_s2 + $0xc8] sm:$0xff] %v1732_v60  }
 0x148   :  { %v656_v62 = vpop.f32.mrb[40].mxu0  ;;  %v2324_v0 = vpop.f32.mrb[40].mxu1 }
 0x149   :  { %v1171_v2 = vadd.f32 %v1170_v55, %v656_v62  ;;  %v1244_v3 = vmul.f32 %v656_v62, %v656_v62  ;;  %v658_v4 = vpop.f32.mrb[41].mxu0  ;;  %v786_v5 = vpop.f32.mrb[41].mxu1 }
 0x14a   :  { %v659_v6 = vpop.f32.mrb[42].mxu0  ;;  %v2326_v8 = vpop.f32.mrb[42].mxu1 }
 0x14b   :  { %v1307_v10 = vadd.f32 %v1306_v61, %v1244_v3  ;;  %v1657_v12 = vpack.c.bf16 %v659_v6, %v656_v62  ;;  %v1172_v13 = vadd.f32 %v1171_v2, %v659_v6  ;;  %v1245_v14 = vmul.f32 %v659_v6, %v659_v6  ;;  %v661_v15 = vpop.f32.mrb[43].mxu0  ;;  %v789_v18 = vpop.f32.mrb[43].mxu1 }
 0x14c   :  { %v1737_v19 = vpack.c.bf16 %v2326_v8, %v2324_v0 }
 0x14d   :  { %1773 = vst [vmem:[%s2506_s2 + $0x50] sm:$0xff] %v1657_v12   ;;  %v1308_v20 = vadd.f32 %v1307_v10, %v1245_v14 }
 0x14e   :  { %1789 = vst [vmem:[%s2506_s2 + $0xd0] sm:$0xff] %v1737_v19  }
 0x150   :  { %v664_v21 = vpop.f32.mrb[44].mxu0  ;;  %v2336_v23 = vpop.f32.mrb[44].mxu1 }
 0x151   :  { %v1173_v24 = vadd.f32 %v1172_v13, %v664_v21  ;;  %v1246_v26 = vmul.f32 %v664_v21, %v664_v21  ;;  %v666_v27 = vpop.f32.mrb[45].mxu0  ;;  %v794_v29 = vpop.f32.mrb[45].mxu1 }
 0x152   :  { %v667_v32 = vpop.f32.mrb[46].mxu0  ;;  %v2338_v33 = vpop.f32.mrb[46].mxu1 }
 0x153   :  { %v1309_v34 = vadd.f32 %v1308_v20, %v1246_v26  ;;  %v1662_v36 = vpack.c.bf16 %v667_v32, %v664_v21  ;;  %v1174_v37 = vadd.f32 %v1173_v24, %v667_v32  ;;  %v1247_v38 = vmul.f32 %v667_v32, %v667_v32  ;;  %v669_v39 = vpop.f32.mrb[47].mxu0  ;;  %v797_v40 = vpop.f32.mrb[47].mxu1 }
 0x154   :  { %v1742_v42 = vpack.c.bf16 %v2338_v33, %v2336_v23 }
 0x155   :  { %1774 = vst [vmem:[%s2506_s2 + $0x58] sm:$0xff] %v1662_v36   ;;  %v1310_v44 = vadd.f32 %v1309_v34, %v1247_v38 }
 0x156   :  { %1790 = vst [vmem:[%s2506_s2 + $0xd8] sm:$0xff] %v1742_v42  }
 0x158   :  { %v672_v45 = vpop.f32.mrb[48].mxu0  ;;  %v2348_v48 = vpop.f32.mrb[48].mxu1 }
 0x159   :  { %v1175_v49 = vadd.f32 %v1174_v37, %v672_v45  ;;  %v1248_v50 = vmul.f32 %v672_v45, %v672_v45  ;;  %v674_v52 = vpop.f32.mrb[49].mxu0  ;;  %v802_v54 = vpop.f32.mrb[49].mxu1 }
 0x15a   :  { %v675_v55 = vpop.f32.mrb[50].mxu0  ;;  %v2350_v56 = vpop.f32.mrb[50].mxu1 }
 0x15b   :  { %v1311_v58 = vadd.f32 %v1310_v44, %v1248_v50  ;;  %v1667_v59 = vpack.c.bf16 %v675_v55, %v672_v45  ;;  %v1176_v60 = vadd.f32 %v1175_v49, %v675_v55  ;;  %v1249_v61 = vmul.f32 %v675_v55, %v675_v55  ;;  %v677_v62 = vpop.f32.mrb[51].mxu0  ;;  %v805_v2 = vpop.f32.mrb[51].mxu1 }
 0x15c   :  { %v1747_v3 = vpack.c.bf16 %v2350_v56, %v2348_v48 }
 0x15d   :  { %1775 = vst [vmem:[%s2506_s2 + $0x60] sm:$0xff] %v1667_v59   ;;  %v1312_v4 = vadd.f32 %v1311_v58, %v1249_v61 }
 0x15e   :  { %1791 = vst [vmem:[%s2506_s2 + $0xe0] sm:$0xff] %v1747_v3  }
 0x160   :  { %v680_v5 = vpop.f32.mrb[52].mxu0  ;;  %v2360_v6 = vpop.f32.mrb[52].mxu1 }
 0x161   :  { %v1177_v10 = vadd.f32 %v1176_v60, %v680_v5  ;;  %v1250_v12 = vmul.f32 %v680_v5, %v680_v5  ;;  %v682_v13 = vpop.f32.mrb[53].mxu0  ;;  %v810_v14 = vpop.f32.mrb[53].mxu1 }
 0x162   :  { %v683_v15 = vpop.f32.mrb[54].mxu0  ;;  %v2362_v18 = vpop.f32.mrb[54].mxu1 }
 0x163   :  { %v1313_v19 = vadd.f32 %v1312_v4, %v1250_v12  ;;  %v1672_v20 = vpack.c.bf16 %v683_v15, %v680_v5  ;;  %v1178_v21 = vadd.f32 %v1177_v10, %v683_v15  ;;  %v1251_v24 = vmul.f32 %v683_v15, %v683_v15  ;;  %v685_v26 = vpop.f32.mrb[55].mxu0  ;;  %v813_v27 = vpop.f32.mrb[55].mxu1 }
 0x164   :  { %v1752_v29 = vpack.c.bf16 %v2362_v18, %v2360_v6 }
 0x165   :  { %1776 = vst [vmem:[%s2506_s2 + $0x68] sm:$0xff] %v1672_v20   ;;  %v1314_v32 = vadd.f32 %v1313_v19, %v1251_v24  ;;  %v1256_v24 = vmul.f32 %v2198_v11, %v2198_v11 }
 0x166   :  { %1792 = vst [vmem:[%s2506_s2 + $0xe8] sm:$0xff] %v1752_v29   ;;  %v1257_v29 = vmul.f32 %v2200_v16, %v2200_v16 }
 0x168   :  { %v688_v34 = vpop.f32.mrb[56].mxu0  ;;  %v2372_v36 = vpop.f32.mrb[56].mxu1 }
 0x169   :  { %v1179_v37 = vadd.f32 %v1178_v21, %v688_v34  ;;  %v1252_v38 = vmul.f32 %v688_v34, %v688_v34  ;;  %v690_v39 = vpop.f32.mrb[57].mxu0  ;;  %v818_v40 = vpop.f32.mrb[57].mxu1 }
 0x16a   :  { %v691_v42 = vpop.f32.mrb[58].mxu0  ;;  %v2374_v44 = vpop.f32.mrb[58].mxu1 }
 0x16b   :  { %v1315_v45 = vadd.f32 %v1314_v32, %v1252_v38  ;;  %v1677_v49 = vpack.c.bf16 %v691_v42, %v688_v34  ;;  %v1180_v50 = vadd.f32 %v1179_v37, %v691_v42  ;;  %v1253_v52 = vmul.f32 %v691_v42, %v691_v42  ;;  %v693_v54 = vpop.f32.mrb[59].mxu0  ;;  %v821_v55 = vpop.f32.mrb[59].mxu1 }
 0x16c   :  { %v1757_v58 = vpack.c.bf16 %v2374_v44, %v2372_v36  ;;  %v1258_v37 = vmul.f32 %v2210_v25, %v2210_v25 }
 0x16d   :  { %1777 = vst [vmem:[%s2506_s2 + $0x70] sm:$0xff] %v1677_v49   ;;  %v1316_v59 = vadd.f32 %v1315_v45, %v1253_v52  ;;  %v1260_v45 = vmul.f32 %v2222_v41, %v2222_v41 }
 0x16e   :  { %1793 = vst [vmem:[%s2506_s2 + $0xf0] sm:$0xff] %v1757_v58  }
 0x170   :  { %v696_v60 = vpop.f32.mrb[60].mxu0  ;;  %v2384_v61 = vpop.f32.mrb[60].mxu1 }
 0x171   :  { %v1181_v62 = vadd.f32 %v1180_v50, %v696_v60  ;;  %v1254_v2 = vmul.f32 %v696_v60, %v696_v60  ;;  %v698_v3 = vpop.f32.mrb[61].mxu0  ;;  %v826_v4 = vpop.f32.mrb[61].mxu1 }
 0x172   :  { %v699_v5 = vpop.f32.mrb[62].mxu0  ;;  %v2386_v10 = vpop.f32.mrb[62].mxu1 }
 0x173   :  { %v1317_v12 = vadd.f32 %v1316_v59, %v1254_v2  ;;  %v1682_v13 = vpack.c.bf16 %v699_v5, %v696_v60  ;;  %v1182_v14 = vadd.f32 %v1181_v62, %v699_v5  ;;  %v1255_v15 = vmul.f32 %v699_v5, %v699_v5  ;;  %v701_v19 = vpop.f32.mrb[63].mxu0  ;;  %v829_v20 = vpop.f32.mrb[63].mxu1 }
 0x174   :  { %v1762_v21 = vpack.c.bf16 %v2386_v10, %v2384_v61 }
 0x175   :  { %1778 = vst [vmem:[%s2506_s2 + $0x78] sm:$0xff] %v1682_v13   ;;  %v1183_v26 = vadd.f32 %v1182_v14, %v2198_v11  ;;  %v1318_v27 = vadd.f32 %v1317_v12, %v1255_v15  ;;  %v1259_v11 = vmul.f32 %v2212_v31, %v2212_v31 }
 0x176   :  { %1794 = vst [vmem:[%s2506_s2 + $0xf8] sm:$0xff] %v1762_v21  }
 0x177   :  { %v1184_v32 = vadd.f32 %v1183_v26, %v2200_v16  ;;  %v1319_v34 = vadd.f32 %v1318_v27, %v1256_v24  ;;  %v1261_v16 = vmul.f32 %v2224_v47, %v2224_v47 }
 0x179   :  { %v1185_v38 = vadd.f32 %v1184_v32, %v2210_v25  ;;  %v1320_v39 = vadd.f32 %v1319_v34, %v1257_v29  ;;  %v1262_v25 = vmul.f32 %v2234_v57, %v2234_v57  ;;  %v1272_v32 = vmul.f32 %v2300_v22, %v2300_v22 }
 0x17b   :  { %v1186_v40 = vadd.f32 %v1185_v38, %v2212_v31  ;;  %v1321_v42 = vadd.f32 %v1320_v39, %v1258_v37  ;;  %v1263_v31 = vmul.f32 %v2236_v63, %v2236_v63  ;;  %v1273_v38 = vmul.f32 %v2302_v30, %v2302_v30 }
 0x17d   :  { %v1187_v49 = vadd.f32 %v1186_v40, %v2222_v41  ;;  %v1322_v50 = vadd.f32 %v1321_v42, %v1259_v11  ;;  %v1264_v41 = vmul.f32 %v2246_v9, %v2246_v9  ;;  %v1274_v11 = vmul.f32 %v2312_v43, %v2312_v43 }
 0x17e   :  { %v1275_v42 = vmul.f32 %v2314_v51, %v2314_v51 }
 0x17f   :  { %v1188_v52 = vadd.f32 %v1187_v49, %v2224_v47  ;;  %v1323_v54 = vadd.f32 %v1322_v50, %v1260_v45  ;;  %v1265_v47 = vmul.f32 %v2248_v17, %v2248_v17  ;;  %v1276_v49 = vmul.f32 %v2324_v0, %v2324_v0 }
 0x181   :  { %v1189_v55 = vadd.f32 %v1188_v52, %v2234_v57  ;;  %v1324_v58 = vadd.f32 %v1323_v54, %v1261_v16  ;;  %v1266_v57 = vmul.f32 %v2258_v28, %v2258_v28  ;;  %v1277_v16 = vmul.f32 %v2326_v8, %v2326_v8 }
 0x182   :  { %v1278_v54 = vmul.f32 %v2336_v23, %v2336_v23 }
 0x183   :  { %v1190_v59 = vadd.f32 %v1189_v55, %v2236_v63  ;;  %v1325_v60 = vadd.f32 %v1324_v58, %v1262_v25  ;;  %v1267_v63 = vmul.f32 %v2260_v35, %v2260_v35  ;;  %v1279_v55 = vmul.f32 %v2338_v33, %v2338_v33 }
 0x185   :  { %v1326_v62 = vadd.f32 %v1325_v60, %v1263_v31  ;;  %v1191_v2 = vadd.f32 %v1190_v59, %v2246_v9  ;;  %v1268_v9 = vmul.f32 %v2270_v46, %v2270_v46  ;;  %v1280_v31 = vmul.f32 %v2348_v48, %v2348_v48 }
 0x186   :  { %v1281_v60 = vmul.f32 %v2350_v56, %v2350_v56 }
 0x187   :  { %v1192_v3 = vadd.f32 %v1191_v2, %v2248_v17  ;;  %v1327_v4 = vadd.f32 %v1326_v62, %v1264_v41  ;;  %v1269_v17 = vmul.f32 %v2272_v53, %v2272_v53  ;;  %v1282_v62 = vmul.f32 %v2360_v6, %v2360_v6 }
 0x189   :  { %v1193_v5 = vadd.f32 %v1192_v3, %v2258_v28  ;;  %v1328_v12 = vadd.f32 %v1327_v4, %v1265_v47  ;;  %v1270_v28 = vmul.f32 %v2282_v1, %v2282_v1  ;;  %v1283_v47 = vmul.f32 %v2362_v18, %v2362_v18 }
 0x18a   :  { %v1284_v4 = vmul.f32 %v2372_v36, %v2372_v36 }
 0x18b   :  { %v1194_v13 = vadd.f32 %v1193_v5, %v2260_v35  ;;  %v1329_v14 = vadd.f32 %v1328_v12, %v1266_v57  ;;  %v1271_v35 = vmul.f32 %v2284_v7, %v2284_v7  ;;  %v1285_v5 = vmul.f32 %v2374_v44, %v2374_v44 }
 0x18d   :  { %v1195_v15 = vadd.f32 %v1194_v13, %v2270_v46  ;;  %v1330_v19 = vadd.f32 %v1329_v14, %v1267_v63  ;;  %v1287_v14 = vmul.f32 %v2386_v10, %v2386_v10 }
 0x18f   :  { %v1196_v20 = vadd.f32 %v1195_v15, %v2272_v53  ;;  %v1331_v21 = vadd.f32 %v1330_v19, %v1268_v9 }
 0x191   :  { %v1197_v24 = vadd.f32 %v1196_v20, %v2282_v1  ;;  %v1332_v26 = vadd.f32 %v1331_v21, %v1269_v17 }
 0x193   :  { %v1198_v27 = vadd.f32 %v1197_v24, %v2284_v7  ;;  %v1333_v29 = vadd.f32 %v1332_v26, %v1270_v28 }
 0x195   :  { %v1199_v46 = vadd.f32 %v1198_v27, %v2300_v22  ;;  %v1334_v34 = vadd.f32 %v1333_v29, %v1271_v35 }
 0x197   :  { %v1335_v53 = vadd.f32 %v1334_v34, %v1272_v32  ;;  %v1200_v37 = vadd.f32 %v1199_v46, %v2302_v30 }
 0x199   :  { %v1336_v1 = vadd.f32 %v1335_v53, %v1273_v38  ;;  %v1201_v39 = vadd.f32 %v1200_v37, %v2312_v43 }
 0x19b   :  { %v1337_v7 = vadd.f32 %v1336_v1, %v1274_v11  ;;  %v1202_v40 = vadd.f32 %v1201_v39, %v2314_v51 }
 0x19d   :  { %v1338_v22 = vadd.f32 %v1337_v7, %v1275_v42  ;;  %v1203_v45 = vadd.f32 %v1202_v40, %v2324_v0 }
 0x19f   :  { %v1339_v50 = vadd.f32 %v1338_v22, %v1276_v49  ;;  %v1204_v30 = vadd.f32 %v1203_v45, %v2326_v8 }
 0x1a1   :  { %v1340_v52 = vadd.f32 %v1339_v50, %v1277_v16  ;;  %v1205_v43 = vadd.f32 %v1204_v30, %v2336_v23 }
 0x1a3   :  { %v1341_v25 = vadd.f32 %v1340_v52, %v1278_v54  ;;  %v1206_v51 = vadd.f32 %v1205_v43, %v2338_v33 }
 0x1a5   :  { %v1342_v58 = vadd.f32 %v1341_v25, %v1279_v55  ;;  %v1207_v0 = vadd.f32 %v1206_v51, %v2348_v48 }
 0x1a7   :  { %v1343_v59 = vadd.f32 %v1342_v58, %v1280_v31  ;;  %v1208_v8 = vadd.f32 %v1207_v0, %v2350_v56 }
 0x1a9   :  { %v1344_v41 = vadd.f32 %v1343_v59, %v1281_v60  ;;  %v1209_v23 = vadd.f32 %v1208_v8, %v2360_v6  ;;  %v1286_v6 = vmul.f32 %v2384_v61, %v2384_v61 }
 0x1ab   :  { %v1345_v2 = vadd.f32 %v1344_v41, %v1282_v62  ;;  %v1210_v33 = vadd.f32 %v1209_v23, %v2362_v18 }
 0x1ad   :  { %v1346_v3 = vadd.f32 %v1345_v2, %v1283_v47  ;;  %v1211_v48 = vadd.f32 %v1210_v33, %v2372_v36 }
 0x1af   :  { %v1347_v57 = vadd.f32 %v1346_v3, %v1284_v4  ;;  %v1212_v56 = vadd.f32 %v1211_v48, %v2374_v44 }
 0x1b1   :  { %v1348_v12 = vadd.f32 %v1347_v57, %v1285_v5  ;;  %v1213_v63 = vadd.f32 %v1212_v56, %v2384_v61  ;;  %v1151_v61 = vld [vmem:[%s2507_s3] sm:$0x1] }
 0x1b3   :  { %v1349_v13 = vadd.f32 %v1348_v12, %v1286_v6  ;;  %v1214_v18 = vadd.f32 %v1213_v63, %v2386_v10  ;;  %v1223_v10 = vld [vmem:[%s2508_s4] sm:$0x1] }
 0x1b5   :  { %v1215_v9 = vrot.slane %v1214_v18, 4  ;;  %v1350_v36 = vadd.f32 %v1349_v13, %v1287_v14 }
 0x1b7   :  { %v1216_v15 = vadd.f32 %v1215_v9, %v1214_v18  ;;  %v1351_v19 = vrot.slane %v1350_v36, 4 }
 0x1b9   :  { %v1217_v17 = vrot.slane %v1216_v15, 2  ;;  %v1352_v20 = vadd.f32 %v1351_v19, %v1350_v36 }
 0x1bb   :  { %v1218_v21 = vadd.f32 %v1217_v17, %v1216_v15  ;;  %v1353_v44 = vrot.slane %v1352_v20, 2 }
 0x1bd   :  { %v1219_v28 = vrot.slane %v1218_v21, 1  ;;  %v1354_v24 = vadd.f32 %v1353_v44, %v1352_v20 }
 0x1bf   :  { %v1220_v26 = vadd.f32 %v1219_v28, %v1218_v21  ;;  %v1355_v35 = vrot.slane %v1354_v24, 1 }
 0x1c1   :  { %v1221_v27 = vadd.f32 %v1220_v26, %v1151_v61  ;;  %v1356_v29 = vadd.f32 %v1355_v35, %v1354_v24 }
 0x1c3   :  { %1222 = vst [vmem:[%s2507_s3] sm:$0x1] %v1221_v27  ;;  %v1357_v46 = vadd.f32 %v1356_v29, %v1223_v10 }
 0x1c5   :  { %1358 = vst [vmem:[%s2508_s4] sm:$0x1] %v1357_v46 }

// kernel: generator_forward.17
= control target key start
LH: loop header
LB: loop body
LE: loop exit
PB: predicated region body
PF: predicated region fallthrough
CT: control target
= control target key end

     0   :  { %vm954_vm0 = vcmask 588800   ;;  %vm1339_vm1 = vcmask 1043456   ;;  %s5822_s1 = inlined_call_operand.vmem [shape: bf16[72,128], index: 1, kind: input, shape index: {}]   ;;  %s5823_s0 = inlined_call_operand.vmem [shape: bf16[2048,72], index: 0, kind: input, shape index: {}]   ;;  %s5824_s2 = inlined_call_operand.vmem [shape: f32[1,128], index: 2, kind: input, shape index: {}]   ;;  %s5825_s3 = inlined_call_operand.vmem [shape: f32[2048,128], index: 3, kind: output, shape index: {}]  }
   0x1   :  { %v3589_v0 = vld [vmem:[%s5822_s1] sm:$0xff]   ;;  %v3590_v1 = vld [vmem:[%s5822_s1 + $0x8] sm:$0xff]   ;;  %v3591_v2 = vld [vmem:[%s5822_s1 + $0x10] sm:$0xff]  }
   0x2   :  { %3311 = vmatprep.subr.bf16.mxu0 %v3589_v0  ;;  %3577 = vmatprep.subr.bf16.mxu1 %v3589_v0  ;;  %v3594_v3 = vld [vmem:[%s5823_s0] sm:$0xff]   ;;  %v3592_v5 = vld [vmem:[%s5822_s1 + $0x18] sm:$0xff]   ;;  %v3596_v8 = vld [vmem:[%s5823_s0 + $0x8] sm:$0xff]  }
   0x3   :  { %3312 = vmatpush3.bf16.msra.mxu0 %v3589_v0  ;;  %3582 = vmatpush3.bf16.msra.mxu1 %v3589_v0  ;;  %v3595_v4 = vld [vmem:[%s5823_s0 + $0x200] sm:$0xff]   ;;  %v3597_v9 = vld [vmem:[%s5823_s0 + $0x208] sm:$0xff]   ;;  %v3598_v10 = vld [vmem:[%s5823_s0 + $0x10] sm:$0xff]  }
   0x4   :  { %3313 = vmatprep.subr.bf16.mxu0 %v3590_v1  ;;  %3578 = vmatprep.subr.bf16.mxu1 %v3590_v1  ;;  %v3593_v6 = vld [vmem:[%s5822_s1 + $0x20] ss:$0 sps:$4 sm:$0xff]   ;;  %v3599_v11 = vld [vmem:[%s5823_s0 + $0x210] sm:$0xff]   ;;  %v3600_v12 = vld [vmem:[%s5823_s0 + $0x18] sm:$0xff]  }
   0x5   :  { %3321 = vmatprep.mubr.msk.bf16.mxu0 %vm954_vm0, %v3594_v3  ;;  %3449 = vmatprep.mubr.msk.bf16.mxu1 %vm954_vm0, %v3595_v4  ;;  %v1341_v7 = vsel %vm1339_vm1, %v3593_v6, 0  ;;  %v3601_v13 = vld [vmem:[%s5823_s0 + $0x218] sm:$0xff]   ;;  %v3602_v14 = vld [vmem:[%s5823_s0 + $0x20] sm:$0xff]   ;;  %v3604_v16 = vld [vmem:[%s5823_s0 + $0x28] sm:$0xff]  }
   0x6   :  { %v3603_v15 = vld [vmem:[%s5823_s0 + $0x220] sm:$0xff]   ;;  %v3605_v17 = vld [vmem:[%s5823_s0 + $0x228] sm:$0xff]   ;;  %v3606_v18 = vld [vmem:[%s5823_s0 + $0x30] sm:$0xff]  }
   0x7   :  { %3314 = vmatpush3.bf16.msra.mxu0 %v3590_v1  ;;  %3583 = vmatpush3.bf16.msra.mxu1 %v3590_v1  ;;  %v3607_v19 = vld [vmem:[%s5823_s0 + $0x230] sm:$0xff]   ;;  %v3608_v20 = vld [vmem:[%s5823_s0 + $0x38] sm:$0xff]   ;;  %v3610_v22 = vld [vmem:[%s5823_s0 + $0x40] sm:$0xff]  }
   0x8   :  { %3315 = vmatprep.subr.bf16.mxu0 %v3591_v2  ;;  %3579 = vmatprep.subr.bf16.mxu1 %v3591_v2  ;;  %v3609_v21 = vld [vmem:[%s5823_s0 + $0x238] sm:$0xff]   ;;  %v3611_v23 = vld [vmem:[%s5823_s0 + $0x240] sm:$0xff]   ;;  %v3612_v24 = vld [vmem:[%s5823_s0 + $0x48] sm:$0xff]  }
   0x9   :  { %v3613_v25 = vld [vmem:[%s5823_s0 + $0x248] sm:$0xff]   ;;  %v3614_v26 = vld [vmem:[%s5823_s0 + $0x50] sm:$0xff]   ;;  %v3616_v28 = vld [vmem:[%s5823_s0 + $0x58] sm:$0xff]  }
   0xa   :  { %v3615_v27 = vld [vmem:[%s5823_s0 + $0x250] sm:$0xff]   ;;  %v3617_v29 = vld [vmem:[%s5823_s0 + $0x258] sm:$0xff]   ;;  %v3618_v30 = vld [vmem:[%s5823_s0 + $0x60] sm:$0xff]  }
   0xb   :  { %3316 = vmatpush3.bf16.msra.mxu0 %v3591_v2  ;;  %3584 = vmatpush3.bf16.msra.mxu1 %v3591_v2  ;;  %v3619_v31 = vld [vmem:[%s5823_s0 + $0x260] sm:$0xff]   ;;  %v3620_v32 = vld [vmem:[%s5823_s0 + $0x68] sm:$0xff]   ;;  %v3622_v34 = vld [vmem:[%s5823_s0 + $0x70] sm:$0xff]  }
   0xc   :  { %3317 = vmatprep.subr.bf16.mxu0 %v3592_v5  ;;  %3580 = vmatprep.subr.bf16.mxu1 %v3592_v5  ;;  %v3621_v33 = vld [vmem:[%s5823_s0 + $0x268] sm:$0xff]   ;;  %v3623_v35 = vld [vmem:[%s5823_s0 + $0x270] sm:$0xff]   ;;  %v3624_v36 = vld [vmem:[%s5823_s0 + $0x78] sm:$0xff]  }
   0xd   :  { %v3625_v37 = vld [vmem:[%s5823_s0 + $0x278] sm:$0xff]   ;;  %v3626_v38 = vld [vmem:[%s5823_s0 + $0x80] sm:$0xff]   ;;  %v3628_v40 = vld [vmem:[%s5823_s0 + $0x88] sm:$0xff]  }
   0xe   :  { %v3627_v39 = vld [vmem:[%s5823_s0 + $0x280] sm:$0xff]   ;;  %v3629_v41 = vld [vmem:[%s5823_s0 + $0x288] sm:$0xff]   ;;  %v3630_v42 = vld [vmem:[%s5823_s0 + $0x90] sm:$0xff]  }
   0xf   :  { %3318 = vmatpush3.bf16.msra.mxu0 %v3592_v5  ;;  %3585 = vmatpush3.bf16.msra.mxu1 %v3592_v5  ;;  %v3631_v43 = vld [vmem:[%s5823_s0 + $0x290] sm:$0xff]   ;;  %v3632_v44 = vld [vmem:[%s5823_s0 + $0x98] sm:$0xff]   ;;  %v3634_v46 = vld [vmem:[%s5823_s0 + $0xa0] sm:$0xff]  }
  0x10   :  { %3587 = vmatprep.subr.msk.bf16.mxu0 %vm1339_vm1, %v3593_v6  ;;  %3588 = vmatprep.subr.msk.bf16.mxu1 %vm1339_vm1, %v3593_v6  ;;  %v3633_v45 = vld [vmem:[%s5823_s0 + $0x298] sm:$0xff]   ;;  %v3635_v47 = vld [vmem:[%s5823_s0 + $0x2a0] sm:$0xff]   ;;  %v3636_v48 = vld [vmem:[%s5823_s0 + $0xa8] sm:$0xff]  }
  0x11   :  { %v3637_v49 = vld [vmem:[%s5823_s0 + $0x2a8] sm:$0xff]   ;;  %v3638_v50 = vld [vmem:[%s5823_s0 + $0xb0] sm:$0xff]   ;;  %v3640_v52 = vld [vmem:[%s5823_s0 + $0xb8] sm:$0xff]  }
  0x12   :  { %v3639_v51 = vld [vmem:[%s5823_s0 + $0x2b0] sm:$0xff]   ;;  %v3641_v53 = vld [vmem:[%s5823_s0 + $0x2b8] sm:$0xff]   ;;  %v3642_v54 = vld [vmem:[%s5823_s0 + $0xc0] sm:$0xff]  }
  0x13   :  { %3320 = vmatpush3.bf16.msra.mxu0 %v1341_v7  ;;  %3586 = vmatpush3.bf16.msra.mxu1 %v1341_v7  ;;  %v3643_v55 = vld [vmem:[%s5823_s0 + $0x2c0] sm:$0xff]   ;;  %v3644_v56 = vld [vmem:[%s5823_s0 + $0xc8] sm:$0xff]   ;;  %v3646_v58 = vld [vmem:[%s5823_s0 + $0xd0] sm:$0xff]  }
  0x14   :  { %v3645_v57 = vld [vmem:[%s5823_s0 + $0x2c8] sm:$0xff]   ;;  %v3647_v59 = vld [vmem:[%s5823_s0 + $0x2d0] sm:$0xff]   ;;  %v3648_v60 = vld [vmem:[%s5823_s0 + $0xd8] sm:$0xff]  }
  0x15   :  { %v3649_v61 = vld [vmem:[%s5823_s0 + $0x2d8] sm:$0xff]   ;;  %v3650_v62 = vld [vmem:[%s5823_s0 + $0xe0] sm:$0xff]   ;;  %v3652_v0 = vld [vmem:[%s5823_s0 + $0xe8] sm:$0xff]  }
  0x16   :  { %3322 = vmatmul.mubr.msk.bf16.vlgmr.msra.gmra.mrb[0].mxu0 %vm954_vm0, %v3596_v8  ;;  %3450 = vmatmul.mubr.msk.bf16.vlgmr.msra.gmra.mrb[0].mxu1 %vm954_vm0, %v3597_v9  ;;  %v3651_v63 = vld [vmem:[%s5823_s0 + $0x2e0] sm:$0xff]   ;;  %v3653_v1 = vld [vmem:[%s5823_s0 + $0x2e8] sm:$0xff]   ;;  %v3654_v2 = vld [vmem:[%s5823_s0 + $0xf0] sm:$0xff]  }
  0x17   :  { %3325 = vmatprep.mubr.msk.bf16.mxu0 %vm954_vm0, %v3598_v10  ;;  %3453 = vmatprep.mubr.msk.bf16.mxu1 %vm954_vm0, %v3599_v11  ;;  %v3655_v3 = vld [vmem:[%s5823_s0 + $0x2f0] sm:$0xff]   ;;  %v3656_v4 = vld [vmem:[%s5823_s0 + $0xf8] sm:$0xff]   ;;  %v3658_v6 = vld [vmem:[%s5823_s0 + $0x100] sm:$0xff]  }
  0x18   :  { %v3657_v5 = vld [vmem:[%s5823_s0 + $0x2f8] sm:$0xff]   ;;  %v3659_v7 = vld [vmem:[%s5823_s0 + $0x300] sm:$0xff]   ;;  %v3660_v8 = vld [vmem:[%s5823_s0 + $0x108] sm:$0xff]  }
  0x19   :  { %v3661_v9 = vld [vmem:[%s5823_s0 + $0x308] sm:$0xff]   ;;  %v3662_v10 = vld [vmem:[%s5823_s0 + $0x110] sm:$0xff]  }
  0x1a   :  { %v3663_v11 = vld [vmem:[%s5823_s0 + $0x310] sm:$0xff]  }
  0x1e   :  { %3326 = vmatmul.mubr.msk.bf16.gmra.mrb[4].mxu0 %vm954_vm0, %v3600_v12  ;;  %3454 = vmatmul.mubr.msk.bf16.gmra.mrb[4].mxu1 %vm954_vm0, %v3601_v13  ;;  %v3664_v12 = vld [vmem:[%s5823_s0 + $0x118] sm:$0xff]  }
  0x1f   :  { %3329 = vmatprep.mubr.msk.bf16.mxu0 %vm954_vm0, %v3602_v14  ;;  %3457 = vmatprep.mubr.msk.bf16.mxu1 %vm954_vm0, %v3603_v15  ;;  %v3665_v13 = vld [vmem:[%s5823_s0 + $0x318] sm:$0xff]   ;;  %v3666_v14 = vld [vmem:[%s5823_s0 + $0x120] sm:$0xff]  }
  0x20   :  { %v3667_v15 = vld [vmem:[%s5823_s0 + $0x320] sm:$0xff]  }
  0x26   :  { %3330 = vmatmul.mubr.msk.bf16.gmra.mrb[8].mxu0 %vm954_vm0, %v3604_v16  ;;  %3458 = vmatmul.mubr.msk.bf16.gmra.mrb[8].mxu1 %vm954_vm0, %v3605_v17  ;;  %v3668_v16 = vld [vmem:[%s5823_s0 + $0x128] sm:$0xff]  }
  0x27   :  { %3333 = vmatprep.mubr.msk.bf16.mxu0 %vm954_vm0, %v3606_v18  ;;  %3461 = vmatprep.mubr.msk.bf16.mxu1 %vm954_vm0, %v3607_v19  ;;  %v3669_v17 = vld [vmem:[%s5823_s0 + $0x328] sm:$0xff]   ;;  %v3670_v18 = vld [vmem:[%s5823_s0 + $0x130] sm:$0xff]  }
  0x28   :  { %v3671_v19 = vld [vmem:[%s5823_s0 + $0x330] sm:$0xff]  }
  0x2e   :  { %3334 = vmatmul.mubr.msk.bf16.gmra.mrb[12].mxu0 %vm954_vm0, %v3608_v20  ;;  %3462 = vmatmul.mubr.msk.bf16.gmra.mrb[12].mxu1 %vm954_vm0, %v3609_v21  ;;  %v3672_v20 = vld [vmem:[%s5823_s0 + $0x138] sm:$0xff]  }
  0x2f   :  { %3337 = vmatprep.mubr.msk.bf16.mxu0 %vm954_vm0, %v3610_v22  ;;  %3465 = vmatprep.mubr.msk.bf16.mxu1 %vm954_vm0, %v3611_v23  ;;  %v3673_v21 = vld [vmem:[%s5823_s0 + $0x338] sm:$0xff]   ;;  %v3674_v22 = vld [vmem:[%s5823_s0 + $0x140] sm:$0xff]  }
  0x30   :  { %v3675_v23 = vld [vmem:[%s5823_s0 + $0x340] sm:$0xff]  }
  0x36   :  { %3338 = vmatmul.mubr.msk.bf16.gmra.mrb[16].mxu0 %vm954_vm0, %v3612_v24  ;;  %3466 = vmatmul.mubr.msk.bf16.gmra.mrb[16].mxu1 %vm954_vm0, %v3613_v25  ;;  %v3676_v24 = vld [vmem:[%s5823_s0 + $0x148] sm:$0xff]  }
  0x37   :  { %3341 = vmatprep.mubr.msk.bf16.mxu0 %vm954_vm0, %v3614_v26  ;;  %3469 = vmatprep.mubr.msk.bf16.mxu1 %vm954_vm0, %v3615_v27  ;;  %v3677_v25 = vld [vmem:[%s5823_s0 + $0x348] sm:$0xff]   ;;  %v3678_v26 = vld [vmem:[%s5823_s0 + $0x150] sm:$0xff]  }
  0x38   :  { %v3679_v27 = vld [vmem:[%s5823_s0 + $0x350] sm:$0xff]  }
  0x3e   :  { %3342 = vmatmul.mubr.msk.bf16.gmra.mrb[20].mxu0 %vm954_vm0, %v3616_v28  ;;  %3470 = vmatmul.mubr.msk.bf16.gmra.mrb[20].mxu1 %vm954_vm0, %v3617_v29  ;;  %v3680_v28 = vld [vmem:[%s5823_s0 + $0x158] sm:$0xff]  }
  0x3f   :  { %3345 = vmatprep.mubr.msk.bf16.mxu0 %vm954_vm0, %v3618_v30  ;;  %3473 = vmatprep.mubr.msk.bf16.mxu1 %vm954_vm0, %v3619_v31  ;;  %v3681_v29 = vld [vmem:[%s5823_s0 + $0x358] sm:$0xff]   ;;  %v3682_v30 = vld [vmem:[%s5823_s0 + $0x160] sm:$0xff]  }
  0x40   :  { %v3683_v31 = vld [vmem:[%s5823_s0 + $0x360] sm:$0xff]  }
  0x46   :  { %3346 = vmatmul.mubr.msk.bf16.gmra.mrb[24].mxu0 %vm954_vm0, %v3620_v32  ;;  %3474 = vmatmul.mubr.msk.bf16.gmra.mrb[24].mxu1 %vm954_vm0, %v3621_v33  ;;  %v3684_v32 = vld [vmem:[%s5823_s0 + $0x168] sm:$0xff]  }
  0x47   :  { %3349 = vmatprep.mubr.msk.bf16.mxu0 %vm954_vm0, %v3622_v34  ;;  %3477 = vmatprep.mubr.msk.bf16.mxu1 %vm954_vm0, %v3623_v35  ;;  %v3685_v33 = vld [vmem:[%s5823_s0 + $0x368] sm:$0xff]   ;;  %v3686_v34 = vld [vmem:[%s5823_s0 + $0x170] sm:$0xff]  }
  0x48   :  { %v3687_v35 = vld [vmem:[%s5823_s0 + $0x370] sm:$0xff]  }
  0x4e   :  { %3350 = vmatmul.mubr.msk.bf16.gmra.mrb[28].mxu0 %vm954_vm0, %v3624_v36  ;;  %3478 = vmatmul.mubr.msk.bf16.gmra.mrb[28].mxu1 %vm954_vm0, %v3625_v37  ;;  %v3688_v36 = vld [vmem:[%s5823_s0 + $0x178] sm:$0xff]  }
  0x4f   :  { %3353 = vmatprep.mubr.msk.bf16.mxu0 %vm954_vm0, %v3626_v38  ;;  %3481 = vmatprep.mubr.msk.bf16.mxu1 %vm954_vm0, %v3627_v39  ;;  %v3689_v37 = vld [vmem:[%s5823_s0 + $0x378] sm:$0xff]   ;;  %v3690_v38 = vld [vmem:[%s5823_s0 + $0x180] sm:$0xff]  }
  0x50   :  { %v3691_v39 = vld [vmem:[%s5823_s0 + $0x380] sm:$0xff]  }
  0x56   :  { %3354 = vmatmul.mubr.msk.bf16.gmra.mrb[32].mxu0 %vm954_vm0, %v3628_v40  ;;  %3482 = vmatmul.mubr.msk.bf16.gmra.mrb[32].mxu1 %vm954_vm0, %v3629_v41  ;;  %v3692_v40 = vld [vmem:[%s5823_s0 + $0x188] sm:$0xff]  }
  0x57   :  { %3357 = vmatprep.mubr.msk.bf16.mxu0 %vm954_vm0, %v3630_v42  ;;  %3485 = vmatprep.mubr.msk.bf16.mxu1 %vm954_vm0, %v3631_v43  ;;  %v3693_v41 = vld [vmem:[%s5823_s0 + $0x388] sm:$0xff]   ;;  %v3694_v42 = vld [vmem:[%s5823_s0 + $0x190] sm:$0xff]  }
  0x58   :  { %v3695_v43 = vld [vmem:[%s5823_s0 + $0x390] sm:$0xff]  }
  0x5e   :  { %3358 = vmatmul.mubr.msk.bf16.gmra.mrb[36].mxu0 %vm954_vm0, %v3632_v44  ;;  %3486 = vmatmul.mubr.msk.bf16.gmra.mrb[36].mxu1 %vm954_vm0, %v3633_v45  ;;  %v3696_v44 = vld [vmem:[%s5823_s0 + $0x198] sm:$0xff]  }
  0x5f   :  { %3361 = vmatprep.mubr.msk.bf16.mxu0 %vm954_vm0, %v3634_v46  ;;  %3489 = vmatprep.mubr.msk.bf16.mxu1 %vm954_vm0, %v3635_v47  ;;  %v3697_v45 = vld [vmem:[%s5823_s0 + $0x398] sm:$0xff]   ;;  %v3698_v46 = vld [vmem:[%s5823_s0 + $0x1a0] sm:$0xff]  }
  0x60   :  { %v3699_v47 = vld [vmem:[%s5823_s0 + $0x3a0] sm:$0xff]  }
  0x66   :  { %3362 = vmatmul.mubr.msk.bf16.gmra.mrb[40].mxu0 %vm954_vm0, %v3636_v48  ;;  %3490 = vmatmul.mubr.msk.bf16.gmra.mrb[40].mxu1 %vm954_vm0, %v3637_v49  ;;  %v3700_v48 = vld [vmem:[%s5823_s0 + $0x1a8] sm:$0xff]  }
  0x67   :  { %3365 = vmatprep.mubr.msk.bf16.mxu0 %vm954_vm0, %v3638_v50  ;;  %3493 = vmatprep.mubr.msk.bf16.mxu1 %vm954_vm0, %v3639_v51  ;;  %v3701_v49 = vld [vmem:[%s5823_s0 + $0x3a8] sm:$0xff]   ;;  %v3702_v50 = vld [vmem:[%s5823_s0 + $0x1b0] sm:$0xff]  }
  0x68   :  { %v3703_v51 = vld [vmem:[%s5823_s0 + $0x3b0] sm:$0xff]  }
  0x6e   :  { %3366 = vmatmul.mubr.msk.bf16.gmra.mrb[44].mxu0 %vm954_vm0, %v3640_v52  ;;  %3494 = vmatmul.mubr.msk.bf16.gmra.mrb[44].mxu1 %vm954_vm0, %v3641_v53  ;;  %v4712_v52 = vld [vmem:[%s5824_s2] ss:$0 sm:$0xff] }
  0x6f   :  { %3369 = vmatprep.mubr.msk.bf16.mxu0 %vm954_vm0, %v3642_v54  ;;  %3497 = vmatprep.mubr.msk.bf16.mxu1 %vm954_vm0, %v3643_v55 }
  0x76   :  { %3370 = vmatmul.mubr.msk.bf16.gmra.mrb[48].mxu0 %vm954_vm0, %v3644_v56  ;;  %3498 = vmatmul.mubr.msk.bf16.gmra.mrb[48].mxu1 %vm954_vm0, %v3645_v57 }
  0x77   :  { %3373 = vmatprep.mubr.msk.bf16.mxu0 %vm954_vm0, %v3646_v58  ;;  %3501 = vmatprep.mubr.msk.bf16.mxu1 %vm954_vm0, %v3647_v59  ;;  %v3704_v59 = vld [vmem:[%s5823_s0 + $0x1b8] sm:$0xff]  }
  0x7e   :  { %3374 = vmatmul.mubr.msk.bf16.gmra.mrb[52].mxu0 %vm954_vm0, %v3648_v60  ;;  %3502 = vmatmul.mubr.msk.bf16.gmra.mrb[52].mxu1 %vm954_vm0, %v3649_v61  ;;  %v3705_v60 = vld [vmem:[%s5823_s0 + $0x3b8] sm:$0xff]  }
  0x7f   :  { %3377 = vmatprep.mubr.msk.bf16.mxu0 %vm954_vm0, %v3650_v62  ;;  %3505 = vmatprep.mubr.msk.bf16.mxu1 %vm954_vm0, %v3651_v63 }
  0x86   :  { %3378 = vmatmul.mubr.msk.bf16.gmra.mrb[56].mxu0 %vm954_vm0, %v3652_v0  ;;  %3506 = vmatmul.mubr.msk.bf16.gmra.mrb[56].mxu1 %vm954_vm0, %v3653_v1  ;;  %v3706_v1 = vld [vmem:[%s5823_s0 + $0x1c0] sm:$0xff]  }
  0x87   :  { %3381 = vmatprep.mubr.msk.bf16.mxu0 %vm954_vm0, %v3654_v2  ;;  %3509 = vmatprep.mubr.msk.bf16.mxu1 %vm954_vm0, %v3655_v3  ;;  %v3707_v2 = vld [vmem:[%s5823_s0 + $0x3c0] sm:$0xff]  }
  0x8e   :  { %3382 = vmatmul.mubr.msk.bf16.gmra.mrb[60].mxu0 %vm954_vm0, %v3656_v4  ;;  %3510 = vmatmul.mubr.msk.bf16.gmra.mrb[60].mxu1 %vm954_vm0, %v3657_v5 }
  0x8f   :  { %3385 = vmatprep.mubr.msk.bf16.mxu0 %vm954_vm0, %v3658_v6  ;;  %3513 = vmatprep.mubr.msk.bf16.mxu1 %vm954_vm0, %v3659_v7 }
  0x96   :  { %3386 = vmatmul.mubr.msk.bf16.gmra.mrb[64].mxu0 %vm954_vm0, %v3660_v8  ;;  %3514 = vmatmul.mubr.msk.bf16.gmra.mrb[64].mxu1 %vm954_vm0, %v3661_v9 }
  0x97   :  { %3389 = vmatprep.mubr.msk.bf16.mxu0 %vm954_vm0, %v3662_v10  ;;  %3517 = vmatprep.mubr.msk.bf16.mxu1 %vm954_vm0, %v3663_v11 }
  0x9e   :  { %3390 = vmatmul.mubr.msk.bf16.gmra.mrb[68].mxu0 %vm954_vm0, %v3664_v12  ;;  %3518 = vmatmul.mubr.msk.bf16.gmra.mrb[68].mxu1 %vm954_vm0, %v3665_v13 }
  0x9f   :  { %3393 = vmatprep.mubr.msk.bf16.mxu0 %vm954_vm0, %v3666_v14  ;;  %3521 = vmatprep.mubr.msk.bf16.mxu1 %vm954_vm0, %v3667_v15  ;;  %v3708_v15 = vld [vmem:[%s5823_s0 + $0x1c8] sm:$0xff]  }
  0xa6   :  { %3394 = vmatmul.mubr.msk.bf16.gmra.mrb[72].mxu0 %vm954_vm0, %v3668_v16  ;;  %3522 = vmatmul.mubr.msk.bf16.gmra.mrb[72].mxu1 %vm954_vm0, %v3669_v17  ;;  %v3709_v16 = vld [vmem:[%s5823_s0 + $0x3c8] sm:$0xff]  }
  0xa7   :  { %3397 = vmatprep.mubr.msk.bf16.mxu0 %vm954_vm0, %v3670_v18  ;;  %3525 = vmatprep.mubr.msk.bf16.mxu1 %vm954_vm0, %v3671_v19 }
  0xae   :  { %3398 = vmatmul.mubr.msk.bf16.gmra.mrb[76].mxu0 %vm954_vm0, %v3672_v20  ;;  %3526 = vmatmul.mubr.msk.bf16.gmra.mrb[76].mxu1 %vm954_vm0, %v3673_v21  ;;  %v3710_v21 = vld [vmem:[%s5823_s0 + $0x1d0] sm:$0xff]  }
  0xaf   :  { %3401 = vmatprep.mubr.msk.bf16.mxu0 %vm954_vm0, %v3674_v22  ;;  %3529 = vmatprep.mubr.msk.bf16.mxu1 %vm954_vm0, %v3675_v23  ;;  %v3711_v22 = vld [vmem:[%s5823_s0 + $0x3d0] sm:$0xff]  }
  0xb6   :  { %3402 = vmatmul.mubr.msk.bf16.gmra.mrb[80].mxu0 %vm954_vm0, %v3676_v24  ;;  %3530 = vmatmul.mubr.msk.bf16.gmra.mrb[80].mxu1 %vm954_vm0, %v3677_v25 }
  0xb7   :  { %3405 = vmatprep.mubr.msk.bf16.mxu0 %vm954_vm0, %v3678_v26  ;;  %3533 = vmatprep.mubr.msk.bf16.mxu1 %vm954_vm0, %v3679_v27 }
  0xbe   :  { %3406 = vmatmul.mubr.msk.bf16.gmra.mrb[84].mxu0 %vm954_vm0, %v3680_v28  ;;  %3534 = vmatmul.mubr.msk.bf16.gmra.mrb[84].mxu1 %vm954_vm0, %v3681_v29 }
  0xbf   :  { %3409 = vmatprep.mubr.msk.bf16.mxu0 %vm954_vm0, %v3682_v30  ;;  %3537 = vmatprep.mubr.msk.bf16.mxu1 %vm954_vm0, %v3683_v31 }
  0xc6   :  { %3410 = vmatmul.mubr.msk.bf16.gmra.mrb[88].mxu0 %vm954_vm0, %v3684_v32  ;;  %3538 = vmatmul.mubr.msk.bf16.gmra.mrb[88].mxu1 %vm954_vm0, %v3685_v33 }
  0xc7   :  { %3413 = vmatprep.mubr.msk.bf16.mxu0 %vm954_vm0, %v3686_v34  ;;  %3541 = vmatprep.mubr.msk.bf16.mxu1 %vm954_vm0, %v3687_v35 }
  0xce   :  { %3414 = vmatmul.mubr.msk.bf16.gmra.mrb[92].mxu0 %vm954_vm0, %v3688_v36  ;;  %3542 = vmatmul.mubr.msk.bf16.gmra.mrb[92].mxu1 %vm954_vm0, %v3689_v37 }
  0xcf   :  { %3417 = vmatprep.mubr.msk.bf16.mxu0 %vm954_vm0, %v3690_v38  ;;  %3545 = vmatprep.mubr.msk.bf16.mxu1 %vm954_vm0, %v3691_v39 }
  0xd6   :  { %3418 = vmatmul.mubr.msk.bf16.gmra.mrb[96].mxu0 %vm954_vm0, %v3692_v40  ;;  %3546 = vmatmul.mubr.msk.bf16.gmra.mrb[96].mxu1 %vm954_vm0, %v3693_v41  ;;  %v3712_v40 = vld [vmem:[%s5823_s0 + $0x1d8] sm:$0xff]  }
  0xd7   :  { %3421 = vmatprep.mubr.msk.bf16.mxu0 %vm954_vm0, %v3694_v42  ;;  %3549 = vmatprep.mubr.msk.bf16.mxu1 %vm954_vm0, %v3695_v43  ;;  %v3713_v41 = vld [vmem:[%s5823_s0 + $0x3d8] sm:$0xff]  }
  0xde   :  { %3422 = vmatmul.mubr.msk.bf16.gmra.mrb[100].mxu0 %vm954_vm0, %v3696_v44  ;;  %3550 = vmatmul.mubr.msk.bf16.gmra.mrb[100].mxu1 %vm954_vm0, %v3697_v45 }
  0xdf   :  { %3425 = vmatprep.mubr.msk.bf16.mxu0 %vm954_vm0, %v3698_v46  ;;  %3553 = vmatprep.mubr.msk.bf16.mxu1 %vm954_vm0, %v3699_v47  ;;  %v3714_v47 = vld [vmem:[%s5823_s0 + $0x1e0] sm:$0xff]  }
  0xe6   :  { %3426 = vmatmul.mubr.msk.bf16.gmra.mrb[104].mxu0 %vm954_vm0, %v3700_v48  ;;  %3554 = vmatmul.mubr.msk.bf16.gmra.mrb[104].mxu1 %vm954_vm0, %v3701_v49  ;;  %v3715_v48 = vld [vmem:[%s5823_s0 + $0x3e0] sm:$0xff]  }
  0xe7   :  { %3429 = vmatprep.mubr.msk.bf16.mxu0 %vm954_vm0, %v3702_v50  ;;  %3557 = vmatprep.mubr.msk.bf16.mxu1 %vm954_vm0, %v3703_v51 }
  0xe9   :  { %v3323_v53 = vpop.f32.mrb[0].mxu0  ;;  %v3451_v54 = vpop.f32.mrb[0].mxu1 }
  0xea   :  { %v1386_v55 = vadd.f32 %v3323_v53, %v4712_v52  ;;  %v1898_v56 = vadd.f32 %v3451_v54, %v4712_v52  ;;  %v1377_v57 = vpop.f32.mrb[1].mxu0  ;;  %v1889_v58 = vpop.f32.mrb[1].mxu1 }
  0xeb   :  { %v1378_v61 = vadd.f32 %v4712_v52, %v1377_v57  ;;  %v1890_v62 = vadd.f32 %v4712_v52, %v1889_v58  ;;  %v3324_v63 = vpop.f32.mrb[2].mxu0  ;;  %v3452_v0 = vpop.f32.mrb[2].mxu1 }
  0xec   :  { %3722 = vtanh.f32 %v1386_v55  ;;  %v1389_v3 = vadd.f32 %v3324_v63, %v4712_v52  ;;  %v1380_v4 = vpop.f32.mrb[3].mxu0  ;;  %v1892_v5 = vpop.f32.mrb[3].mxu1  ;;  %v1901_v6 = vadd.f32 %v3452_v0, %v4712_v52 }
  0xed   :  { %3724 = vtanh.f32 %v1898_v56  ;;  %v1381_v7 = vadd.f32 %v4712_v52, %v1380_v4  ;;  %v1893_v8 = vadd.f32 %v4712_v52, %v1892_v5  ;;  %v3716_v5 = vld [vmem:[%s5823_s0 + $0x1e8] sm:$0xff]  }
  0xee   :  { %3726 = vtanh.f32 %v1378_v61  ;;  %3430 = vmatmul.mubr.msk.bf16.gmra.mrb[108].mxu0 %vm954_vm0, %v3704_v59  ;;  %3558 = vmatmul.mubr.msk.bf16.gmra.mrb[108].mxu1 %vm954_vm0, %v3705_v60 }
  0xef   :  { %3728 = vtanh.f32 %v1890_v62  ;;  %3433 = vmatprep.mubr.msk.bf16.mxu0 %vm954_vm0, %v3706_v1  ;;  %3561 = vmatprep.mubr.msk.bf16.mxu1 %vm954_vm0, %v3707_v2 }
  0xf0   :  { %3730 = vtanh.f32 %v1389_v3 }
  0xf1   :  { %3732 = vtanh.f32 %v1901_v6  ;;  %v3327_v9 = vpop.f32.mrb[4].mxu0  ;;  %v3455_v10 = vpop.f32.mrb[4].mxu1  ;;  %v3717_v6 = vld [vmem:[%s5823_s0 + $0x3e8] sm:$0xff]  }
  0xf2   :  { %3734 = vtanh.f32 %v1381_v7  ;;  %v1402_v11 = vadd.f32 %v3327_v9, %v4712_v52  ;;  %v1914_v12 = vadd.f32 %v3455_v10, %v4712_v52  ;;  %v1393_v13 = vpop.f32.mrb[5].mxu0  ;;  %v1905_v14 = vpop.f32.mrb[5].mxu1 }
  0xf3   :  { %3736 = vtanh.f32 %v1893_v8  ;;  %v1394_v17 = vadd.f32 %v4712_v52, %v1393_v13  ;;  %v1906_v18 = vadd.f32 %v4712_v52, %v1905_v14  ;;  %v3328_v19 = vpop.f32.mrb[6].mxu0  ;;  %v3456_v20 = vpop.f32.mrb[6].mxu1  ;;  %v3719_v13 = vld [vmem:[%s5823_s0 + $0x3f0] sm:$0xff]  }
  0xf4   :  { %3738 = vtanh.f32 %v1402_v11  ;;  %v1405_v23 = vadd.f32 %v3328_v19, %v4712_v52  ;;  %v1396_v24 = vpop.f32.mrb[7].mxu0  ;;  %v1908_v25 = vpop.f32.mrb[7].mxu1  ;;  %v1917_v26 = vadd.f32 %v3456_v20, %v4712_v52 }
  0xf5   :  { %3740 = vtanh.f32 %v1914_v12  ;;  %v1397_v28 = vadd.f32 %v4712_v52, %v1396_v24  ;;  %v1909_v30 = vadd.f32 %v4712_v52, %v1908_v25  ;;  %v3718_v12 = vld [vmem:[%s5823_s0 + $0x1f0] sm:$0xff]  }
  0xf6   :  { %v3723_v27 = vpop.eup %3722  ;;  %3742 = vtanh.f32 %v1394_v17  ;;  %3434 = vmatmul.mubr.msk.bf16.gmra.mrb[112].mxu0 %vm954_vm0, %v3708_v15  ;;  %3562 = vmatmul.mubr.msk.bf16.gmra.mrb[112].mxu1 %vm954_vm0, %v3709_v16 }
  0xf7   :  { %v3725_v29 = vpop.eup %3724  ;;  %2658 = vst [vmem:[%s5825_s3 + $0x10] sm:$0xff] %v3723_v27  ;;  %3744 = vtanh.f32 %v1906_v18  ;;  %3437 = vmatprep.mubr.msk.bf16.mxu0 %vm954_vm0, %v3710_v21  ;;  %3565 = vmatprep.mubr.msk.bf16.mxu1 %vm954_vm0, %v3711_v22 }
  0xf8   :  { %v3727_v31 = vpop.eup %3726  ;;  %2786 = vst [vmem:[%s5825_s3 + $0x410] sm:$0xff] %v3725_v29  ;;  %3746 = vtanh.f32 %v1405_v23 }
  0xf9   :  { %v3729_v32 = vpop.eup %3728  ;;  %2656 = vst [vmem:[%s5825_s3] sm:$0xff] %v3727_v31  ;;  %3748 = vtanh.f32 %v1917_v26  ;;  %v3331_v33 = vpop.f32.mrb[8].mxu0 }
  0xfa   :  { %v3459_v34 = vpop.f32.mrb[8].mxu1  ;;  %v3731_v35 = vpop.eup %3730  ;;  %2784 = vst [vmem:[%s5825_s3 + $0x400] sm:$0xff] %v3729_v32  ;;  %3750 = vtanh.f32 %v1397_v28  ;;  %v1418_v36 = vadd.f32 %v3331_v33, %v4712_v52  ;;  %v3720_v33 = vld [vmem:[%s5823_s0 + $0x1f8] sm:$0xff]  }
  0xfb   :  { %v1930_v37 = vadd.f32 %v3459_v34, %v4712_v52  ;;  %v1409_v38 = vpop.f32.mrb[9].mxu0  ;;  %v1921_v39 = vpop.f32.mrb[9].mxu1  ;;  %2659 = vst [vmem:[%s5825_s3 + $0x18] sm:$0xff] %v3731_v35  ;;  %3752 = vtanh.f32 %v1909_v30  ;;  %v3721_v34 = vld [vmem:[%s5823_s0 + $0x3f8] sm:$0xff]  }
  0xfc   :  { %v3733_v42 = vpop.eup %3732  ;;  %v1410_v43 = vadd.f32 %v4712_v52, %v1409_v38  ;;  %v1922_v44 = vadd.f32 %v4712_v52, %v1921_v39  ;;  %v3332_v45 = vpop.f32.mrb[10].mxu0  ;;  %3754 = vtanh.f32 %v1418_v36 }
  0xfd   :  { %v3460_v46 = vpop.f32.mrb[10].mxu1  ;;  %v3735_v49 = vpop.eup %3734  ;;  %2787 = vst [vmem:[%s5825_s3 + $0x418] sm:$0xff] %v3733_v42  ;;  %v1421_v50 = vadd.f32 %v3332_v45, %v4712_v52  ;;  %3756 = vtanh.f32 %v1930_v37 }
  0xfe   :  { %v1412_v51 = vpop.f32.mrb[11].mxu0  ;;  %v1924_v53 = vpop.f32.mrb[11].mxu1  ;;  %2657 = vst [vmem:[%s5825_s3 + $0x8] sm:$0xff] %v3735_v49  ;;  %v1933_v55 = vadd.f32 %v3460_v46, %v4712_v52  ;;  %3758 = vtanh.f32 %v1410_v43  ;;  %3438 = vmatmul.mubr.msk.bf16.gmra.mrb[116].mxu0 %vm954_vm0, %v3712_v40  ;;  %3566 = vmatmul.mubr.msk.bf16.gmra.mrb[116].mxu1 %vm954_vm0, %v3713_v41 }
  0xff   :  { %v3737_v54 = vpop.eup %3736  ;;  %v1413_v57 = vadd.f32 %v4712_v52, %v1412_v51  ;;  %3760 = vtanh.f32 %v1922_v44  ;;  %v1925_v59 = vadd.f32 %v4712_v52, %v1924_v53  ;;  %3441 = vmatprep.mubr.msk.bf16.mxu0 %vm954_vm0, %v3714_v47  ;;  %3569 = vmatprep.mubr.msk.bf16.mxu1 %vm954_vm0, %v3715_v48 }
 0x100   :  { %v3739_v56 = vpop.eup %3738  ;;  %2785 = vst [vmem:[%s5825_s3 + $0x408] sm:$0xff] %v3737_v54  ;;  %3762 = vtanh.f32 %v1421_v50 }
 0x101   :  { %v3741_v58 = vpop.eup %3740  ;;  %2662 = vst [vmem:[%s5825_s3 + $0x30] sm:$0xff] %v3739_v56  ;;  %3764 = vtanh.f32 %v1933_v55  ;;  %v3335_v62 = vpop.f32.mrb[12].mxu0 }
 0x102   :  { %v3743_v60 = vpop.eup %3742  ;;  %2790 = vst [vmem:[%s5825_s3 + $0x430] sm:$0xff] %v3741_v58  ;;  %v3463_v63 = vpop.f32.mrb[12].mxu1  ;;  %3766 = vtanh.f32 %v1413_v57  ;;  %v1434_v1 = vadd.f32 %v3335_v62, %v4712_v52 }
 0x103   :  { %v3745_v61 = vpop.eup %3744  ;;  %2660 = vst [vmem:[%s5825_s3 + $0x20] sm:$0xff] %v3743_v60  ;;  %v1946_v2 = vadd.f32 %v3463_v63, %v4712_v52  ;;  %v1425_v3 = vpop.f32.mrb[13].mxu0  ;;  %3768 = vtanh.f32 %v1925_v59 }
 0x104   :  { %v3747_v0 = vpop.eup %3746  ;;  %2788 = vst [vmem:[%s5825_s3 + $0x420] sm:$0xff] %v3745_v61  ;;  %v1937_v4 = vpop.f32.mrb[13].mxu1  ;;  %v1426_v8 = vadd.f32 %v4712_v52, %v1425_v3  ;;  %3770 = vtanh.f32 %v1434_v1 }
 0x105   :  { %v3749_v7 = vpop.eup %3748  ;;  %2663 = vst [vmem:[%s5825_s3 + $0x38] sm:$0xff] %v3747_v0  ;;  %v1938_v9 = vadd.f32 %v4712_v52, %v1937_v4  ;;  %v3336_v10 = vpop.f32.mrb[14].mxu0  ;;  %3772 = vtanh.f32 %v1946_v2 }
 0x106   :  { %v3464_v11 = vpop.f32.mrb[14].mxu1  ;;  %v3751_v14 = vpop.eup %3750  ;;  %2791 = vst [vmem:[%s5825_s3 + $0x438] sm:$0xff] %v3749_v7  ;;  %v1437_v15 = vadd.f32 %v3336_v10, %v4712_v52  ;;  %3774 = vtanh.f32 %v1426_v8  ;;  %3442 = vmatmul.mubr.msk.bf16.gmra.mrb[120].mxu0 %vm954_vm0, %v3716_v5  ;;  %3570 = vmatmul.mubr.msk.bf16.gmra.mrb[120].mxu1 %vm954_vm0, %v3717_v6 }
 0x107   :  { %v1428_v16 = vpop.f32.mrb[15].mxu0  ;;  %v1940_v17 = vpop.f32.mrb[15].mxu1  ;;  %2661 = vst [vmem:[%s5825_s3 + $0x28] sm:$0xff] %v3751_v14  ;;  %v1949_v19 = vadd.f32 %v3464_v11, %v4712_v52  ;;  %3776 = vtanh.f32 %v1938_v9  ;;  %3445 = vmatprep.mubr.msk.bf16.mxu0 %vm954_vm0, %v3718_v12  ;;  %3573 = vmatprep.mubr.msk.bf16.mxu1 %vm954_vm0, %v3719_v13 }
 0x108   :  { %v3753_v18 = vpop.eup %3752  ;;  %v1429_v21 = vadd.f32 %v4712_v52, %v1428_v16  ;;  %v1941_v23 = vadd.f32 %v4712_v52, %v1940_v17  ;;  %3778 = vtanh.f32 %v1437_v15 }
 0x109   :  { %v3755_v20 = vpop.eup %3754  ;;  %2789 = vst [vmem:[%s5825_s3 + $0x428] sm:$0xff] %v3753_v18  ;;  %3780 = vtanh.f32 %v1949_v19  ;;  %v3339_v26 = vpop.f32.mrb[16].mxu0 }
 0x10a   :  { %v3757_v22 = vpop.eup %3756  ;;  %2666 = vst [vmem:[%s5825_s3 + $0x50] sm:$0xff] %v3755_v20  ;;  %v3467_v27 = vpop.f32.mrb[16].mxu1  ;;  %3782 = vtanh.f32 %v1429_v21  ;;  %v1450_v29 = vadd.f32 %v3339_v26, %v4712_v52 }
 0x10b   :  { %v3759_v24 = vpop.eup %3758  ;;  %2794 = vst [vmem:[%s5825_s3 + $0x450] sm:$0xff] %v3757_v22  ;;  %v1962_v30 = vadd.f32 %v3467_v27, %v4712_v52  ;;  %v1441_v31 = vpop.f32.mrb[17].mxu0  ;;  %3784 = vtanh.f32 %v1941_v23 }
 0x10c   :  { %v3761_v25 = vpop.eup %3760  ;;  %2664 = vst [vmem:[%s5825_s3 + $0x40] sm:$0xff] %v3759_v24  ;;  %v1953_v32 = vpop.f32.mrb[17].mxu1  ;;  %v1442_v36 = vadd.f32 %v4712_v52, %v1441_v31  ;;  %3786 = vtanh.f32 %v1450_v29 }
 0x10d   :  { %v3763_v28 = vpop.eup %3762  ;;  %2792 = vst [vmem:[%s5825_s3 + $0x440] sm:$0xff] %v3761_v25  ;;  %v1954_v37 = vadd.f32 %v4712_v52, %v1953_v32  ;;  %v3340_v38 = vpop.f32.mrb[18].mxu0  ;;  %3788 = vtanh.f32 %v1962_v30 }
 0x10e   :  { %v3765_v35 = vpop.eup %3764  ;;  %2667 = vst [vmem:[%s5825_s3 + $0x58] sm:$0xff] %v3763_v28  ;;  %v3468_v39 = vpop.f32.mrb[18].mxu1  ;;  %v1453_v41 = vadd.f32 %v3340_v38, %v4712_v52  ;;  %3790 = vtanh.f32 %v1442_v36  ;;  %3446 = vmatmul.mubr.msk.bf16.gmra.mrb[124].mxu0 %vm954_vm0, %v3720_v33  ;;  %3574 = vmatmul.mubr.msk.bf16.gmra.mrb[124].mxu1 %vm954_vm0, %v3721_v34 }
 0x10f   :  { %v3767_v40 = vpop.eup %3766  ;;  %2795 = vst [vmem:[%s5825_s3 + $0x458] sm:$0xff] %v3765_v35  ;;  %v1444_v42 = vpop.f32.mrb[19].mxu0  ;;  %v1965_v45 = vadd.f32 %v3468_v39, %v4712_v52  ;;  %3792 = vtanh.f32 %v1954_v37 }
 0x110   :  { %v1956_v43 = vpop.f32.mrb[19].mxu1  ;;  %v3769_v44 = vpop.eup %3768  ;;  %2665 = vst [vmem:[%s5825_s3 + $0x48] sm:$0xff] %v3767_v40  ;;  %v1445_v47 = vadd.f32 %v4712_v52, %v1444_v42  ;;  %3794 = vtanh.f32 %v1453_v41 }
 0x111   :  { %v3771_v46 = vpop.eup %3770  ;;  %2793 = vst [vmem:[%s5825_s3 + $0x448] sm:$0xff] %v3769_v44  ;;  %v1957_v49 = vadd.f32 %v4712_v52, %v1956_v43  ;;  %3796 = vtanh.f32 %v1965_v45  ;;  %v3343_v53 = vpop.f32.mrb[20].mxu0 }
 0x112   :  { %v3773_v48 = vpop.eup %3772  ;;  %2670 = vst [vmem:[%s5825_s3 + $0x70] sm:$0xff] %v3771_v46  ;;  %v3471_v54 = vpop.f32.mrb[20].mxu1  ;;  %3798 = vtanh.f32 %v1445_v47  ;;  %v1466_v56 = vadd.f32 %v3343_v53, %v4712_v52 }
 0x113   :  { %v3775_v50 = vpop.eup %3774  ;;  %2798 = vst [vmem:[%s5825_s3 + $0x470] sm:$0xff] %v3773_v48  ;;  %v1978_v57 = vadd.f32 %v3471_v54, %v4712_v52  ;;  %v1457_v58 = vpop.f32.mrb[21].mxu0  ;;  %3800 = vtanh.f32 %v1957_v49 }
 0x114   :  { %v3777_v51 = vpop.eup %3776  ;;  %2668 = vst [vmem:[%s5825_s3 + $0x60] sm:$0xff] %v3775_v50  ;;  %v1969_v59 = vpop.f32.mrb[21].mxu1  ;;  %v1458_v61 = vadd.f32 %v4712_v52, %v1457_v58  ;;  %3802 = vtanh.f32 %v1466_v56 }
 0x115   :  { %v3779_v55 = vpop.eup %3778  ;;  %2796 = vst [vmem:[%s5825_s3 + $0x460] sm:$0xff] %v3777_v51  ;;  %v1970_v62 = vadd.f32 %v4712_v52, %v1969_v59  ;;  %v3344_v63 = vpop.f32.mrb[22].mxu0  ;;  %3804 = vtanh.f32 %v1978_v57 }
 0x116   :  { %v3781_v60 = vpop.eup %3780  ;;  %2671 = vst [vmem:[%s5825_s3 + $0x78] sm:$0xff] %v3779_v55  ;;  %v3472_v0 = vpop.f32.mrb[22].mxu1  ;;  %v1469_v2 = vadd.f32 %v3344_v63, %v4712_v52  ;;  %3806 = vtanh.f32 %v1458_v61 }
 0x117   :  { %v3783_v1 = vpop.eup %3782  ;;  %2799 = vst [vmem:[%s5825_s3 + $0x478] sm:$0xff] %v3781_v60  ;;  %v1460_v3 = vpop.f32.mrb[23].mxu0  ;;  %v1981_v6 = vadd.f32 %v3472_v0, %v4712_v52  ;;  %3808 = vtanh.f32 %v1970_v62 }
 0x118   :  { %v1972_v4 = vpop.f32.mrb[23].mxu1  ;;  %v3785_v5 = vpop.eup %3784  ;;  %2669 = vst [vmem:[%s5825_s3 + $0x68] sm:$0xff] %v3783_v1  ;;  %v1461_v8 = vadd.f32 %v4712_v52, %v1460_v3  ;;  %3810 = vtanh.f32 %v1469_v2 }
 0x119   :  { %v3787_v7 = vpop.eup %3786  ;;  %2797 = vst [vmem:[%s5825_s3 + $0x468] sm:$0xff] %v3785_v5  ;;  %v1973_v10 = vadd.f32 %v4712_v52, %v1972_v4  ;;  %3812 = vtanh.f32 %v1981_v6  ;;  %v3347_v13 = vpop.f32.mrb[24].mxu0 }
 0x11a   :  { %v3789_v9 = vpop.eup %3788  ;;  %2674 = vst [vmem:[%s5825_s3 + $0x90] sm:$0xff] %v3787_v7  ;;  %v3475_v14 = vpop.f32.mrb[24].mxu1  ;;  %3814 = vtanh.f32 %v1461_v8  ;;  %v1482_v16 = vadd.f32 %v3347_v13, %v4712_v52 }
 0x11b   :  { %v3791_v11 = vpop.eup %3790  ;;  %2802 = vst [vmem:[%s5825_s3 + $0x490] sm:$0xff] %v3789_v9  ;;  %v1994_v17 = vadd.f32 %v3475_v14, %v4712_v52  ;;  %v1473_v18 = vpop.f32.mrb[25].mxu0  ;;  %3816 = vtanh.f32 %v1973_v10 }
 0x11c   :  { %v3793_v12 = vpop.eup %3792  ;;  %2672 = vst [vmem:[%s5825_s3 + $0x80] sm:$0xff] %v3791_v11  ;;  %v1985_v19 = vpop.f32.mrb[25].mxu1  ;;  %v1474_v21 = vadd.f32 %v4712_v52, %v1473_v18  ;;  %3818 = vtanh.f32 %v1482_v16 }
 0x11d   :  { %v3795_v15 = vpop.eup %3794  ;;  %2800 = vst [vmem:[%s5825_s3 + $0x480] sm:$0xff] %v3793_v12  ;;  %v1986_v22 = vadd.f32 %v4712_v52, %v1985_v19  ;;  %v3348_v23 = vpop.f32.mrb[26].mxu0  ;;  %3820 = vtanh.f32 %v1994_v17 }
 0x11e   :  { %v3797_v20 = vpop.eup %3796  ;;  %2675 = vst [vmem:[%s5825_s3 + $0x98] sm:$0xff] %v3795_v15  ;;  %v3476_v24 = vpop.f32.mrb[26].mxu1  ;;  %v1485_v26 = vadd.f32 %v3348_v23, %v4712_v52  ;;  %3822 = vtanh.f32 %v1474_v21 }
 0x11f   :  { %v3799_v25 = vpop.eup %3798  ;;  %2803 = vst [vmem:[%s5825_s3 + $0x498] sm:$0xff] %v3797_v20  ;;  %v1476_v27 = vpop.f32.mrb[27].mxu0  ;;  %v1997_v30 = vadd.f32 %v3476_v24, %v4712_v52  ;;  %3824 = vtanh.f32 %v1986_v22 }
 0x120   :  { %v1988_v28 = vpop.f32.mrb[27].mxu1  ;;  %v3801_v29 = vpop.eup %3800  ;;  %2673 = vst [vmem:[%s5825_s3 + $0x88] sm:$0xff] %v3799_v25  ;;  %v1477_v32 = vadd.f32 %v4712_v52, %v1476_v27  ;;  %3826 = vtanh.f32 %v1485_v26 }
 0x121   :  { %v3803_v31 = vpop.eup %3802  ;;  %2801 = vst [vmem:[%s5825_s3 + $0x488] sm:$0xff] %v3801_v29  ;;  %v1989_v34 = vadd.f32 %v4712_v52, %v1988_v28  ;;  %3828 = vtanh.f32 %v1997_v30  ;;  %v3351_v37 = vpop.f32.mrb[28].mxu0 }
 0x122   :  { %v3805_v33 = vpop.eup %3804  ;;  %2678 = vst [vmem:[%s5825_s3 + $0xb0] sm:$0xff] %v3803_v31  ;;  %v3479_v38 = vpop.f32.mrb[28].mxu1  ;;  %3830 = vtanh.f32 %v1477_v32  ;;  %v1498_v40 = vadd.f32 %v3351_v37, %v4712_v52 }
 0x123   :  { %v3807_v35 = vpop.eup %3806  ;;  %2806 = vst [vmem:[%s5825_s3 + $0x4b0] sm:$0xff] %v3805_v33  ;;  %v2010_v41 = vadd.f32 %v3479_v38, %v4712_v52  ;;  %v1489_v42 = vpop.f32.mrb[29].mxu0  ;;  %3832 = vtanh.f32 %v1989_v34 }
 0x124   :  { %v3809_v36 = vpop.eup %3808  ;;  %2676 = vst [vmem:[%s5825_s3 + $0xa0] sm:$0xff] %v3807_v35  ;;  %v2001_v43 = vpop.f32.mrb[29].mxu1  ;;  %v1490_v45 = vadd.f32 %v4712_v52, %v1489_v42  ;;  %3834 = vtanh.f32 %v1498_v40 }
 0x125   :  { %v3811_v39 = vpop.eup %3810  ;;  %2804 = vst [vmem:[%s5825_s3 + $0x4a0] sm:$0xff] %v3809_v36  ;;  %v2002_v46 = vadd.f32 %v4712_v52, %v2001_v43  ;;  %v3352_v47 = vpop.f32.mrb[30].mxu0  ;;  %3836 = vtanh.f32 %v2010_v41 }
 0x126   :  { %v3813_v44 = vpop.eup %3812  ;;  %2679 = vst [vmem:[%s5825_s3 + $0xb8] sm:$0xff] %v3811_v39  ;;  %v3480_v48 = vpop.f32.mrb[30].mxu1  ;;  %v1501_v50 = vadd.f32 %v3352_v47, %v4712_v52  ;;  %3838 = vtanh.f32 %v1490_v45 }
 0x127   :  { %v3815_v49 = vpop.eup %3814  ;;  %2807 = vst [vmem:[%s5825_s3 + $0x4b8] sm:$0xff] %v3813_v44  ;;  %v1492_v51 = vpop.f32.mrb[31].mxu0  ;;  %v2013_v55 = vadd.f32 %v3480_v48, %v4712_v52  ;;  %3840 = vtanh.f32 %v2002_v46 }
 0x128   :  { %v2004_v53 = vpop.f32.mrb[31].mxu1  ;;  %v3817_v54 = vpop.eup %3816  ;;  %2677 = vst [vmem:[%s5825_s3 + $0xa8] sm:$0xff] %v3815_v49  ;;  %v1493_v57 = vadd.f32 %v4712_v52, %v1492_v51  ;;  %3842 = vtanh.f32 %v1501_v50 }
 0x129   :  { %v3819_v56 = vpop.eup %3818  ;;  %2805 = vst [vmem:[%s5825_s3 + $0x4a8] sm:$0xff] %v3817_v54  ;;  %v2005_v59 = vadd.f32 %v4712_v52, %v2004_v53  ;;  %3844 = vtanh.f32 %v2013_v55  ;;  %v3355_v62 = vpop.f32.mrb[32].mxu0 }
 0x12a   :  { %v3821_v58 = vpop.eup %3820  ;;  %2682 = vst [vmem:[%s5825_s3 + $0xd0] sm:$0xff] %v3819_v56  ;;  %v3483_v63 = vpop.f32.mrb[32].mxu1  ;;  %3846 = vtanh.f32 %v1493_v57  ;;  %v1514_v1 = vadd.f32 %v3355_v62, %v4712_v52 }
 0x12b   :  { %v3823_v60 = vpop.eup %3822  ;;  %2810 = vst [vmem:[%s5825_s3 + $0x4d0] sm:$0xff] %v3821_v58  ;;  %v2026_v2 = vadd.f32 %v3483_v63, %v4712_v52  ;;  %v1505_v3 = vpop.f32.mrb[33].mxu0  ;;  %3848 = vtanh.f32 %v2005_v59 }
 0x12c   :  { %v3825_v61 = vpop.eup %3824  ;;  %2680 = vst [vmem:[%s5825_s3 + $0xc0] sm:$0xff] %v3823_v60  ;;  %v2017_v4 = vpop.f32.mrb[33].mxu1  ;;  %v1506_v6 = vadd.f32 %v4712_v52, %v1505_v3  ;;  %3850 = vtanh.f32 %v1514_v1 }
 0x12d   :  { %v3827_v0 = vpop.eup %3826  ;;  %2808 = vst [vmem:[%s5825_s3 + $0x4c0] sm:$0xff] %v3825_v61  ;;  %v2018_v7 = vadd.f32 %v4712_v52, %v2017_v4  ;;  %v3356_v8 = vpop.f32.mrb[34].mxu0  ;;  %3852 = vtanh.f32 %v2026_v2 }
 0x12e   :  { %v3829_v5 = vpop.eup %3828  ;;  %2683 = vst [vmem:[%s5825_s3 + $0xd8] sm:$0xff] %v3827_v0  ;;  %v3484_v9 = vpop.f32.mrb[34].mxu1  ;;  %v1517_v11 = vadd.f32 %v3356_v8, %v4712_v52  ;;  %3854 = vtanh.f32 %v1506_v6 }
 0x12f   :  { %v3831_v10 = vpop.eup %3830  ;;  %2811 = vst [vmem:[%s5825_s3 + $0x4d8] sm:$0xff] %v3829_v5  ;;  %v1508_v12 = vpop.f32.mrb[35].mxu0  ;;  %v2029_v15 = vadd.f32 %v3484_v9, %v4712_v52  ;;  %3856 = vtanh.f32 %v2018_v7 }
 0x130   :  { %v2020_v13 = vpop.f32.mrb[35].mxu1  ;;  %v3833_v14 = vpop.eup %3832  ;;  %2681 = vst [vmem:[%s5825_s3 + $0xc8] sm:$0xff] %v3831_v10  ;;  %v1509_v17 = vadd.f32 %v4712_v52, %v1508_v12  ;;  %3858 = vtanh.f32 %v1517_v11 }
 0x131   :  { %v3835_v16 = vpop.eup %3834  ;;  %2809 = vst [vmem:[%s5825_s3 + $0x4c8] sm:$0xff] %v3833_v14  ;;  %v2021_v19 = vadd.f32 %v4712_v52, %v2020_v13  ;;  %3860 = vtanh.f32 %v2029_v15  ;;  %v3359_v22 = vpop.f32.mrb[36].mxu0 }
 0x132   :  { %v3837_v18 = vpop.eup %3836  ;;  %2686 = vst [vmem:[%s5825_s3 + $0xf0] sm:$0xff] %v3835_v16  ;;  %v3487_v23 = vpop.f32.mrb[36].mxu1  ;;  %3862 = vtanh.f32 %v1509_v17  ;;  %v1530_v25 = vadd.f32 %v3359_v22, %v4712_v52 }
 0x133   :  { %v3839_v20 = vpop.eup %3838  ;;  %2814 = vst [vmem:[%s5825_s3 + $0x4f0] sm:$0xff] %v3837_v18  ;;  %v2042_v26 = vadd.f32 %v3487_v23, %v4712_v52  ;;  %v1521_v27 = vpop.f32.mrb[37].mxu0  ;;  %3864 = vtanh.f32 %v2021_v19 }
 0x134   :  { %v3841_v21 = vpop.eup %3840  ;;  %2684 = vst [vmem:[%s5825_s3 + $0xe0] sm:$0xff] %v3839_v20  ;;  %v2033_v28 = vpop.f32.mrb[37].mxu1  ;;  %v1522_v30 = vadd.f32 %v4712_v52, %v1521_v27  ;;  %3866 = vtanh.f32 %v1530_v25 }
 0x135   :  { %v3843_v24 = vpop.eup %3842  ;;  %2812 = vst [vmem:[%s5825_s3 + $0x4e0] sm:$0xff] %v3841_v21  ;;  %v2034_v31 = vadd.f32 %v4712_v52, %v2033_v28  ;;  %v3360_v32 = vpop.f32.mrb[38].mxu0  ;;  %3868 = vtanh.f32 %v2042_v26 }
 0x136   :  { %v3845_v29 = vpop.eup %3844  ;;  %2687 = vst [vmem:[%s5825_s3 + $0xf8] sm:$0xff] %v3843_v24  ;;  %v3488_v33 = vpop.f32.mrb[38].mxu1  ;;  %v1533_v35 = vadd.f32 %v3360_v32, %v4712_v52  ;;  %3870 = vtanh.f32 %v1522_v30 }
 0x137   :  { %v3847_v34 = vpop.eup %3846  ;;  %2815 = vst [vmem:[%s5825_s3 + $0x4f8] sm:$0xff] %v3845_v29  ;;  %v1524_v36 = vpop.f32.mrb[39].mxu0  ;;  %v2045_v39 = vadd.f32 %v3488_v33, %v4712_v52  ;;  %3872 = vtanh.f32 %v2034_v31 }
 0x138   :  { %v2036_v37 = vpop.f32.mrb[39].mxu1  ;;  %v3849_v38 = vpop.eup %3848  ;;  %2685 = vst [vmem:[%s5825_s3 + $0xe8] sm:$0xff] %v3847_v34  ;;  %v1525_v41 = vadd.f32 %v4712_v52, %v1524_v36  ;;  %3874 = vtanh.f32 %v1533_v35 }
 0x139   :  { %v3851_v40 = vpop.eup %3850  ;;  %2813 = vst [vmem:[%s5825_s3 + $0x4e8] sm:$0xff] %v3849_v38  ;;  %v2037_v43 = vadd.f32 %v4712_v52, %v2036_v37  ;;  %3876 = vtanh.f32 %v2045_v39  ;;  %v3363_v46 = vpop.f32.mrb[40].mxu0 }
 0x13a   :  { %v3853_v42 = vpop.eup %3852  ;;  %2690 = vst [vmem:[%s5825_s3 + $0x110] sm:$0xff] %v3851_v40  ;;  %v3491_v47 = vpop.f32.mrb[40].mxu1  ;;  %3878 = vtanh.f32 %v1525_v41  ;;  %v1546_v49 = vadd.f32 %v3363_v46, %v4712_v52 }
 0x13b   :  { %v3855_v44 = vpop.eup %3854  ;;  %2818 = vst [vmem:[%s5825_s3 + $0x510] sm:$0xff] %v3853_v42  ;;  %v2058_v50 = vadd.f32 %v3491_v47, %v4712_v52  ;;  %v1537_v51 = vpop.f32.mrb[41].mxu0  ;;  %3880 = vtanh.f32 %v2037_v43 }
 0x13c   :  { %v3857_v45 = vpop.eup %3856  ;;  %2688 = vst [vmem:[%s5825_s3 + $0x100] sm:$0xff] %v3855_v44  ;;  %v2049_v53 = vpop.f32.mrb[41].mxu1  ;;  %v1538_v55 = vadd.f32 %v4712_v52, %v1537_v51  ;;  %3882 = vtanh.f32 %v1546_v49  ;;  %v5149_v44 = vld [vmem:[%s5824_s2] ss:$0 sm:$0xff] }
 0x13d   :  { %v3859_v48 = vpop.eup %3858  ;;  %2816 = vst [vmem:[%s5825_s3 + $0x500] sm:$0xff] %v3857_v45  ;;  %v2050_v56 = vadd.f32 %v4712_v52, %v2049_v53  ;;  %v3364_v57 = vpop.f32.mrb[42].mxu0  ;;  %3884 = vtanh.f32 %v2058_v50 }
 0x13e   :  { %v3861_v54 = vpop.eup %3860  ;;  %2691 = vst [vmem:[%s5825_s3 + $0x118] sm:$0xff] %v3859_v48  ;;  %v3492_v58 = vpop.f32.mrb[42].mxu1  ;;  %v1549_v60 = vadd.f32 %v3364_v57, %v4712_v52  ;;  %3886 = vtanh.f32 %v1538_v55 }
 0x13f   :  { %v3863_v59 = vpop.eup %3862  ;;  %2819 = vst [vmem:[%s5825_s3 + $0x518] sm:$0xff] %v3861_v54  ;;  %v1540_v61 = vpop.f32.mrb[43].mxu0  ;;  %v2061_v0 = vadd.f32 %v3492_v58, %v4712_v52  ;;  %3888 = vtanh.f32 %v2050_v56 }
 0x140   :  { %v2052_v62 = vpop.f32.mrb[43].mxu1  ;;  %v3865_v63 = vpop.eup %3864  ;;  %2689 = vst [vmem:[%s5825_s3 + $0x108] sm:$0xff] %v3863_v59  ;;  %v1541_v2 = vadd.f32 %v4712_v52, %v1540_v61  ;;  %3890 = vtanh.f32 %v1549_v60 }
 0x141   :  { %v3867_v1 = vpop.eup %3866  ;;  %2817 = vst [vmem:[%s5825_s3 + $0x508] sm:$0xff] %v3865_v63  ;;  %v2053_v4 = vadd.f32 %v4712_v52, %v2052_v62  ;;  %3892 = vtanh.f32 %v2061_v0  ;;  %v3367_v7 = vpop.f32.mrb[44].mxu0 }
 0x142   :  { %v3869_v3 = vpop.eup %3868  ;;  %2694 = vst [vmem:[%s5825_s3 + $0x130] sm:$0xff] %v3867_v1  ;;  %v3495_v8 = vpop.f32.mrb[44].mxu1  ;;  %3894 = vtanh.f32 %v1541_v2  ;;  %v1562_v10 = vadd.f32 %v3367_v7, %v4712_v52 }
 0x143   :  { %v3871_v5 = vpop.eup %3870  ;;  %2822 = vst [vmem:[%s5825_s3 + $0x530] sm:$0xff] %v3869_v3  ;;  %v2074_v11 = vadd.f32 %v3495_v8, %v4712_v52  ;;  %v1553_v12 = vpop.f32.mrb[45].mxu0  ;;  %3896 = vtanh.f32 %v2053_v4 }
 0x144   :  { %v3873_v6 = vpop.eup %3872  ;;  %2692 = vst [vmem:[%s5825_s3 + $0x120] sm:$0xff] %v3871_v5  ;;  %v2065_v13 = vpop.f32.mrb[45].mxu1  ;;  %v1554_v15 = vadd.f32 %v4712_v52, %v1553_v12  ;;  %3898 = vtanh.f32 %v1562_v10 }
 0x145   :  { %v3875_v9 = vpop.eup %3874  ;;  %2820 = vst [vmem:[%s5825_s3 + $0x520] sm:$0xff] %v3873_v6  ;;  %v2066_v16 = vadd.f32 %v4712_v52, %v2065_v13  ;;  %v3368_v17 = vpop.f32.mrb[46].mxu0  ;;  %3900 = vtanh.f32 %v2074_v11 }
 0x146   :  { %v3877_v14 = vpop.eup %3876  ;;  %2695 = vst [vmem:[%s5825_s3 + $0x138] sm:$0xff] %v3875_v9  ;;  %v3496_v18 = vpop.f32.mrb[46].mxu1  ;;  %v1565_v20 = vadd.f32 %v3368_v17, %v4712_v52  ;;  %3902 = vtanh.f32 %v1554_v15 }
 0x147   :  { %v3879_v19 = vpop.eup %3878  ;;  %2823 = vst [vmem:[%s5825_s3 + $0x538] sm:$0xff] %v3877_v14  ;;  %v1556_v21 = vpop.f32.mrb[47].mxu0  ;;  %v2077_v24 = vadd.f32 %v3496_v18, %v4712_v52  ;;  %3904 = vtanh.f32 %v2066_v16 }
 0x148   :  { %v2068_v22 = vpop.f32.mrb[47].mxu1  ;;  %v3881_v23 = vpop.eup %3880  ;;  %2693 = vst [vmem:[%s5825_s3 + $0x128] sm:$0xff] %v3879_v19  ;;  %v1557_v26 = vadd.f32 %v4712_v52, %v1556_v21  ;;  %3906 = vtanh.f32 %v1565_v20 }
 0x149   :  { %v3883_v25 = vpop.eup %3882  ;;  %2821 = vst [vmem:[%s5825_s3 + $0x528] sm:$0xff] %v3881_v23  ;;  %v2069_v28 = vadd.f32 %v4712_v52, %v2068_v22  ;;  %3908 = vtanh.f32 %v2077_v24  ;;  %v3371_v31 = vpop.f32.mrb[48].mxu0 }
 0x14a   :  { %v3885_v27 = vpop.eup %3884  ;;  %2698 = vst [vmem:[%s5825_s3 + $0x150] sm:$0xff] %v3883_v25  ;;  %v3499_v32 = vpop.f32.mrb[48].mxu1  ;;  %3910 = vtanh.f32 %v1557_v26  ;;  %v1578_v34 = vadd.f32 %v3371_v31, %v4712_v52 }
 0x14b   :  { %v3887_v29 = vpop.eup %3886  ;;  %2826 = vst [vmem:[%s5825_s3 + $0x550] sm:$0xff] %v3885_v27  ;;  %v2090_v35 = vadd.f32 %v3499_v32, %v4712_v52  ;;  %v1569_v36 = vpop.f32.mrb[49].mxu0  ;;  %3912 = vtanh.f32 %v2069_v28 }
 0x14c   :  { %v3889_v30 = vpop.eup %3888  ;;  %2696 = vst [vmem:[%s5825_s3 + $0x140] sm:$0xff] %v3887_v29  ;;  %v2081_v37 = vpop.f32.mrb[49].mxu1  ;;  %v1570_v39 = vadd.f32 %v4712_v52, %v1569_v36  ;;  %3914 = vtanh.f32 %v1578_v34 }
 0x14d   :  { %v3891_v33 = vpop.eup %3890  ;;  %2824 = vst [vmem:[%s5825_s3 + $0x540] sm:$0xff] %v3889_v30  ;;  %v2082_v40 = vadd.f32 %v4712_v52, %v2081_v37  ;;  %v3372_v41 = vpop.f32.mrb[50].mxu0  ;;  %3916 = vtanh.f32 %v2090_v35 }
 0x14e   :  { %v3893_v38 = vpop.eup %3892  ;;  %2699 = vst [vmem:[%s5825_s3 + $0x158] sm:$0xff] %v3891_v33  ;;  %v3500_v42 = vpop.f32.mrb[50].mxu1  ;;  %v1581_v45 = vadd.f32 %v5149_v44, %v3372_v41  ;;  %3918 = vtanh.f32 %v1570_v39 }
 0x14f   :  { %v3895_v43 = vpop.eup %3894  ;;  %2827 = vst [vmem:[%s5825_s3 + $0x558] sm:$0xff] %v3893_v38  ;;  %v1572_v46 = vpop.f32.mrb[51].mxu0  ;;  %v2093_v52 = vadd.f32 %v5149_v44, %v3500_v42  ;;  %3920 = vtanh.f32 %v2082_v40 }
 0x150   :  { %v2084_v47 = vpop.f32.mrb[51].mxu1  ;;  %v3897_v48 = vpop.eup %3896  ;;  %2697 = vst [vmem:[%s5825_s3 + $0x148] sm:$0xff] %v3895_v43  ;;  %v1573_v50 = vadd.f32 %v5149_v44, %v1572_v46  ;;  %3922 = vtanh.f32 %v1581_v45 }
 0x151   :  { %v3899_v49 = vpop.eup %3898  ;;  %2825 = vst [vmem:[%s5825_s3 + $0x548] sm:$0xff] %v3897_v48  ;;  %v2085_v53 = vadd.f32 %v5149_v44, %v2084_v47  ;;  %3924 = vtanh.f32 %v2093_v52  ;;  %v3375_v56 = vpop.f32.mrb[52].mxu0 }
 0x152   :  { %v3901_v51 = vpop.eup %3900  ;;  %2702 = vst [vmem:[%s5825_s3 + $0x170] sm:$0xff] %v3899_v49  ;;  %v3503_v57 = vpop.f32.mrb[52].mxu1  ;;  %3926 = vtanh.f32 %v1573_v50  ;;  %v1594_v59 = vadd.f32 %v5149_v44, %v3375_v56 }
 0x153   :  { %v3903_v54 = vpop.eup %3902  ;;  %2830 = vst [vmem:[%s5825_s3 + $0x570] sm:$0xff] %v3901_v51  ;;  %v2106_v60 = vadd.f32 %v5149_v44, %v3503_v57  ;;  %v1585_v61 = vpop.f32.mrb[53].mxu0  ;;  %3928 = vtanh.f32 %v2085_v53 }
 0x154   :  { %v3905_v55 = vpop.eup %3904  ;;  %2700 = vst [vmem:[%s5825_s3 + $0x160] sm:$0xff] %v3903_v54  ;;  %v2097_v62 = vpop.f32.mrb[53].mxu1  ;;  %v1586_v0 = vadd.f32 %v5149_v44, %v1585_v61  ;;  %3930 = vtanh.f32 %v1594_v59 }
 0x155   :  { %v3907_v58 = vpop.eup %3906  ;;  %2828 = vst [vmem:[%s5825_s3 + $0x560] sm:$0xff] %v3905_v55  ;;  %v2098_v1 = vadd.f32 %v5149_v44, %v2097_v62  ;;  %v3376_v2 = vpop.f32.mrb[54].mxu0  ;;  %3932 = vtanh.f32 %v2106_v60 }
 0x156   :  { %v3909_v63 = vpop.eup %3908  ;;  %2703 = vst [vmem:[%s5825_s3 + $0x178] sm:$0xff] %v3907_v58  ;;  %v3504_v3 = vpop.f32.mrb[54].mxu1  ;;  %v1597_v5 = vadd.f32 %v5149_v44, %v3376_v2  ;;  %3934 = vtanh.f32 %v1586_v0 }
 0x157   :  { %v3911_v4 = vpop.eup %3910  ;;  %2831 = vst [vmem:[%s5825_s3 + $0x578] sm:$0xff] %v3909_v63  ;;  %v1588_v6 = vpop.f32.mrb[55].mxu0  ;;  %v2109_v9 = vadd.f32 %v5149_v44, %v3504_v3  ;;  %3936 = vtanh.f32 %v2098_v1 }
 0x158   :  { %v2100_v7 = vpop.f32.mrb[55].mxu1  ;;  %v3913_v8 = vpop.eup %3912  ;;  %2701 = vst [vmem:[%s5825_s3 + $0x168] sm:$0xff] %v3911_v4  ;;  %v1589_v11 = vadd.f32 %v5149_v44, %v1588_v6  ;;  %3938 = vtanh.f32 %v1597_v5 }
 0x159   :  { %v3915_v10 = vpop.eup %3914  ;;  %2829 = vst [vmem:[%s5825_s3 + $0x568] sm:$0xff] %v3913_v8  ;;  %v2101_v13 = vadd.f32 %v5149_v44, %v2100_v7  ;;  %3940 = vtanh.f32 %v2109_v9  ;;  %v3379_v16 = vpop.f32.mrb[56].mxu0 }
 0x15a   :  { %v3917_v12 = vpop.eup %3916  ;;  %2706 = vst [vmem:[%s5825_s3 + $0x190] sm:$0xff] %v3915_v10  ;;  %v3507_v17 = vpop.f32.mrb[56].mxu1  ;;  %3942 = vtanh.f32 %v1589_v11  ;;  %v1610_v19 = vadd.f32 %v5149_v44, %v3379_v16 }
 0x15b   :  { %v3919_v14 = vpop.eup %3918  ;;  %2834 = vst [vmem:[%s5825_s3 + $0x590] sm:$0xff] %v3917_v12  ;;  %v2122_v20 = vadd.f32 %v5149_v44, %v3507_v17  ;;  %v1601_v21 = vpop.f32.mrb[57].mxu0  ;;  %3944 = vtanh.f32 %v2101_v13 }
 0x15c   :  { %v3921_v15 = vpop.eup %3920  ;;  %2704 = vst [vmem:[%s5825_s3 + $0x180] sm:$0xff] %v3919_v14  ;;  %v2113_v22 = vpop.f32.mrb[57].mxu1  ;;  %v1602_v24 = vadd.f32 %v5149_v44, %v1601_v21  ;;  %3946 = vtanh.f32 %v1610_v19 }
 0x15d   :  { %v3923_v18 = vpop.eup %3922  ;;  %2832 = vst [vmem:[%s5825_s3 + $0x580] sm:$0xff] %v3921_v15  ;;  %v2114_v25 = vadd.f32 %v5149_v44, %v2113_v22  ;;  %v3380_v26 = vpop.f32.mrb[58].mxu0  ;;  %3948 = vtanh.f32 %v2122_v20 }
 0x15e   :  { %v3925_v23 = vpop.eup %3924  ;;  %2707 = vst [vmem:[%s5825_s3 + $0x198] sm:$0xff] %v3923_v18  ;;  %v3508_v27 = vpop.f32.mrb[58].mxu1  ;;  %v1613_v29 = vadd.f32 %v5149_v44, %v3380_v26  ;;  %3950 = vtanh.f32 %v1602_v24 }
 0x15f   :  { %v3927_v28 = vpop.eup %3926  ;;  %2835 = vst [vmem:[%s5825_s3 + $0x598] sm:$0xff] %v3925_v23  ;;  %v1604_v30 = vpop.f32.mrb[59].mxu0  ;;  %v2125_v33 = vadd.f32 %v5149_v44, %v3508_v27  ;;  %3952 = vtanh.f32 %v2114_v25 }
 0x160   :  { %v2116_v31 = vpop.f32.mrb[59].mxu1  ;;  %v3929_v32 = vpop.eup %3928  ;;  %2705 = vst [vmem:[%s5825_s3 + $0x188] sm:$0xff] %v3927_v28  ;;  %v1605_v35 = vadd.f32 %v5149_v44, %v1604_v30  ;;  %3954 = vtanh.f32 %v1613_v29 }
 0x161   :  { %v3931_v34 = vpop.eup %3930  ;;  %2833 = vst [vmem:[%s5825_s3 + $0x588] sm:$0xff] %v3929_v32  ;;  %v2117_v37 = vadd.f32 %v5149_v44, %v2116_v31  ;;  %3956 = vtanh.f32 %v2125_v33  ;;  %v3383_v40 = vpop.f32.mrb[60].mxu0 }
 0x162   :  { %v3933_v36 = vpop.eup %3932  ;;  %2710 = vst [vmem:[%s5825_s3 + $0x1b0] sm:$0xff] %v3931_v34  ;;  %v3511_v41 = vpop.f32.mrb[60].mxu1  ;;  %3958 = vtanh.f32 %v1605_v35  ;;  %v1626_v43 = vadd.f32 %v5149_v44, %v3383_v40 }
 0x163   :  { %v3935_v38 = vpop.eup %3934  ;;  %2838 = vst [vmem:[%s5825_s3 + $0x5b0] sm:$0xff] %v3933_v36  ;;  %v2138_v45 = vadd.f32 %v5149_v44, %v3511_v41  ;;  %v1617_v46 = vpop.f32.mrb[61].mxu0  ;;  %3960 = vtanh.f32 %v2117_v37 }
 0x164   :  { %v3937_v39 = vpop.eup %3936  ;;  %2708 = vst [vmem:[%s5825_s3 + $0x1a0] sm:$0xff] %v3935_v38  ;;  %v2129_v47 = vpop.f32.mrb[61].mxu1  ;;  %v1618_v52 = vadd.f32 %v5149_v44, %v1617_v46  ;;  %3962 = vtanh.f32 %v1626_v43 }
 0x165   :  { %v3939_v42 = vpop.eup %3938  ;;  %2836 = vst [vmem:[%s5825_s3 + $0x5a0] sm:$0xff] %v3937_v39  ;;  %v2130_v49 = vadd.f32 %v5149_v44, %v2129_v47  ;;  %v3384_v50 = vpop.f32.mrb[62].mxu0  ;;  %3964 = vtanh.f32 %v2138_v45 }
 0x166   :  { %v3941_v48 = vpop.eup %3940  ;;  %2711 = vst [vmem:[%s5825_s3 + $0x1b8] sm:$0xff] %v3939_v42  ;;  %v3512_v51 = vpop.f32.mrb[62].mxu1  ;;  %v1629_v54 = vadd.f32 %v5149_v44, %v3384_v50  ;;  %3966 = vtanh.f32 %v1618_v52 }
 0x167   :  { %v3943_v53 = vpop.eup %3942  ;;  %2839 = vst [vmem:[%s5825_s3 + $0x5b8] sm:$0xff] %v3941_v48  ;;  %v1620_v55 = vpop.f32.mrb[63].mxu0  ;;  %v2141_v58 = vadd.f32 %v5149_v44, %v3512_v51  ;;  %3968 = vtanh.f32 %v2130_v49 }
 0x168   :  { %v2132_v56 = vpop.f32.mrb[63].mxu1  ;;  %v3945_v57 = vpop.eup %3944  ;;  %2709 = vst [vmem:[%s5825_s3 + $0x1a8] sm:$0xff] %v3943_v53  ;;  %v1621_v60 = vadd.f32 %v5149_v44, %v1620_v55  ;;  %3970 = vtanh.f32 %v1629_v54 }
 0x169   :  { %v3947_v59 = vpop.eup %3946  ;;  %2837 = vst [vmem:[%s5825_s3 + $0x5a8] sm:$0xff] %v3945_v57  ;;  %v2133_v62 = vadd.f32 %v5149_v44, %v2132_v56  ;;  %3972 = vtanh.f32 %v2141_v58  ;;  %v3387_v1 = vpop.f32.mrb[64].mxu0 }
 0x16a   :  { %v3949_v61 = vpop.eup %3948  ;;  %2714 = vst [vmem:[%s5825_s3 + $0x1d0] sm:$0xff] %v3947_v59  ;;  %v3515_v2 = vpop.f32.mrb[64].mxu1  ;;  %3974 = vtanh.f32 %v1621_v60  ;;  %v1642_v4 = vadd.f32 %v5149_v44, %v3387_v1 }
 0x16b   :  { %v3951_v63 = vpop.eup %3950  ;;  %2842 = vst [vmem:[%s5825_s3 + $0x5d0] sm:$0xff] %v3949_v61  ;;  %v2154_v5 = vadd.f32 %v5149_v44, %v3515_v2  ;;  %v1633_v6 = vpop.f32.mrb[65].mxu0  ;;  %3976 = vtanh.f32 %v2133_v62 }
 0x16c   :  { %v3953_v0 = vpop.eup %3952  ;;  %2712 = vst [vmem:[%s5825_s3 + $0x1c0] sm:$0xff] %v3951_v63  ;;  %v2145_v7 = vpop.f32.mrb[65].mxu1  ;;  %v1634_v9 = vadd.f32 %v5149_v44, %v1633_v6  ;;  %3978 = vtanh.f32 %v1642_v4 }
 0x16d   :  { %v3955_v3 = vpop.eup %3954  ;;  %2840 = vst [vmem:[%s5825_s3 + $0x5c0] sm:$0xff] %v3953_v0  ;;  %v2146_v10 = vadd.f32 %v5149_v44, %v2145_v7  ;;  %v3388_v11 = vpop.f32.mrb[66].mxu0  ;;  %3980 = vtanh.f32 %v2154_v5 }
 0x16e   :  { %v3957_v8 = vpop.eup %3956  ;;  %2715 = vst [vmem:[%s5825_s3 + $0x1d8] sm:$0xff] %v3955_v3  ;;  %v3516_v12 = vpop.f32.mrb[66].mxu1  ;;  %v1645_v14 = vadd.f32 %v5149_v44, %v3388_v11  ;;  %3982 = vtanh.f32 %v1634_v9 }
 0x16f   :  { %v3959_v13 = vpop.eup %3958  ;;  %2843 = vst [vmem:[%s5825_s3 + $0x5d8] sm:$0xff] %v3957_v8  ;;  %v1636_v15 = vpop.f32.mrb[67].mxu0  ;;  %v2157_v18 = vadd.f32 %v5149_v44, %v3516_v12  ;;  %3984 = vtanh.f32 %v2146_v10 }
 0x170   :  { %v2148_v16 = vpop.f32.mrb[67].mxu1  ;;  %v3961_v17 = vpop.eup %3960  ;;  %2713 = vst [vmem:[%s5825_s3 + $0x1c8] sm:$0xff] %v3959_v13  ;;  %v1637_v20 = vadd.f32 %v5149_v44, %v1636_v15  ;;  %3986 = vtanh.f32 %v1645_v14 }
 0x171   :  { %v3963_v19 = vpop.eup %3962  ;;  %2841 = vst [vmem:[%s5825_s3 + $0x5c8] sm:$0xff] %v3961_v17  ;;  %v2149_v22 = vadd.f32 %v5149_v44, %v2148_v16  ;;  %3988 = vtanh.f32 %v2157_v18  ;;  %v3391_v25 = vpop.f32.mrb[68].mxu0 }
 0x172   :  { %v3965_v21 = vpop.eup %3964  ;;  %2718 = vst [vmem:[%s5825_s3 + $0x1f0] sm:$0xff] %v3963_v19  ;;  %v3519_v26 = vpop.f32.mrb[68].mxu1  ;;  %3990 = vtanh.f32 %v1637_v20  ;;  %v1658_v28 = vadd.f32 %v5149_v44, %v3391_v25 }
 0x173   :  { %v3967_v23 = vpop.eup %3966  ;;  %2846 = vst [vmem:[%s5825_s3 + $0x5f0] sm:$0xff] %v3965_v21  ;;  %v2170_v29 = vadd.f32 %v5149_v44, %v3519_v26  ;;  %v1649_v30 = vpop.f32.mrb[69].mxu0  ;;  %3992 = vtanh.f32 %v2149_v22 }
 0x174   :  { %v3969_v24 = vpop.eup %3968  ;;  %2716 = vst [vmem:[%s5825_s3 + $0x1e0] sm:$0xff] %v3967_v23  ;;  %v2161_v31 = vpop.f32.mrb[69].mxu1  ;;  %v1650_v33 = vadd.f32 %v5149_v44, %v1649_v30  ;;  %3994 = vtanh.f32 %v1658_v28 }
 0x175   :  { %v3971_v27 = vpop.eup %3970  ;;  %2844 = vst [vmem:[%s5825_s3 + $0x5e0] sm:$0xff] %v3969_v24  ;;  %v2162_v34 = vadd.f32 %v5149_v44, %v2161_v31  ;;  %v3392_v35 = vpop.f32.mrb[70].mxu0  ;;  %3996 = vtanh.f32 %v2170_v29 }
 0x176   :  { %v3973_v32 = vpop.eup %3972  ;;  %2719 = vst [vmem:[%s5825_s3 + $0x1f8] sm:$0xff] %v3971_v27  ;;  %v3520_v36 = vpop.f32.mrb[70].mxu1  ;;  %v1661_v38 = vadd.f32 %v5149_v44, %v3392_v35  ;;  %3998 = vtanh.f32 %v1650_v33 }
 0x177   :  { %v3975_v37 = vpop.eup %3974  ;;  %2847 = vst [vmem:[%s5825_s3 + $0x5f8] sm:$0xff] %v3973_v32  ;;  %v1652_v39 = vpop.f32.mrb[71].mxu0  ;;  %v2173_v42 = vadd.f32 %v5149_v44, %v3520_v36  ;;  %4000 = vtanh.f32 %v2162_v34 }
 0x178   :  { %v2164_v40 = vpop.f32.mrb[71].mxu1  ;;  %v3977_v41 = vpop.eup %3976  ;;  %2717 = vst [vmem:[%s5825_s3 + $0x1e8] sm:$0xff] %v3975_v37  ;;  %v1653_v45 = vadd.f32 %v5149_v44, %v1652_v39  ;;  %4002 = vtanh.f32 %v1661_v38 }
 0x179   :  { %v3979_v43 = vpop.eup %3978  ;;  %2845 = vst [vmem:[%s5825_s3 + $0x5e8] sm:$0xff] %v3977_v41  ;;  %v2165_v47 = vadd.f32 %v5149_v44, %v2164_v40  ;;  %4004 = vtanh.f32 %v2173_v42  ;;  %v3395_v49 = vpop.f32.mrb[72].mxu0 }
 0x17a   :  { %v3981_v46 = vpop.eup %3980  ;;  %2722 = vst [vmem:[%s5825_s3 + $0x210] sm:$0xff] %v3979_v43  ;;  %v3523_v50 = vpop.f32.mrb[72].mxu1  ;;  %4006 = vtanh.f32 %v1653_v45  ;;  %v1674_v53 = vadd.f32 %v5149_v44, %v3395_v49 }
 0x17b   :  { %v3983_v48 = vpop.eup %3982  ;;  %2850 = vst [vmem:[%s5825_s3 + $0x610] sm:$0xff] %v3981_v46  ;;  %v2186_v54 = vadd.f32 %v5149_v44, %v3523_v50  ;;  %v1665_v55 = vpop.f32.mrb[73].mxu0  ;;  %4008 = vtanh.f32 %v2165_v47 }
 0x17c   :  { %v3985_v52 = vpop.eup %3984  ;;  %2720 = vst [vmem:[%s5825_s3 + $0x200] sm:$0xff] %v3983_v48  ;;  %v2177_v56 = vpop.f32.mrb[73].mxu1  ;;  %v1666_v58 = vadd.f32 %v5149_v44, %v1665_v55  ;;  %4010 = vtanh.f32 %v1674_v53 }
 0x17d   :  { %v3987_v51 = vpop.eup %3986  ;;  %2848 = vst [vmem:[%s5825_s3 + $0x600] sm:$0xff] %v3985_v52  ;;  %v2178_v59 = vadd.f32 %v5149_v44, %v2177_v56  ;;  %v3396_v60 = vpop.f32.mrb[74].mxu0  ;;  %4012 = vtanh.f32 %v2186_v54 }
 0x17e   :  { %v3989_v57 = vpop.eup %3988  ;;  %2723 = vst [vmem:[%s5825_s3 + $0x218] sm:$0xff] %v3987_v51  ;;  %v3524_v61 = vpop.f32.mrb[74].mxu1  ;;  %v1677_v63 = vadd.f32 %v5149_v44, %v3396_v60  ;;  %4014 = vtanh.f32 %v1666_v58 }
 0x17f   :  { %v3991_v62 = vpop.eup %3990  ;;  %2851 = vst [vmem:[%s5825_s3 + $0x618] sm:$0xff] %v3989_v57  ;;  %v1668_v0 = vpop.f32.mrb[75].mxu0  ;;  %v2189_v3 = vadd.f32 %v5149_v44, %v3524_v61  ;;  %4016 = vtanh.f32 %v2178_v59 }
 0x180   :  { %v2180_v1 = vpop.f32.mrb[75].mxu1  ;;  %v3993_v2 = vpop.eup %3992  ;;  %2721 = vst [vmem:[%s5825_s3 + $0x208] sm:$0xff] %v3991_v62  ;;  %v1669_v5 = vadd.f32 %v5149_v44, %v1668_v0  ;;  %4018 = vtanh.f32 %v1677_v63 }
 0x181   :  { %v3995_v4 = vpop.eup %3994  ;;  %2849 = vst [vmem:[%s5825_s3 + $0x608] sm:$0xff] %v3993_v2  ;;  %v2181_v7 = vadd.f32 %v5149_v44, %v2180_v1  ;;  %4020 = vtanh.f32 %v2189_v3  ;;  %v3399_v10 = vpop.f32.mrb[76].mxu0 }
 0x182   :  { %v3997_v6 = vpop.eup %3996  ;;  %2726 = vst [vmem:[%s5825_s3 + $0x230] sm:$0xff] %v3995_v4  ;;  %v3527_v11 = vpop.f32.mrb[76].mxu1  ;;  %4022 = vtanh.f32 %v1669_v5  ;;  %v1690_v13 = vadd.f32 %v5149_v44, %v3399_v10 }
 0x183   :  { %v3999_v8 = vpop.eup %3998  ;;  %2854 = vst [vmem:[%s5825_s3 + $0x630] sm:$0xff] %v3997_v6  ;;  %v2202_v14 = vadd.f32 %v5149_v44, %v3527_v11  ;;  %v1681_v15 = vpop.f32.mrb[77].mxu0  ;;  %4024 = vtanh.f32 %v2181_v7 }
 0x184   :  { %v4001_v9 = vpop.eup %4000  ;;  %2724 = vst [vmem:[%s5825_s3 + $0x220] sm:$0xff] %v3999_v8  ;;  %v2193_v16 = vpop.f32.mrb[77].mxu1  ;;  %v1682_v18 = vadd.f32 %v5149_v44, %v1681_v15  ;;  %4026 = vtanh.f32 %v1690_v13 }
 0x185   :  { %v4003_v12 = vpop.eup %4002  ;;  %2852 = vst [vmem:[%s5825_s3 + $0x620] sm:$0xff] %v4001_v9  ;;  %v2194_v19 = vadd.f32 %v5149_v44, %v2193_v16  ;;  %v3400_v20 = vpop.f32.mrb[78].mxu0  ;;  %4028 = vtanh.f32 %v2202_v14 }
 0x186   :  { %v4005_v17 = vpop.eup %4004  ;;  %2727 = vst [vmem:[%s5825_s3 + $0x238] sm:$0xff] %v4003_v12  ;;  %v3528_v21 = vpop.f32.mrb[78].mxu1  ;;  %v1693_v23 = vadd.f32 %v5149_v44, %v3400_v20  ;;  %4030 = vtanh.f32 %v1682_v18 }
 0x187   :  { %v4007_v22 = vpop.eup %4006  ;;  %2855 = vst [vmem:[%s5825_s3 + $0x638] sm:$0xff] %v4005_v17  ;;  %v1684_v24 = vpop.f32.mrb[79].mxu0  ;;  %v2205_v27 = vadd.f32 %v5149_v44, %v3528_v21  ;;  %4032 = vtanh.f32 %v2194_v19 }
 0x188   :  { %v2196_v25 = vpop.f32.mrb[79].mxu1  ;;  %v4009_v26 = vpop.eup %4008  ;;  %2725 = vst [vmem:[%s5825_s3 + $0x228] sm:$0xff] %v4007_v22  ;;  %v1685_v29 = vadd.f32 %v5149_v44, %v1684_v24  ;;  %4034 = vtanh.f32 %v1693_v23 }
 0x189   :  { %v4011_v28 = vpop.eup %4010  ;;  %2853 = vst [vmem:[%s5825_s3 + $0x628] sm:$0xff] %v4009_v26  ;;  %v2197_v31 = vadd.f32 %v5149_v44, %v2196_v25  ;;  %4036 = vtanh.f32 %v2205_v27  ;;  %v3403_v34 = vpop.f32.mrb[80].mxu0 }
 0x18a   :  { %v4013_v30 = vpop.eup %4012  ;;  %2730 = vst [vmem:[%s5825_s3 + $0x250] sm:$0xff] %v4011_v28  ;;  %v3531_v35 = vpop.f32.mrb[80].mxu1  ;;  %4038 = vtanh.f32 %v1685_v29  ;;  %v1706_v37 = vadd.f32 %v5149_v44, %v3403_v34 }
 0x18b   :  { %v4015_v32 = vpop.eup %4014  ;;  %2858 = vst [vmem:[%s5825_s3 + $0x650] sm:$0xff] %v4013_v30  ;;  %v2218_v38 = vadd.f32 %v5149_v44, %v3531_v35  ;;  %v1697_v39 = vpop.f32.mrb[81].mxu0  ;;  %4040 = vtanh.f32 %v2197_v31 }
 0x18c   :  { %v4017_v33 = vpop.eup %4016  ;;  %2728 = vst [vmem:[%s5825_s3 + $0x240] sm:$0xff] %v4015_v32  ;;  %v2209_v40 = vpop.f32.mrb[81].mxu1  ;;  %v1698_v42 = vadd.f32 %v5149_v44, %v1697_v39  ;;  %4042 = vtanh.f32 %v1706_v37 }
 0x18d   :  { %v4019_v36 = vpop.eup %4018  ;;  %2856 = vst [vmem:[%s5825_s3 + $0x640] sm:$0xff] %v4017_v33  ;;  %v2210_v43 = vadd.f32 %v5149_v44, %v2209_v40  ;;  %v3404_v45 = vpop.f32.mrb[82].mxu0  ;;  %4044 = vtanh.f32 %v2218_v38 }
 0x18e   :  { %v4021_v41 = vpop.eup %4020  ;;  %2731 = vst [vmem:[%s5825_s3 + $0x258] sm:$0xff] %v4019_v36  ;;  %v3532_v46 = vpop.f32.mrb[82].mxu1  ;;  %v1709_v48 = vadd.f32 %v5149_v44, %v3404_v45  ;;  %4046 = vtanh.f32 %v1698_v42 }
 0x18f   :  { %v4023_v47 = vpop.eup %4022  ;;  %2859 = vst [vmem:[%s5825_s3 + $0x658] sm:$0xff] %v4021_v41  ;;  %v1700_v52 = vpop.f32.mrb[83].mxu0  ;;  %v2221_v51 = vadd.f32 %v5149_v44, %v3532_v46  ;;  %4048 = vtanh.f32 %v2210_v43 }
 0x190   :  { %v2212_v49 = vpop.f32.mrb[83].mxu1  ;;  %v4025_v50 = vpop.eup %4024  ;;  %2729 = vst [vmem:[%s5825_s3 + $0x248] sm:$0xff] %v4023_v47  ;;  %v1701_v54 = vadd.f32 %v5149_v44, %v1700_v52  ;;  %4050 = vtanh.f32 %v1709_v48 }
 0x191   :  { %v4027_v53 = vpop.eup %4026  ;;  %2857 = vst [vmem:[%s5825_s3 + $0x648] sm:$0xff] %v4025_v50  ;;  %v2213_v56 = vadd.f32 %v5149_v44, %v2212_v49  ;;  %4052 = vtanh.f32 %v2221_v51  ;;  %v3407_v59 = vpop.f32.mrb[84].mxu0 }
 0x192   :  { %v4029_v55 = vpop.eup %4028  ;;  %2734 = vst [vmem:[%s5825_s3 + $0x270] sm:$0xff] %v4027_v53  ;;  %v3535_v60 = vpop.f32.mrb[84].mxu1  ;;  %4054 = vtanh.f32 %v1701_v54  ;;  %v1722_v62 = vadd.f32 %v5149_v44, %v3407_v59 }
 0x193   :  { %v4031_v57 = vpop.eup %4030  ;;  %2862 = vst [vmem:[%s5825_s3 + $0x670] sm:$0xff] %v4029_v55  ;;  %v2234_v63 = vadd.f32 %v5149_v44, %v3535_v60  ;;  %v1713_v0 = vpop.f32.mrb[85].mxu0  ;;  %4056 = vtanh.f32 %v2213_v56 }
 0x194   :  { %v4033_v58 = vpop.eup %4032  ;;  %2732 = vst [vmem:[%s5825_s3 + $0x260] sm:$0xff] %v4031_v57  ;;  %v2225_v1 = vpop.f32.mrb[85].mxu1  ;;  %v1714_v3 = vadd.f32 %v5149_v44, %v1713_v0  ;;  %4058 = vtanh.f32 %v1722_v62 }
 0x195   :  { %v4035_v61 = vpop.eup %4034  ;;  %2860 = vst [vmem:[%s5825_s3 + $0x660] sm:$0xff] %v4033_v58  ;;  %v2226_v4 = vadd.f32 %v5149_v44, %v2225_v1  ;;  %v3408_v5 = vpop.f32.mrb[86].mxu0  ;;  %4060 = vtanh.f32 %v2234_v63 }
 0x196   :  { %v4037_v2 = vpop.eup %4036  ;;  %2735 = vst [vmem:[%s5825_s3 + $0x278] sm:$0xff] %v4035_v61  ;;  %v3536_v6 = vpop.f32.mrb[86].mxu1  ;;  %v1725_v8 = vadd.f32 %v5149_v44, %v3408_v5  ;;  %4062 = vtanh.f32 %v1714_v3 }
 0x197   :  { %v4039_v7 = vpop.eup %4038  ;;  %2863 = vst [vmem:[%s5825_s3 + $0x678] sm:$0xff] %v4037_v2  ;;  %v1716_v9 = vpop.f32.mrb[87].mxu0  ;;  %v2237_v12 = vadd.f32 %v5149_v44, %v3536_v6  ;;  %4064 = vtanh.f32 %v2226_v4 }
 0x198   :  { %v2228_v10 = vpop.f32.mrb[87].mxu1  ;;  %v4041_v11 = vpop.eup %4040  ;;  %2733 = vst [vmem:[%s5825_s3 + $0x268] sm:$0xff] %v4039_v7  ;;  %v1717_v14 = vadd.f32 %v5149_v44, %v1716_v9  ;;  %4066 = vtanh.f32 %v1725_v8 }
 0x199   :  { %v4043_v13 = vpop.eup %4042  ;;  %2861 = vst [vmem:[%s5825_s3 + $0x668] sm:$0xff] %v4041_v11  ;;  %v2229_v16 = vadd.f32 %v5149_v44, %v2228_v10  ;;  %4068 = vtanh.f32 %v2237_v12  ;;  %v3411_v19 = vpop.f32.mrb[88].mxu0 }
 0x19a   :  { %v4045_v15 = vpop.eup %4044  ;;  %2738 = vst [vmem:[%s5825_s3 + $0x290] sm:$0xff] %v4043_v13  ;;  %v3539_v20 = vpop.f32.mrb[88].mxu1  ;;  %4070 = vtanh.f32 %v1717_v14  ;;  %v1738_v22 = vadd.f32 %v5149_v44, %v3411_v19 }
 0x19b   :  { %v4047_v17 = vpop.eup %4046  ;;  %2866 = vst [vmem:[%s5825_s3 + $0x690] sm:$0xff] %v4045_v15  ;;  %v2250_v23 = vadd.f32 %v5149_v44, %v3539_v20  ;;  %v1729_v24 = vpop.f32.mrb[89].mxu0  ;;  %4072 = vtanh.f32 %v2229_v16 }
 0x19c   :  { %v4049_v18 = vpop.eup %4048  ;;  %2736 = vst [vmem:[%s5825_s3 + $0x280] sm:$0xff] %v4047_v17  ;;  %v2241_v25 = vpop.f32.mrb[89].mxu1  ;;  %v1730_v27 = vadd.f32 %v5149_v44, %v1729_v24  ;;  %4074 = vtanh.f32 %v1738_v22 }
 0x19d   :  { %v4051_v21 = vpop.eup %4050  ;;  %2864 = vst [vmem:[%s5825_s3 + $0x680] sm:$0xff] %v4049_v18  ;;  %v2242_v28 = vadd.f32 %v5149_v44, %v2241_v25  ;;  %v3412_v29 = vpop.f32.mrb[90].mxu0  ;;  %4076 = vtanh.f32 %v2250_v23 }
 0x19e   :  { %v4053_v26 = vpop.eup %4052  ;;  %2739 = vst [vmem:[%s5825_s3 + $0x298] sm:$0xff] %v4051_v21  ;;  %v3540_v30 = vpop.f32.mrb[90].mxu1  ;;  %v1741_v32 = vadd.f32 %v5149_v44, %v3412_v29  ;;  %4078 = vtanh.f32 %v1730_v27 }
 0x19f   :  { %v4055_v31 = vpop.eup %4054  ;;  %2867 = vst [vmem:[%s5825_s3 + $0x698] sm:$0xff] %v4053_v26  ;;  %v1732_v33 = vpop.f32.mrb[91].mxu0  ;;  %v2253_v36 = vadd.f32 %v5149_v44, %v3540_v30  ;;  %4080 = vtanh.f32 %v2242_v28 }
 0x1a0   :  { %v2244_v34 = vpop.f32.mrb[91].mxu1  ;;  %v4057_v35 = vpop.eup %4056  ;;  %2737 = vst [vmem:[%s5825_s3 + $0x288] sm:$0xff] %v4055_v31  ;;  %v1733_v38 = vadd.f32 %v5149_v44, %v1732_v33  ;;  %4082 = vtanh.f32 %v1741_v32 }
 0x1a1   :  { %v4059_v37 = vpop.eup %4058  ;;  %2865 = vst [vmem:[%s5825_s3 + $0x688] sm:$0xff] %v4057_v35  ;;  %v2245_v40 = vadd.f32 %v5149_v44, %v2244_v34  ;;  %4084 = vtanh.f32 %v2253_v36  ;;  %v3415_v43 = vpop.f32.mrb[92].mxu0  ;;  %v5565_v36 = vld [vmem:[%s5824_s2] ss:$0 sm:$0xff] }
 0x1a2   :  { %v4061_v39 = vpop.eup %4060  ;;  %2742 = vst [vmem:[%s5825_s3 + $0x2b0] sm:$0xff] %v4059_v37  ;;  %v3543_v45 = vpop.f32.mrb[92].mxu1  ;;  %4086 = vtanh.f32 %v1733_v38  ;;  %v1754_v47 = vadd.f32 %v5149_v44, %v3415_v43 }
 0x1a3   :  { %v4063_v41 = vpop.eup %4062  ;;  %2870 = vst [vmem:[%s5825_s3 + $0x6b0] sm:$0xff] %v4061_v39  ;;  %v2266_v48 = vadd.f32 %v5149_v44, %v3543_v45  ;;  %v1745_v52 = vpop.f32.mrb[93].mxu0  ;;  %4088 = vtanh.f32 %v2245_v40 }
 0x1a4   :  { %v4065_v42 = vpop.eup %4064  ;;  %2740 = vst [vmem:[%s5825_s3 + $0x2a0] sm:$0xff] %v4063_v41  ;;  %v2257_v49 = vpop.f32.mrb[93].mxu1  ;;  %v1746_v51 = vadd.f32 %v5149_v44, %v1745_v52  ;;  %4090 = vtanh.f32 %v1754_v47 }
 0x1a5   :  { %v4067_v46 = vpop.eup %4066  ;;  %2868 = vst [vmem:[%s5825_s3 + $0x6a0] sm:$0xff] %v4065_v42  ;;  %v2258_v53 = vadd.f32 %v5149_v44, %v2257_v49  ;;  %v3416_v54 = vpop.f32.mrb[94].mxu0  ;;  %4092 = vtanh.f32 %v2266_v48 }
 0x1a6   :  { %v4069_v50 = vpop.eup %4068  ;;  %2743 = vst [vmem:[%s5825_s3 + $0x2b8] sm:$0xff] %v4067_v46  ;;  %v3544_v55 = vpop.f32.mrb[94].mxu1  ;;  %v1757_v57 = vadd.f32 %v5149_v44, %v3416_v54  ;;  %4094 = vtanh.f32 %v1746_v51 }
 0x1a7   :  { %v4071_v56 = vpop.eup %4070  ;;  %2871 = vst [vmem:[%s5825_s3 + $0x6b8] sm:$0xff] %v4069_v50  ;;  %v1748_v58 = vpop.f32.mrb[95].mxu0  ;;  %v2269_v61 = vadd.f32 %v5149_v44, %v3544_v55  ;;  %4096 = vtanh.f32 %v2258_v53 }
 0x1a8   :  { %v2260_v59 = vpop.f32.mrb[95].mxu1  ;;  %v4073_v60 = vpop.eup %4072  ;;  %2741 = vst [vmem:[%s5825_s3 + $0x2a8] sm:$0xff] %v4071_v56  ;;  %v1749_v63 = vadd.f32 %v5149_v44, %v1748_v58  ;;  %4098 = vtanh.f32 %v1757_v57 }
 0x1a9   :  { %v4075_v62 = vpop.eup %4074  ;;  %2869 = vst [vmem:[%s5825_s3 + $0x6a8] sm:$0xff] %v4073_v60  ;;  %v2261_v1 = vadd.f32 %v5149_v44, %v2260_v59  ;;  %4100 = vtanh.f32 %v2269_v61  ;;  %v3419_v4 = vpop.f32.mrb[96].mxu0 }
 0x1aa   :  { %v4077_v0 = vpop.eup %4076  ;;  %2746 = vst [vmem:[%s5825_s3 + $0x2d0] sm:$0xff] %v4075_v62  ;;  %v3547_v5 = vpop.f32.mrb[96].mxu1  ;;  %4102 = vtanh.f32 %v1749_v63  ;;  %v1770_v7 = vadd.f32 %v5149_v44, %v3419_v4 }
 0x1ab   :  { %v4079_v2 = vpop.eup %4078  ;;  %2874 = vst [vmem:[%s5825_s3 + $0x6d0] sm:$0xff] %v4077_v0  ;;  %v2282_v8 = vadd.f32 %v5149_v44, %v3547_v5  ;;  %v1761_v9 = vpop.f32.mrb[97].mxu0  ;;  %4104 = vtanh.f32 %v2261_v1 }
 0x1ac   :  { %v4081_v3 = vpop.eup %4080  ;;  %2744 = vst [vmem:[%s5825_s3 + $0x2c0] sm:$0xff] %v4079_v2  ;;  %v2273_v10 = vpop.f32.mrb[97].mxu1  ;;  %v1762_v12 = vadd.f32 %v5149_v44, %v1761_v9  ;;  %4106 = vtanh.f32 %v1770_v7 }
 0x1ad   :  { %v4083_v6 = vpop.eup %4082  ;;  %2872 = vst [vmem:[%s5825_s3 + $0x6c0] sm:$0xff] %v4081_v3  ;;  %v2274_v13 = vadd.f32 %v5149_v44, %v2273_v10  ;;  %v3420_v14 = vpop.f32.mrb[98].mxu0  ;;  %4108 = vtanh.f32 %v2282_v8 }
 0x1ae   :  { %v4085_v11 = vpop.eup %4084  ;;  %2747 = vst [vmem:[%s5825_s3 + $0x2d8] sm:$0xff] %v4083_v6  ;;  %v3548_v15 = vpop.f32.mrb[98].mxu1  ;;  %v1773_v17 = vadd.f32 %v5149_v44, %v3420_v14  ;;  %4110 = vtanh.f32 %v1762_v12 }
 0x1af   :  { %v4087_v16 = vpop.eup %4086  ;;  %2875 = vst [vmem:[%s5825_s3 + $0x6d8] sm:$0xff] %v4085_v11  ;;  %v1764_v18 = vpop.f32.mrb[99].mxu0  ;;  %v2285_v21 = vadd.f32 %v5149_v44, %v3548_v15  ;;  %4112 = vtanh.f32 %v2274_v13 }
 0x1b0   :  { %v2276_v19 = vpop.f32.mrb[99].mxu1  ;;  %v4089_v20 = vpop.eup %4088  ;;  %2745 = vst [vmem:[%s5825_s3 + $0x2c8] sm:$0xff] %v4087_v16  ;;  %v1765_v23 = vadd.f32 %v5149_v44, %v1764_v18  ;;  %4114 = vtanh.f32 %v1773_v17 }
 0x1b1   :  { %v4091_v22 = vpop.eup %4090  ;;  %2873 = vst [vmem:[%s5825_s3 + $0x6c8] sm:$0xff] %v4089_v20  ;;  %v2277_v25 = vadd.f32 %v5149_v44, %v2276_v19  ;;  %4116 = vtanh.f32 %v2285_v21  ;;  %v3423_v28 = vpop.f32.mrb[100].mxu0 }
 0x1b2   :  { %v4093_v24 = vpop.eup %4092  ;;  %2750 = vst [vmem:[%s5825_s3 + $0x2f0] sm:$0xff] %v4091_v22  ;;  %v3551_v29 = vpop.f32.mrb[100].mxu1  ;;  %4118 = vtanh.f32 %v1765_v23  ;;  %v1786_v31 = vadd.f32 %v5149_v44, %v3423_v28 }
 0x1b3   :  { %v4095_v26 = vpop.eup %4094  ;;  %2878 = vst [vmem:[%s5825_s3 + $0x6f0] sm:$0xff] %v4093_v24  ;;  %v2298_v32 = vadd.f32 %v5149_v44, %v3551_v29  ;;  %v1777_v33 = vpop.f32.mrb[101].mxu0  ;;  %4120 = vtanh.f32 %v2277_v25 }
 0x1b4   :  { %v4097_v27 = vpop.eup %4096  ;;  %2748 = vst [vmem:[%s5825_s3 + $0x2e0] sm:$0xff] %v4095_v26  ;;  %v2289_v34 = vpop.f32.mrb[101].mxu1  ;;  %v1778_v37 = vadd.f32 %v5565_v36, %v1777_v33  ;;  %4122 = vtanh.f32 %v1786_v31 }
 0x1b5   :  { %v4099_v30 = vpop.eup %4098  ;;  %2876 = vst [vmem:[%s5825_s3 + $0x6e0] sm:$0xff] %v4097_v27  ;;  %v2290_v38 = vadd.f32 %v5565_v36, %v2289_v34  ;;  %v3424_v39 = vpop.f32.mrb[102].mxu0  ;;  %4124 = vtanh.f32 %v2298_v32 }
 0x1b6   :  { %v4101_v35 = vpop.eup %4100  ;;  %2751 = vst [vmem:[%s5825_s3 + $0x2f8] sm:$0xff] %v4099_v30  ;;  %v3552_v40 = vpop.f32.mrb[102].mxu1  ;;  %v1789_v41 = vadd.f32 %v5565_v36, %v3424_v39  ;;  %4126 = vtanh.f32 %v1778_v37 }
 0x1b7   :  { %v4103_v44 = vpop.eup %4102  ;;  %2879 = vst [vmem:[%s5825_s3 + $0x6f8] sm:$0xff] %v4101_v35  ;;  %v1780_v42 = vpop.f32.mrb[103].mxu0  ;;  %v2301_v46 = vadd.f32 %v5565_v36, %v3552_v40  ;;  %4128 = vtanh.f32 %v2290_v38 }
 0x1b8   :  { %v2292_v43 = vpop.f32.mrb[103].mxu1  ;;  %v4105_v45 = vpop.eup %4104  ;;  %2749 = vst [vmem:[%s5825_s3 + $0x2e8] sm:$0xff] %v4103_v44  ;;  %v1781_v48 = vadd.f32 %v5565_v36, %v1780_v42  ;;  %4130 = vtanh.f32 %v1789_v41 }
 0x1b9   :  { %v4107_v47 = vpop.eup %4106  ;;  %2877 = vst [vmem:[%s5825_s3 + $0x6e8] sm:$0xff] %v4105_v45  ;;  %v2293_v49 = vadd.f32 %v5565_v36, %v2292_v43  ;;  %4132 = vtanh.f32 %v2301_v46  ;;  %v3427_v53 = vpop.f32.mrb[104].mxu0 }
 0x1ba   :  { %v4109_v52 = vpop.eup %4108  ;;  %2754 = vst [vmem:[%s5825_s3 + $0x310] sm:$0xff] %v4107_v47  ;;  %v3555_v54 = vpop.f32.mrb[104].mxu1  ;;  %4134 = vtanh.f32 %v1781_v48  ;;  %v1802_v56 = vadd.f32 %v5565_v36, %v3427_v53 }
 0x1bb   :  { %v4111_v50 = vpop.eup %4110  ;;  %2882 = vst [vmem:[%s5825_s3 + $0x710] sm:$0xff] %v4109_v52  ;;  %v2314_v57 = vadd.f32 %v5565_v36, %v3555_v54  ;;  %v1793_v58 = vpop.f32.mrb[105].mxu0  ;;  %4136 = vtanh.f32 %v2293_v49 }
 0x1bc   :  { %v4113_v51 = vpop.eup %4112  ;;  %2752 = vst [vmem:[%s5825_s3 + $0x300] sm:$0xff] %v4111_v50  ;;  %v2305_v59 = vpop.f32.mrb[105].mxu1  ;;  %v1794_v61 = vadd.f32 %v5565_v36, %v1793_v58  ;;  %4138 = vtanh.f32 %v1802_v56 }
 0x1bd   :  { %v4115_v55 = vpop.eup %4114  ;;  %2880 = vst [vmem:[%s5825_s3 + $0x700] sm:$0xff] %v4113_v51  ;;  %v2306_v62 = vadd.f32 %v5565_v36, %v2305_v59  ;;  %v3428_v63 = vpop.f32.mrb[106].mxu0  ;;  %4140 = vtanh.f32 %v2314_v57 }
 0x1be   :  { %v4117_v60 = vpop.eup %4116  ;;  %2755 = vst [vmem:[%s5825_s3 + $0x318] sm:$0xff] %v4115_v55  ;;  %v3556_v0 = vpop.f32.mrb[106].mxu1  ;;  %v1805_v2 = vadd.f32 %v5565_v36, %v3428_v63  ;;  %4142 = vtanh.f32 %v1794_v61 }
 0x1bf   :  { %v4119_v1 = vpop.eup %4118  ;;  %2883 = vst [vmem:[%s5825_s3 + $0x718] sm:$0xff] %v4117_v60  ;;  %v1796_v3 = vpop.f32.mrb[107].mxu0  ;;  %v2317_v6 = vadd.f32 %v5565_v36, %v3556_v0  ;;  %4144 = vtanh.f32 %v2306_v62 }
 0x1c0   :  { %v2308_v4 = vpop.f32.mrb[107].mxu1  ;;  %v4121_v5 = vpop.eup %4120  ;;  %2753 = vst [vmem:[%s5825_s3 + $0x308] sm:$0xff] %v4119_v1  ;;  %v1797_v8 = vadd.f32 %v5565_v36, %v1796_v3  ;;  %4146 = vtanh.f32 %v1805_v2 }
 0x1c1   :  { %v4123_v7 = vpop.eup %4122  ;;  %2881 = vst [vmem:[%s5825_s3 + $0x708] sm:$0xff] %v4121_v5  ;;  %v2309_v10 = vadd.f32 %v5565_v36, %v2308_v4  ;;  %4148 = vtanh.f32 %v2317_v6  ;;  %v3431_v13 = vpop.f32.mrb[108].mxu0 }
 0x1c2   :  { %v4125_v9 = vpop.eup %4124  ;;  %2758 = vst [vmem:[%s5825_s3 + $0x330] sm:$0xff] %v4123_v7  ;;  %v3559_v14 = vpop.f32.mrb[108].mxu1  ;;  %4150 = vtanh.f32 %v1797_v8  ;;  %v1818_v16 = vadd.f32 %v5565_v36, %v3431_v13 }
 0x1c3   :  { %v4127_v11 = vpop.eup %4126  ;;  %2886 = vst [vmem:[%s5825_s3 + $0x730] sm:$0xff] %v4125_v9  ;;  %v2330_v17 = vadd.f32 %v5565_v36, %v3559_v14  ;;  %v1809_v18 = vpop.f32.mrb[109].mxu0  ;;  %4152 = vtanh.f32 %v2309_v10 }
 0x1c4   :  { %v4129_v12 = vpop.eup %4128  ;;  %2756 = vst [vmem:[%s5825_s3 + $0x320] sm:$0xff] %v4127_v11  ;;  %v2321_v19 = vpop.f32.mrb[109].mxu1  ;;  %v1810_v21 = vadd.f32 %v5565_v36, %v1809_v18  ;;  %4154 = vtanh.f32 %v1818_v16 }
 0x1c5   :  { %v4131_v15 = vpop.eup %4130  ;;  %2884 = vst [vmem:[%s5825_s3 + $0x720] sm:$0xff] %v4129_v12  ;;  %v2322_v22 = vadd.f32 %v5565_v36, %v2321_v19  ;;  %v3432_v23 = vpop.f32.mrb[110].mxu0  ;;  %4156 = vtanh.f32 %v2330_v17 }
 0x1c6   :  { %v4133_v20 = vpop.eup %4132  ;;  %2759 = vst [vmem:[%s5825_s3 + $0x338] sm:$0xff] %v4131_v15  ;;  %v3560_v24 = vpop.f32.mrb[110].mxu1  ;;  %v1821_v26 = vadd.f32 %v5565_v36, %v3432_v23  ;;  %4158 = vtanh.f32 %v1810_v21 }
 0x1c7   :  { %v4135_v25 = vpop.eup %4134  ;;  %2887 = vst [vmem:[%s5825_s3 + $0x738] sm:$0xff] %v4133_v20  ;;  %v1812_v27 = vpop.f32.mrb[111].mxu0  ;;  %v2333_v30 = vadd.f32 %v5565_v36, %v3560_v24  ;;  %4160 = vtanh.f32 %v2322_v22 }
 0x1c8   :  { %v2324_v28 = vpop.f32.mrb[111].mxu1  ;;  %v4137_v29 = vpop.eup %4136  ;;  %2757 = vst [vmem:[%s5825_s3 + $0x328] sm:$0xff] %v4135_v25  ;;  %v1813_v32 = vadd.f32 %v5565_v36, %v1812_v27  ;;  %4162 = vtanh.f32 %v1821_v26 }
 0x1c9   :  { %v4139_v31 = vpop.eup %4138  ;;  %2885 = vst [vmem:[%s5825_s3 + $0x728] sm:$0xff] %v4137_v29  ;;  %v2325_v34 = vadd.f32 %v5565_v36, %v2324_v28  ;;  %4164 = vtanh.f32 %v2333_v30  ;;  %v3435_v38 = vpop.f32.mrb[112].mxu0 }
 0x1ca   :  { %v4141_v33 = vpop.eup %4140  ;;  %2762 = vst [vmem:[%s5825_s3 + $0x350] sm:$0xff] %v4139_v31  ;;  %v3563_v39 = vpop.f32.mrb[112].mxu1  ;;  %4166 = vtanh.f32 %v1813_v32  ;;  %v1834_v44 = vadd.f32 %v5565_v36, %v3435_v38 }
 0x1cb   :  { %v4143_v35 = vpop.eup %4142  ;;  %2890 = vst [vmem:[%s5825_s3 + $0x750] sm:$0xff] %v4141_v33  ;;  %v2346_v41 = vadd.f32 %v5565_v36, %v3563_v39  ;;  %v1825_v42 = vpop.f32.mrb[113].mxu0  ;;  %4168 = vtanh.f32 %v2325_v34 }
 0x1cc   :  { %v4145_v37 = vpop.eup %4144  ;;  %2760 = vst [vmem:[%s5825_s3 + $0x340] sm:$0xff] %v4143_v35  ;;  %v2337_v43 = vpop.f32.mrb[113].mxu1  ;;  %v1826_v46 = vadd.f32 %v5565_v36, %v1825_v42  ;;  %4170 = vtanh.f32 %v1834_v44 }
 0x1cd   :  { %v4147_v40 = vpop.eup %4146  ;;  %2888 = vst [vmem:[%s5825_s3 + $0x740] sm:$0xff] %v4145_v37  ;;  %v2338_v47 = vadd.f32 %v5565_v36, %v2337_v43  ;;  %v3436_v48 = vpop.f32.mrb[114].mxu0  ;;  %4172 = vtanh.f32 %v2346_v41 }
 0x1ce   :  { %v4149_v45 = vpop.eup %4148  ;;  %2763 = vst [vmem:[%s5825_s3 + $0x358] sm:$0xff] %v4147_v40  ;;  %v3564_v52 = vpop.f32.mrb[114].mxu1  ;;  %v1837_v50 = vadd.f32 %v5565_v36, %v3436_v48  ;;  %4174 = vtanh.f32 %v1826_v46 }
 0x1cf   :  { %v4151_v49 = vpop.eup %4150  ;;  %2891 = vst [vmem:[%s5825_s3 + $0x758] sm:$0xff] %v4149_v45  ;;  %v1828_v51 = vpop.f32.mrb[115].mxu0  ;;  %v2349_v55 = vadd.f32 %v5565_v36, %v3564_v52  ;;  %4176 = vtanh.f32 %v2338_v47 }
 0x1d0   :  { %v2340_v53 = vpop.f32.mrb[115].mxu1  ;;  %v4153_v54 = vpop.eup %4152  ;;  %2761 = vst [vmem:[%s5825_s3 + $0x348] sm:$0xff] %v4151_v49  ;;  %v1829_v57 = vadd.f32 %v5565_v36, %v1828_v51  ;;  %4178 = vtanh.f32 %v1837_v50 }
 0x1d1   :  { %v4155_v56 = vpop.eup %4154  ;;  %2889 = vst [vmem:[%s5825_s3 + $0x748] sm:$0xff] %v4153_v54  ;;  %v2341_v59 = vadd.f32 %v5565_v36, %v2340_v53  ;;  %4180 = vtanh.f32 %v2349_v55  ;;  %v3439_v62 = vpop.f32.mrb[116].mxu0 }
 0x1d2   :  { %v4157_v58 = vpop.eup %4156  ;;  %2766 = vst [vmem:[%s5825_s3 + $0x370] sm:$0xff] %v4155_v56  ;;  %v3567_v63 = vpop.f32.mrb[116].mxu1  ;;  %4182 = vtanh.f32 %v1829_v57  ;;  %v1850_v1 = vadd.f32 %v5565_v36, %v3439_v62 }
 0x1d3   :  { %v4159_v60 = vpop.eup %4158  ;;  %2894 = vst [vmem:[%s5825_s3 + $0x770] sm:$0xff] %v4157_v58  ;;  %v2362_v2 = vadd.f32 %v5565_v36, %v3567_v63  ;;  %v1841_v3 = vpop.f32.mrb[117].mxu0  ;;  %4184 = vtanh.f32 %v2341_v59 }
 0x1d4   :  { %v4161_v61 = vpop.eup %4160  ;;  %2764 = vst [vmem:[%s5825_s3 + $0x360] sm:$0xff] %v4159_v60  ;;  %v2353_v4 = vpop.f32.mrb[117].mxu1  ;;  %v1842_v6 = vadd.f32 %v5565_v36, %v1841_v3  ;;  %4186 = vtanh.f32 %v1850_v1 }
 0x1d5   :  { %v4163_v0 = vpop.eup %4162  ;;  %2892 = vst [vmem:[%s5825_s3 + $0x760] sm:$0xff] %v4161_v61  ;;  %v2354_v7 = vadd.f32 %v5565_v36, %v2353_v4  ;;  %v3440_v8 = vpop.f32.mrb[118].mxu0  ;;  %4188 = vtanh.f32 %v2362_v2 }
 0x1d6   :  { %v4165_v5 = vpop.eup %4164  ;;  %2767 = vst [vmem:[%s5825_s3 + $0x378] sm:$0xff] %v4163_v0  ;;  %v3568_v9 = vpop.f32.mrb[118].mxu1  ;;  %v1853_v11 = vadd.f32 %v5565_v36, %v3440_v8  ;;  %4190 = vtanh.f32 %v1842_v6 }
 0x1d7   :  { %v4167_v10 = vpop.eup %4166  ;;  %2895 = vst [vmem:[%s5825_s3 + $0x778] sm:$0xff] %v4165_v5  ;;  %v1844_v12 = vpop.f32.mrb[119].mxu0  ;;  %v2365_v15 = vadd.f32 %v5565_v36, %v3568_v9  ;;  %4192 = vtanh.f32 %v2354_v7 }
 0x1d8   :  { %v2356_v13 = vpop.f32.mrb[119].mxu1  ;;  %v4169_v14 = vpop.eup %4168  ;;  %2765 = vst [vmem:[%s5825_s3 + $0x368] sm:$0xff] %v4167_v10  ;;  %v1845_v17 = vadd.f32 %v5565_v36, %v1844_v12  ;;  %4194 = vtanh.f32 %v1853_v11 }
 0x1d9   :  { %v4171_v16 = vpop.eup %4170  ;;  %2893 = vst [vmem:[%s5825_s3 + $0x768] sm:$0xff] %v4169_v14  ;;  %v2357_v19 = vadd.f32 %v5565_v36, %v2356_v13  ;;  %4196 = vtanh.f32 %v2365_v15  ;;  %v3443_v22 = vpop.f32.mrb[120].mxu0 }
 0x1da   :  { %v4173_v18 = vpop.eup %4172  ;;  %2770 = vst [vmem:[%s5825_s3 + $0x390] sm:$0xff] %v4171_v16  ;;  %v3571_v23 = vpop.f32.mrb[120].mxu1  ;;  %4198 = vtanh.f32 %v1845_v17  ;;  %v1866_v25 = vadd.f32 %v5565_v36, %v3443_v22 }
 0x1db   :  { %v4175_v20 = vpop.eup %4174  ;;  %2898 = vst [vmem:[%s5825_s3 + $0x790] sm:$0xff] %v4173_v18  ;;  %v2378_v26 = vadd.f32 %v5565_v36, %v3571_v23  ;;  %v1857_v27 = vpop.f32.mrb[121].mxu0  ;;  %4200 = vtanh.f32 %v2357_v19 }
 0x1dc   :  { %v4177_v21 = vpop.eup %4176  ;;  %2768 = vst [vmem:[%s5825_s3 + $0x380] sm:$0xff] %v4175_v20  ;;  %v2369_v28 = vpop.f32.mrb[121].mxu1  ;;  %v1858_v30 = vadd.f32 %v5565_v36, %v1857_v27  ;;  %4202 = vtanh.f32 %v1866_v25 }
 0x1dd   :  { %v4179_v24 = vpop.eup %4178  ;;  %2896 = vst [vmem:[%s5825_s3 + $0x780] sm:$0xff] %v4177_v21  ;;  %v2370_v31 = vadd.f32 %v5565_v36, %v2369_v28  ;;  %v3444_v32 = vpop.f32.mrb[122].mxu0  ;;  %4204 = vtanh.f32 %v2378_v26 }
 0x1de   :  { %v4181_v29 = vpop.eup %4180  ;;  %2771 = vst [vmem:[%s5825_s3 + $0x398] sm:$0xff] %v4179_v24  ;;  %v3572_v33 = vpop.f32.mrb[122].mxu1  ;;  %v1869_v35 = vadd.f32 %v5565_v36, %v3444_v32  ;;  %4206 = vtanh.f32 %v1858_v30 }
 0x1df   :  { %v4183_v34 = vpop.eup %4182  ;;  %2899 = vst [vmem:[%s5825_s3 + $0x798] sm:$0xff] %v4181_v29  ;;  %v1860_v37 = vpop.f32.mrb[123].mxu0  ;;  %v2381_v40 = vadd.f32 %v5565_v36, %v3572_v33  ;;  %4208 = vtanh.f32 %v2370_v31 }
 0x1e0   :  { %v2372_v38 = vpop.f32.mrb[123].mxu1  ;;  %v4185_v39 = vpop.eup %4184  ;;  %2769 = vst [vmem:[%s5825_s3 + $0x388] sm:$0xff] %v4183_v34  ;;  %v1861_v41 = vadd.f32 %v5565_v36, %v1860_v37  ;;  %4210 = vtanh.f32 %v1869_v35 }
 0x1e1   :  { %v4187_v44 = vpop.eup %4186  ;;  %2897 = vst [vmem:[%s5825_s3 + $0x788] sm:$0xff] %v4185_v39  ;;  %v2373_v43 = vadd.f32 %v5565_v36, %v2372_v38  ;;  %4212 = vtanh.f32 %v2381_v40  ;;  %v3447_v47 = vpop.f32.mrb[124].mxu0 }
 0x1e2   :  { %v4189_v42 = vpop.eup %4188  ;;  %2774 = vst [vmem:[%s5825_s3 + $0x3b0] sm:$0xff] %v4187_v44  ;;  %v3575_v48 = vpop.f32.mrb[124].mxu1  ;;  %4214 = vtanh.f32 %v1861_v41  ;;  %v1882_v49 = vadd.f32 %v5565_v36, %v3447_v47 }
 0x1e3   :  { %v4191_v45 = vpop.eup %4190  ;;  %2902 = vst [vmem:[%s5825_s3 + $0x7b0] sm:$0xff] %v4189_v42  ;;  %v2394_v50 = vadd.f32 %v5565_v36, %v3575_v48  ;;  %v1873_v51 = vpop.f32.mrb[125].mxu0  ;;  %4216 = vtanh.f32 %v2373_v43 }
 0x1e4   :  { %v4193_v46 = vpop.eup %4192  ;;  %2772 = vst [vmem:[%s5825_s3 + $0x3a0] sm:$0xff] %v4191_v45  ;;  %v2385_v53 = vpop.f32.mrb[125].mxu1  ;;  %v1874_v55 = vadd.f32 %v5565_v36, %v1873_v51  ;;  %4218 = vtanh.f32 %v1882_v49 }
 0x1e5   :  { %v4195_v52 = vpop.eup %4194  ;;  %2900 = vst [vmem:[%s5825_s3 + $0x7a0] sm:$0xff] %v4193_v46  ;;  %v2386_v56 = vadd.f32 %v5565_v36, %v2385_v53  ;;  %v3448_v57 = vpop.f32.mrb[126].mxu0  ;;  %4220 = vtanh.f32 %v2394_v50 }
 0x1e6   :  { %v4197_v54 = vpop.eup %4196  ;;  %2775 = vst [vmem:[%s5825_s3 + $0x3b8] sm:$0xff] %v4195_v52  ;;  %v3576_v58 = vpop.f32.mrb[126].mxu1  ;;  %v1885_v60 = vadd.f32 %v5565_v36, %v3448_v57  ;;  %4222 = vtanh.f32 %v1874_v55 }
 0x1e7   :  { %v4199_v59 = vpop.eup %4198  ;;  %2903 = vst [vmem:[%s5825_s3 + $0x7b8] sm:$0xff] %v4197_v54  ;;  %v1876_v61 = vpop.f32.mrb[127].mxu0  ;;  %v2397_v0 = vadd.f32 %v5565_v36, %v3576_v58  ;;  %4224 = vtanh.f32 %v2386_v56 }
 0x1e8   :  { %v2388_v62 = vpop.f32.mrb[127].mxu1  ;;  %v4201_v63 = vpop.eup %4200  ;;  %2773 = vst [vmem:[%s5825_s3 + $0x3a8] sm:$0xff] %v4199_v59  ;;  %v1877_v2 = vadd.f32 %v5565_v36, %v1876_v61  ;;  %4226 = vtanh.f32 %v1885_v60 }
 0x1e9   :  { %v4203_v1 = vpop.eup %4202  ;;  %2901 = vst [vmem:[%s5825_s3 + $0x7a8] sm:$0xff] %v4201_v63  ;;  %v2389_v4 = vadd.f32 %v5565_v36, %v2388_v62  ;;  %4228 = vtanh.f32 %v2397_v0 }
 0x1ea   :  { %v4205_v3 = vpop.eup %4204  ;;  %2778 = vst [vmem:[%s5825_s3 + $0x3d0] sm:$0xff] %v4203_v1  ;;  %4230 = vtanh.f32 %v1877_v2 }
 0x1eb   :  { %v4207_v5 = vpop.eup %4206  ;;  %2906 = vst [vmem:[%s5825_s3 + $0x7d0] sm:$0xff] %v4205_v3  ;;  %4232 = vtanh.f32 %v2389_v4 }
 0x1ec   :  { %v4209_v6 = vpop.eup %4208  ;;  %2776 = vst [vmem:[%s5825_s3 + $0x3c0] sm:$0xff] %v4207_v5 }
 0x1ed   :  { %v4211_v7 = vpop.eup %4210  ;;  %2904 = vst [vmem:[%s5825_s3 + $0x7c0] sm:$0xff] %v4209_v6 }
 0x1ee   :  { %v4213_v8 = vpop.eup %4212  ;;  %2779 = vst [vmem:[%s5825_s3 + $0x3d8] sm:$0xff] %v4211_v7 }
 0x1ef   :  { %v4215_v36 = vpop.eup %4214  ;;  %2907 = vst [vmem:[%s5825_s3 + $0x7d8] sm:$0xff] %v4213_v8 }
 0x1f0   :  { %v4217_v9 = vpop.eup %4216  ;;  %2777 = vst [vmem:[%s5825_s3 + $0x3c8] sm:$0xff] %v4215_v36 }
 0x1f1   :  { %v4219_v10 = vpop.eup %4218  ;;  %2905 = vst [vmem:[%s5825_s3 + $0x7c8] sm:$0xff] %v4217_v9 }
 0x1f2   :  { %v4221_v11 = vpop.eup %4220  ;;  %2782 = vst [vmem:[%s5825_s3 + $0x3f0] sm:$0xff] %v4219_v10 }
 0x1f3   :  { %v4223_v12 = vpop.eup %4222  ;;  %2910 = vst [vmem:[%s5825_s3 + $0x7f0] sm:$0xff] %v4221_v11 }
 0x1f4   :  { %v4225_v13 = vpop.eup %4224  ;;  %2780 = vst [vmem:[%s5825_s3 + $0x3e0] sm:$0xff] %v4223_v12 }
 0x1f5   :  { %v4227_v14 = vpop.eup %4226  ;;  %2908 = vst [vmem:[%s5825_s3 + $0x7e0] sm:$0xff] %v4225_v13 }
 0x1f6   :  { %v4229_v15 = vpop.eup %4228  ;;  %2783 = vst [vmem:[%s5825_s3 + $0x3f8] sm:$0xff] %v4227_v14 }
 0x1f7   :  { %v4231_v16 = vpop.eup %4230  ;;  %2911 = vst [vmem:[%s5825_s3 + $0x7f8] sm:$0xff] %v4229_v15 }
 0x1f8   :  { %v4233_v17 = vpop.eup %4232  ;;  %2781 = vst [vmem:[%s5825_s3 + $0x3e8] sm:$0xff] %v4231_v16 }
 0x1f9   :  { %2909 = vst [vmem:[%s5825_s3 + $0x7e8] sm:$0xff] %v4233_v17 }

</bundles_post_ra>
